<compile_context>
chip_gen: v6e
topology: v6e:2x2x1
jax: 0.10.0
libtpu: 0.0.40
codegen_flags: <defaults>
</compile_context>

<pallas_src>
import functools

import jax
import jax.numpy as jnp
from jax.experimental import pallas as pl
from jax.experimental.pallas import tpu as pltpu

NODE_FEAT = 3
EDGE_FEAT = 1
NODE_EMBED = 3
EDGE_EMBED = 4
N_CONV_LAYERS = 5
NUM_CLASSES = 2
EPS = 1e-5
SLAB_W = 16           # widest parameter block (domain head first hidden layer)
OUT_COLS = 128        # lane-aligned fused output buffer width


# ----------------------------------------------------------------------------
# Static parameter-slab layout (shared by host packing and in-kernel slicing)
# ----------------------------------------------------------------------------
def _slab_shapes():
    """Shapes of the slab blocks, in kernel consume order (post-reorientation)."""
    s = []
    # node embedding: W^T (3,3), bias/gamma/beta as (3,1) columns
    s += [(NODE_EMBED, NODE_FEAT), (NODE_EMBED, 1), (NODE_EMBED, 1), (NODE_EMBED, 1)]
    # edge embedding: W^T (4,1), bias/gamma/beta (4,1)
    s += [(EDGE_EMBED, EDGE_FEAT), (EDGE_EMBED, 1), (EDGE_EMBED, 1), (EDGE_EMBED, 1)]
    # 5 x NNConv: Wnn^T (9,4), bnn (9,1), Wroot^T (3,3), bconv/gamma/beta (3,1)
    for _ in range(N_CONV_LAYERS):
        s += [(NODE_EMBED * NODE_EMBED, EDGE_EMBED), (NODE_EMBED * NODE_EMBED, 1),
              (NODE_EMBED, NODE_EMBED), (NODE_EMBED, 1), (NODE_EMBED, 1), (NODE_EMBED, 1)]
    # label head (row orientation): 6->12->9->6 (Linear+ReLU+BN), then Linear(6,1)
    for (i, o) in [(6, 12), (12, 9), (9, 6)]:
        s += [(i, o), (1, o), (1, o), (1, o)]
    s += [(6, 1), (1, 1)]
    # domain head: 6->16->8->4 (Linear+ReLU+BN), then Linear(4, NUM_CLASSES)
    for (i, o) in [(6, 16), (16, 8), (8, 4)]:
        s += [(i, o), (1, o), (1, o), (1, o)]
    s += [(4, NUM_CLASSES), (1, NUM_CLASSES)]
    return tuple(s)


def _round8(n):
    return -(-n // 8) * 8


_SLAB_SHAPES = _slab_shapes()
_N_COL_BLOCKS = 4 + 4 + 6 * N_CONV_LAYERS        # blocks stored transposed / column form
_ROW_OFF = []
_r = 0
for _rows, _cols in _SLAB_SHAPES:
    _ROW_OFF.append(_r)
    _r += _round8(_rows)                         # 8-row alignment: zero-cost ref views
_ROW_OFF = tuple(_ROW_OFF)
SLAB_ROWS = _r


def _reorient_params(param_list):
    """Raw (PyTorch-layout) params -> slab blocks.

    Embedding / conv params are transposed to (out,in) / (d,1) column form for the
    lane-dense (feature, node|edge) stage; head params stay in (in,out) / (1,out)
    row form for the (graph, feature) head stage."""
    assert len(param_list) == len(_SLAB_SHAPES)
    blocks = []
    for i, p in enumerate(param_list):
        p = jnp.asarray(p, jnp.float32)
        blocks.append(p.T if i < _N_COL_BLOCKS else p)
    return blocks


def pack_params(param_list):
    """Pack the flat (ordered) parameter list into one (SLAB_ROWS, 16) f32 slab."""
    blocks = _reorient_params(param_list)
    padded = []
    for p, (r, c) in zip(blocks, _SLAB_SHAPES):
        assert p.shape == (r, c), (p.shape, (r, c))
        assert c <= SLAB_W
        padded.append(jnp.pad(p, ((0, _round8(r) - r), (0, SLAB_W - c))))
    return jnp.concatenate(padded, axis=0)


# ----------------------------------------------------------------------------
# In-kernel helpers
# ----------------------------------------------------------------------------
def _bn_cols(x, gamma, beta):
    """BatchNorm1d over axis=1 (batch on lanes). x:(d,L), gamma/beta:(d,1)."""
    mu = jnp.mean(x, axis=1, keepdims=True)
    xc = x - mu
    var = jnp.mean(xc * xc, axis=1, keepdims=True)
    return xc * (jax.lax.rsqrt(var + EPS) * gamma) + beta


def _bn_rows(x, gamma, beta):
    """BatchNorm1d over axis=0 (batch on sublanes). x:(B,d), gamma/beta:(1,d)."""
    mu = jnp.mean(x, axis=0, keepdims=True)
    xc = x - mu
    var = jnp.mean(xc * xc, axis=0, keepdims=True)
    return xc * (jax.lax.rsqrt(var + EPS) * gamma) + beta


def _linear_cols(Wt, z, b=None):
    """VPU linear in column layout. Wt:(out,in), z:(in,L), b:(out,1) -> (out,L)."""
    out = Wt[:, 0:1] * z[0:1, :]
    for k in range(1, Wt.shape[1]):
        out = out + Wt[:, k:k + 1] * z[k:k + 1, :]
    return out if b is None else out + b


def _linear_rows(z, W, b=None):
    """VPU linear in row layout. z:(B,in), W:(in,out), b:(1,out) -> (B,out)."""
    out = z[:, 0:1] * W[0:1, :]
    for k in range(1, W.shape[0]):
        out = out + z[:, k:k + 1] * W[k:k + 1, :]
    return out if b is None else out + b


# ----------------------------------------------------------------------------
# Kernel
# ----------------------------------------------------------------------------
def _da_gnn_kernel(x_ref, ef_ref, src_ref, dst_ref, batch_ref, slab_ref,
                   out_ref, *, n_graphs):
    f32 = jnp.float32
    bf16 = jnp.bfloat16

    x = x_ref[...]           # (3, N)  lane-dense node features
    ef = ef_ref[...]         # (1, E)
    src = src_ref[...]       # (1, E) int32
    dst = dst_ref[...]       # (1, E) int32
    bvec = batch_ref[...]    # (1, N) int32

    num_nodes = x.shape[1]
    num_edges = ef.shape[1]
    B = n_graphs

    # static slab reader (8-row-aligned zero-cost views, consumed in layout order)
    state = [0]

    def nxt():
        i = state[0]
        state[0] = i + 1
        r0 = _ROW_OFF[i]
        rows, cols = _SLAB_SHAPES[i]
        return slab_ref[r0:r0 + rows, 0:cols]

    # One-hot gather / scatter operators built in-register from (1,E) index rows.
    # A_src[n,e] = (src[e]==n), A_dst[n,e] = (dst[e]==n).  Exact in bf16.
    node_iota = jax.lax.broadcasted_iota(jnp.int32, (num_nodes, num_edges), 0)
    A_src = (node_iota == src).astype(bf16)      # (N, E)
    A_dst = (node_iota == dst).astype(bf16)      # (N, E)

    # node / edge embeddings + BatchNorm1d (all VPU, lane-dense)
    Wne, bne, gne, btne = nxt(), nxt(), nxt(), nxt()
    Wee, bee, gee, btee = nxt(), nxt(), nxt(), nxt()
    h = _bn_cols(_linear_cols(Wne, x, bne), gne, btne)      # (3, N)
    e = _bn_cols(_linear_cols(Wee, ef, bee), gee, btee)     # (4, E)

    # 5 x (NNConv -> ReLU -> BatchNorm)
    for _ in range(N_CONV_LAYERS):
        Wnn, bnn, Wroot, bconv, gconv, btconv = nxt(), nxt(), nxt(), nxt(), nxt(), nxt()
        we = _linear_cols(Wnn, e, bnn)                      # (9, E), VPU
        # gather x[src]: lane-dense MXU output (3, E)
        x_src = jnp.dot(h.astype(bf16), A_src, preferred_element_type=f32)
        # edge messages: m[o,:] = sum_i x_src[i,:] * we[i*3+o,:]  (VPU)
        m = (x_src[0:1, :] * we[0:3, :]
             + x_src[1:2, :] * we[3:6, :]
             + x_src[2:3, :] * we[6:9, :])                  # (3, E)
        # scatter-add to destination nodes: lane-dense MXU output (3, N)
        agg = jax.lax.dot_general(m.astype(bf16), A_dst,
                                  (((1,), (1,)), ((), ())),
                                  preferred_element_type=f32)
        h_new = agg + _linear_cols(Wroot, h, bconv)         # (3, N)
        h = _bn_cols(jnp.maximum(h_new, 0.0), gconv, btconv)

    # global mean / max pooling: per-feature lane-dense masked reductions
    Pm = jax.lax.broadcasted_iota(jnp.int32, (B, num_nodes), 0) == bvec   # (B, N) bool
    P = Pm.astype(f32)
    cnt = jnp.sum(P, axis=1, keepdims=True)                 # (B, 1)
    inv_cnt = 1.0 / jnp.maximum(cnt, 1.0)
    has_nodes = cnt > 0.0
    neg = jnp.float32(-3.4e38)

    cols = []
    for f in range(NODE_EMBED):                             # global_mean_pool
        cols.append(jnp.sum(P * h[f:f + 1, :], axis=1, keepdims=True) * inv_cnt)
    for f in range(NODE_EMBED):                             # global_max_pool
        mx = jnp.max(jnp.where(Pm, h[f:f + 1, :], neg), axis=1, keepdims=True)
        cols.append(jnp.where(has_nodes, mx, 0.0))          # empty-graph guard
    pooled = jnp.concatenate(cols, axis=1)                  # (B, 6)

    def mlp(z, n_hidden):
        for _ in range(n_hidden):
            W, b, g, bt = nxt(), nxt(), nxt(), nxt()
            z = _bn_rows(jnp.maximum(_linear_rows(z, W, b), 0.0), g, bt)
        W, b = nxt(), nxt()
        return _linear_rows(z, W, b)

    out1 = mlp(pooled, 3)                                   # (B, 1)  label head
    # TODO(synk): GradientReversal only flips gradients in backward; forward is identity.
    out2 = mlp(pooled, 3)                                   # (B, NUM_CLASSES) domain head

    # single dense lane-aligned store; wrapper slices out1/out2
    pad = jnp.zeros((B, OUT_COLS - 1 - NUM_CLASSES), f32)
    out_ref[...] = jnp.concatenate([out1, out2, pad], axis=1)


# ----------------------------------------------------------------------------
# Wrapper
# ----------------------------------------------------------------------------
def da_gnn_forward(node_features, edge_features, src, dst, batch_vec, n_graphs, param_slab):
    """node_features:(N,3), edge_features:(E,1), src/dst:(E,), batch_vec:(N,)."""
    N = node_features.shape[0]
    E = edge_features.shape[0]
    args = (
        jnp.asarray(node_features, jnp.float32).T,          # (3, N) lane-dense
        jnp.asarray(edge_features, jnp.float32).T,          # (1, E)
        jnp.asarray(src, jnp.int32).reshape(1, E),
        jnp.asarray(dst, jnp.int32).reshape(1, E),
        jnp.asarray(batch_vec, jnp.int32).reshape(1, N),
        param_slab,
    )
    vmem_spec = pl.BlockSpec(memory_space=pltpu.MemorySpace.VMEM)
    kernel = functools.partial(_da_gnn_kernel, n_graphs=n_graphs)
    out = pl.pallas_call(
        kernel,
        out_shape=jax.ShapeDtypeStruct((n_graphs, OUT_COLS), jnp.float32),
        in_specs=[vmem_spec] * len(args),
        out_specs=vmem_spec,
    )(*args)
    return out[:, 0:1], out[:, 1:1 + NUM_CLASSES]


# ----------------------------------------------------------------------------
# Deterministic parameter initialization (shapes match DA_GNN.__init__)
# ----------------------------------------------------------------------------
def init_params(key):
    keys = iter(jax.random.split(key, 256))

    def lin(i, o, w_scale=0.3, b_scale=0.05):
        w = jax.random.normal(next(keys), (i, o), jnp.float32) * w_scale
        b = jax.random.normal(next(keys), (1, o), jnp.float32) * b_scale
        return w, b

    def bn(d):
        return jnp.ones((1, d), jnp.float32), jnp.zeros((1, d), jnp.float32)

    params = []
    W, b = lin(NODE_FEAT, NODE_EMBED); g, bt = bn(NODE_EMBED); params += [W, b, g, bt]
    W, b = lin(EDGE_FEAT, EDGE_EMBED); g, bt = bn(EDGE_EMBED); params += [W, b, g, bt]
    for _ in range(N_CONV_LAYERS):
        Wnn, bnn = lin(EDGE_EMBED, NODE_EMBED * NODE_EMBED)
        Wroot = jax.random.normal(next(keys), (NODE_EMBED, NODE_EMBED), jnp.float32) * 0.3
        bconv = jax.random.normal(next(keys), (1, NODE_EMBED), jnp.float32) * 0.05
        g, bt = bn(NODE_EMBED)
        params += [Wnn, bnn, Wroot, bconv, g, bt]
    for (i, o) in [(6, 12), (12, 9), (9, 6)]:
        W, b = lin(i, o); g, bt = bn(o); params += [W, b, g, bt]
    W, b = lin(6, 1); params += [W, b]
    for (i, o) in [(6, 16), (16, 8), (8, 4)]:
        W, b = lin(i, o); g, bt = bn(o); params += [W, b, g, bt]
    W, b = lin(4, NUM_CLASSES); params += [W, b]
    return params


# ----------------------------------------------------------------------------
if __name__ == "__main__":
    key = jax.random.PRNGKey(0)

    # small synthetic graph batch: 3 graphs, 10 nodes, 20 edges
    nodes_per_graph = [4, 3, 3]
    edges_per_graph = [8, 6, 6]
    N = sum(nodes_per_graph)   # 10
    E = sum(edges_per_graph)   # 20
    B = len(nodes_per_graph)   # 3

    batch_vec = jnp.concatenate(
        [jnp.full((n,), g, jnp.int32) for g, n in enumerate(nodes_per_graph)])

    offsets = [0]
    for n in nodes_per_graph[:-1]:
        offsets.append(offsets[-1] + n)
    src_list, dst_list = [], []
    for g, (off, n_g, n_e) in enumerate(zip(offsets, nodes_per_graph, edges_per_graph)):
        ks, kd = jax.random.split(jax.random.fold_in(key, 100 + g))
        src_list.append(jax.random.randint(ks, (n_e,), 0, n_g) + off)
        dst_list.append(jax.random.randint(kd, (n_e,), 0, n_g) + off)
    src = jnp.concatenate(src_list).astype(jnp.int32)
    dst = jnp.concatenate(dst_list).astype(jnp.int32)

    kx, ke = jax.random.split(jax.random.fold_in(key, 7))
    node_features = jax.random.normal(kx, (N, NODE_FEAT), jnp.float32)
    edge_features = jax.random.normal(ke, (E, EDGE_FEAT), jnp.float32)

    param_slab = pack_params(init_params(jax.random.fold_in(key, 42)))  # (SLAB_ROWS, 16) f32

    out1, out2 = da_gnn_forward(node_features, edge_features, src, dst, batch_vec, B, param_slab)
    out1 = jax.block_until_ready(out1)
    out2 = jax.block_until_ready(out2)

    assert out1.shape == (B, 1) and out2.shape == (B, NUM_CLASSES)
    assert bool(jnp.all(jnp.isfinite(out1))) and bool(jnp.all(jnp.isfinite(out2)))
    print("KERNEL_OK")
</pallas_src>

<mosaic_0001>
module attributes {stable_mosaic.version = 11 : i64} {
  func.func @_da_gnn_kernel(%arg0: memref<3x10xf32, #tpu.memory_space<vmem>>, %arg1: memref<1x20xf32, #tpu.memory_space<vmem>>, %arg2: memref<1x20xi32, #tpu.memory_space<vmem>>, %arg3: memref<1x20xi32, #tpu.memory_space<vmem>>, %arg4: memref<1x10xi32, #tpu.memory_space<vmem>>, %arg5: memref<632x16xf32, #tpu.memory_space<vmem>>, %arg6: memref<3x128xf32, #tpu.memory_space<vmem>>) attributes {dimension_semantics = [], scalar_prefetch = 0 : i64, scratch_operands = 0 : i64, tpu.core_type = #tpu.core_type<tc>} {
    %c0 = arith.constant 0 : index
    %c0_0 = arith.constant 0 : index
    %0 = vector.load %arg0[%c0, %c0_0] : memref<3x10xf32, #tpu.memory_space<vmem>>, vector<3x10xf32>
    %c0_1 = arith.constant 0 : index
    %c0_2 = arith.constant 0 : index
    %1 = vector.load %arg1[%c0_1, %c0_2] : memref<1x20xf32, #tpu.memory_space<vmem>>, vector<1x20xf32>
    %c0_3 = arith.constant 0 : index
    %c0_4 = arith.constant 0 : index
    %2 = vector.load %arg2[%c0_3, %c0_4] : memref<1x20xi32, #tpu.memory_space<vmem>>, vector<1x20xi32>
    %c0_5 = arith.constant 0 : index
    %c0_6 = arith.constant 0 : index
    %3 = vector.load %arg3[%c0_5, %c0_6] : memref<1x20xi32, #tpu.memory_space<vmem>>, vector<1x20xi32>
    %c0_7 = arith.constant 0 : index
    %c0_8 = arith.constant 0 : index
    %4 = vector.load %arg4[%c0_7, %c0_8] : memref<1x10xi32, #tpu.memory_space<vmem>>, vector<1x10xi32>
    %5 = tpu.iota {dimensions = array<i32: 0>} : vector<10x20xi32>
    %6 = vector.broadcast %2 : vector<1x20xi32> to vector<10x20xi32>
    %7 = arith.cmpi eq, %5, %6 : vector<10x20xi32>
    %8 = arith.extui %7 : vector<10x20xi1> to vector<10x20xi32>
    %9 = arith.sitofp %8 : vector<10x20xi32> to vector<10x20xf32>
    %10 = arith.truncf %9 : vector<10x20xf32> to vector<10x20xbf16>
    %11 = vector.broadcast %3 : vector<1x20xi32> to vector<10x20xi32>
    %12 = arith.cmpi eq, %5, %11 : vector<10x20xi32>
    %13 = arith.extui %12 : vector<10x20xi1> to vector<10x20xi32>
    %14 = arith.sitofp %13 : vector<10x20xi32> to vector<10x20xf32>
    %15 = arith.truncf %14 : vector<10x20xf32> to vector<10x20xbf16>
    %c0_9 = arith.constant 0 : index
    %c0_10 = arith.constant 0 : index
    %16 = vector.load %arg5[%c0_9, %c0_10] : memref<632x16xf32, #tpu.memory_space<vmem>>, vector<3x3xf32>
    %c8 = arith.constant 8 : index
    %c0_11 = arith.constant 0 : index
    %17 = vector.load %arg5[%c8, %c0_11] : memref<632x16xf32, #tpu.memory_space<vmem>>, vector<3x1xf32>
    %c16 = arith.constant 16 : index
    %c0_12 = arith.constant 0 : index
    %18 = vector.load %arg5[%c16, %c0_12] : memref<632x16xf32, #tpu.memory_space<vmem>>, vector<3x1xf32>
    %c24 = arith.constant 24 : index
    %c0_13 = arith.constant 0 : index
    %19 = vector.load %arg5[%c24, %c0_13] : memref<632x16xf32, #tpu.memory_space<vmem>>, vector<3x1xf32>
    %c32 = arith.constant 32 : index
    %c0_14 = arith.constant 0 : index
    %20 = vector.load %arg5[%c32, %c0_14] : memref<632x16xf32, #tpu.memory_space<vmem>>, vector<4x1xf32>
    %c40 = arith.constant 40 : index
    %c0_15 = arith.constant 0 : index
    %21 = vector.load %arg5[%c40, %c0_15] : memref<632x16xf32, #tpu.memory_space<vmem>>, vector<4x1xf32>
    %c48 = arith.constant 48 : index
    %c0_16 = arith.constant 0 : index
    %22 = vector.load %arg5[%c48, %c0_16] : memref<632x16xf32, #tpu.memory_space<vmem>>, vector<4x1xf32>
    %c56 = arith.constant 56 : index
    %c0_17 = arith.constant 0 : index
    %23 = vector.load %arg5[%c56, %c0_17] : memref<632x16xf32, #tpu.memory_space<vmem>>, vector<4x1xf32>
    %24 = vector.extract_strided_slice %16 {offsets = [0, 0], sizes = [3, 1], strides = [1, 1]} : vector<3x3xf32> to vector<3x1xf32>
    %25 = vector.extract_strided_slice %0 {offsets = [0, 0], sizes = [1, 10], strides = [1, 1]} : vector<3x10xf32> to vector<1x10xf32>
    %26 = vector.broadcast %24 : vector<3x1xf32> to vector<3x10xf32>
    %27 = vector.broadcast %25 : vector<1x10xf32> to vector<3x10xf32>
    %28 = arith.mulf %26, %27 : vector<3x10xf32>
    %29 = vector.extract_strided_slice %16 {offsets = [0, 1], sizes = [3, 1], strides = [1, 1]} : vector<3x3xf32> to vector<3x1xf32>
    %30 = vector.extract_strided_slice %0 {offsets = [1, 0], sizes = [1, 10], strides = [1, 1]} : vector<3x10xf32> to vector<1x10xf32>
    %31 = vector.broadcast %29 : vector<3x1xf32> to vector<3x10xf32>
    %32 = vector.broadcast %30 : vector<1x10xf32> to vector<3x10xf32>
    %33 = arith.mulf %31, %32 : vector<3x10xf32>
    %34 = arith.addf %28, %33 : vector<3x10xf32>
    %35 = vector.extract_strided_slice %16 {offsets = [0, 2], sizes = [3, 1], strides = [1, 1]} : vector<3x3xf32> to vector<3x1xf32>
    %36 = vector.extract_strided_slice %0 {offsets = [2, 0], sizes = [1, 10], strides = [1, 1]} : vector<3x10xf32> to vector<1x10xf32>
    %37 = vector.broadcast %35 : vector<3x1xf32> to vector<3x10xf32>
    %38 = vector.broadcast %36 : vector<1x10xf32> to vector<3x10xf32>
    %39 = arith.mulf %37, %38 : vector<3x10xf32>
    %40 = arith.addf %34, %39 : vector<3x10xf32>
    %41 = vector.broadcast %17 : vector<3x1xf32> to vector<3x10xf32>
    %42 = arith.addf %40, %41 : vector<3x10xf32>
    %cst = arith.constant dense<0.000000e+00> : vector<3xf32>
    %43 = vector.multi_reduction <add>, %42, %cst [1] : vector<3x10xf32> to vector<3xf32>
    %44 = vector.shape_cast %43 : vector<3xf32> to vector<3x1xf32>
    %cst_18 = arith.constant 1.000000e+01 : f32
    %45 = vector.broadcast %cst_18 : f32 to vector<3x1xf32>
    %46 = arith.divf %44, %45 : vector<3x1xf32>
    %47 = vector.broadcast %46 : vector<3x1xf32> to vector<3x10xf32>
    %48 = arith.subf %42, %47 : vector<3x10xf32>
    %49 = arith.mulf %48, %48 : vector<3x10xf32>
    %cst_19 = arith.constant dense<0.000000e+00> : vector<3xf32>
    %50 = vector.multi_reduction <add>, %49, %cst_19 [1] : vector<3x10xf32> to vector<3xf32>
    %51 = vector.shape_cast %50 : vector<3xf32> to vector<3x1xf32>
    %cst_20 = arith.constant 1.000000e+01 : f32
    %52 = vector.broadcast %cst_20 : f32 to vector<3x1xf32>
    %53 = arith.divf %51, %52 : vector<3x1xf32>
    %cst_21 = arith.constant 9.99999974E-6 : f32
    %54 = vector.broadcast %cst_21 : f32 to vector<3x1xf32>
    %55 = arith.addf %53, %54 : vector<3x1xf32>
    %56 = math.rsqrt %55 : vector<3x1xf32>
    %57 = arith.mulf %56, %18 : vector<3x1xf32>
    %58 = vector.broadcast %57 : vector<3x1xf32> to vector<3x10xf32>
    %59 = arith.mulf %48, %58 : vector<3x10xf32>
    %60 = vector.broadcast %19 : vector<3x1xf32> to vector<3x10xf32>
    %61 = arith.addf %59, %60 : vector<3x10xf32>
    %62 = vector.broadcast %20 : vector<4x1xf32> to vector<4x20xf32>
    %63 = vector.broadcast %1 : vector<1x20xf32> to vector<4x20xf32>
    %64 = arith.mulf %62, %63 : vector<4x20xf32>
    %65 = vector.broadcast %21 : vector<4x1xf32> to vector<4x20xf32>
    %66 = arith.addf %64, %65 : vector<4x20xf32>
    %cst_22 = arith.constant dense<0.000000e+00> : vector<4xf32>
    %67 = vector.multi_reduction <add>, %66, %cst_22 [1] : vector<4x20xf32> to vector<4xf32>
    %68 = vector.shape_cast %67 : vector<4xf32> to vector<4x1xf32>
    %cst_23 = arith.constant 2.000000e+01 : f32
    %69 = vector.broadcast %cst_23 : f32 to vector<4x1xf32>
    %70 = arith.divf %68, %69 : vector<4x1xf32>
    %71 = vector.broadcast %70 : vector<4x1xf32> to vector<4x20xf32>
    %72 = arith.subf %66, %71 : vector<4x20xf32>
    %73 = arith.mulf %72, %72 : vector<4x20xf32>
    %cst_24 = arith.constant dense<0.000000e+00> : vector<4xf32>
    %74 = vector.multi_reduction <add>, %73, %cst_24 [1] : vector<4x20xf32> to vector<4xf32>
    %75 = vector.shape_cast %74 : vector<4xf32> to vector<4x1xf32>
    %cst_25 = arith.constant 2.000000e+01 : f32
    %76 = vector.broadcast %cst_25 : f32 to vector<4x1xf32>
    %77 = arith.divf %75, %76 : vector<4x1xf32>
    %cst_26 = arith.constant 9.99999974E-6 : f32
    %78 = vector.broadcast %cst_26 : f32 to vector<4x1xf32>
    %79 = arith.addf %77, %78 : vector<4x1xf32>
    %80 = math.rsqrt %79 : vector<4x1xf32>
    %81 = arith.mulf %80, %22 : vector<4x1xf32>
    %82 = vector.broadcast %81 : vector<4x1xf32> to vector<4x20xf32>
    %83 = arith.mulf %72, %82 : vector<4x20xf32>
    %84 = vector.broadcast %23 : vector<4x1xf32> to vector<4x20xf32>
    %85 = arith.addf %83, %84 : vector<4x20xf32>
    %c64 = arith.constant 64 : index
    %c0_27 = arith.constant 0 : index
    %86 = vector.load %arg5[%c64, %c0_27] : memref<632x16xf32, #tpu.memory_space<vmem>>, vector<9x4xf32>
    %c80 = arith.constant 80 : index
    %c0_28 = arith.constant 0 : index
    %87 = vector.load %arg5[%c80, %c0_28] : memref<632x16xf32, #tpu.memory_space<vmem>>, vector<9x1xf32>
    %c96 = arith.constant 96 : index
    %c0_29 = arith.constant 0 : index
    %88 = vector.load %arg5[%c96, %c0_29] : memref<632x16xf32, #tpu.memory_space<vmem>>, vector<3x3xf32>
    %c104 = arith.constant 104 : index
    %c0_30 = arith.constant 0 : index
    %89 = vector.load %arg5[%c104, %c0_30] : memref<632x16xf32, #tpu.memory_space<vmem>>, vector<3x1xf32>
    %c112 = arith.constant 112 : index
    %c0_31 = arith.constant 0 : index
    %90 = vector.load %arg5[%c112, %c0_31] : memref<632x16xf32, #tpu.memory_space<vmem>>, vector<3x1xf32>
    %c120 = arith.constant 120 : index
    %c0_32 = arith.constant 0 : index
    %91 = vector.load %arg5[%c120, %c0_32] : memref<632x16xf32, #tpu.memory_space<vmem>>, vector<3x1xf32>
    %92 = vector.extract_strided_slice %86 {offsets = [0, 0], sizes = [9, 1], strides = [1, 1]} : vector<9x4xf32> to vector<9x1xf32>
    %93 = vector.extract_strided_slice %85 {offsets = [0, 0], sizes = [1, 20], strides = [1, 1]} : vector<4x20xf32> to vector<1x20xf32>
    %94 = vector.broadcast %92 : vector<9x1xf32> to vector<9x20xf32>
    %95 = vector.broadcast %93 : vector<1x20xf32> to vector<9x20xf32>
    %96 = arith.mulf %94, %95 : vector<9x20xf32>
    %97 = vector.extract_strided_slice %86 {offsets = [0, 1], sizes = [9, 1], strides = [1, 1]} : vector<9x4xf32> to vector<9x1xf32>
    %98 = vector.extract_strided_slice %85 {offsets = [1, 0], sizes = [1, 20], strides = [1, 1]} : vector<4x20xf32> to vector<1x20xf32>
    %99 = vector.broadcast %97 : vector<9x1xf32> to vector<9x20xf32>
    %100 = vector.broadcast %98 : vector<1x20xf32> to vector<9x20xf32>
    %101 = arith.mulf %99, %100 : vector<9x20xf32>
    %102 = arith.addf %96, %101 : vector<9x20xf32>
    %103 = vector.extract_strided_slice %86 {offsets = [0, 2], sizes = [9, 1], strides = [1, 1]} : vector<9x4xf32> to vector<9x1xf32>
    %104 = vector.extract_strided_slice %85 {offsets = [2, 0], sizes = [1, 20], strides = [1, 1]} : vector<4x20xf32> to vector<1x20xf32>
    %105 = vector.broadcast %103 : vector<9x1xf32> to vector<9x20xf32>
    %106 = vector.broadcast %104 : vector<1x20xf32> to vector<9x20xf32>
    %107 = arith.mulf %105, %106 : vector<9x20xf32>
    %108 = arith.addf %102, %107 : vector<9x20xf32>
    %109 = vector.extract_strided_slice %86 {offsets = [0, 3], sizes = [9, 1], strides = [1, 1]} : vector<9x4xf32> to vector<9x1xf32>
    %110 = vector.extract_strided_slice %85 {offsets = [3, 0], sizes = [1, 20], strides = [1, 1]} : vector<4x20xf32> to vector<1x20xf32>
    %111 = vector.broadcast %109 : vector<9x1xf32> to vector<9x20xf32>
    %112 = vector.broadcast %110 : vector<1x20xf32> to vector<9x20xf32>
    %113 = arith.mulf %111, %112 : vector<9x20xf32>
    %114 = arith.addf %108, %113 : vector<9x20xf32>
    %115 = vector.broadcast %87 : vector<9x1xf32> to vector<9x20xf32>
    %116 = arith.addf %114, %115 : vector<9x20xf32>
    %117 = arith.truncf %61 : vector<3x10xf32> to vector<3x10xbf16>
    %cst_33 = arith.constant dense<0.000000e+00> : vector<3x20xf32>
    %118 = tpu.matmul %117, %10, %cst_33 {dimension_numbers = #tpu.dot_dimension_numbers<[1], [0], [0], [1], [0, 0, 1, 1], [], []>} : vector<3x10xbf16>, vector<10x20xbf16>, vector<3x20xf32> -> vector<3x20xf32>
    %119 = vector.extract_strided_slice %118 {offsets = [0, 0], sizes = [1, 20], strides = [1, 1]} : vector<3x20xf32> to vector<1x20xf32>
    %120 = vector.extract_strided_slice %116 {offsets = [0, 0], sizes = [3, 20], strides = [1, 1]} : vector<9x20xf32> to vector<3x20xf32>
    %121 = vector.broadcast %119 : vector<1x20xf32> to vector<3x20xf32>
    %122 = arith.mulf %121, %120 : vector<3x20xf32>
    %123 = vector.extract_strided_slice %118 {offsets = [1, 0], sizes = [1, 20], strides = [1, 1]} : vector<3x20xf32> to vector<1x20xf32>
    %124 = vector.extract_strided_slice %116 {offsets = [3, 0], sizes = [3, 20], strides = [1, 1]} : vector<9x20xf32> to vector<3x20xf32>
    %125 = vector.broadcast %123 : vector<1x20xf32> to vector<3x20xf32>
    %126 = arith.mulf %125, %124 : vector<3x20xf32>
    %127 = arith.addf %122, %126 : vector<3x20xf32>
    %128 = vector.extract_strided_slice %118 {offsets = [2, 0], sizes = [1, 20], strides = [1, 1]} : vector<3x20xf32> to vector<1x20xf32>
    %129 = vector.extract_strided_slice %116 {offsets = [6, 0], sizes = [3, 20], strides = [1, 1]} : vector<9x20xf32> to vector<3x20xf32>
    %130 = vector.broadcast %128 : vector<1x20xf32> to vector<3x20xf32>
    %131 = arith.mulf %130, %129 : vector<3x20xf32>
    %132 = arith.addf %127, %131 : vector<3x20xf32>
    %133 = arith.truncf %132 : vector<3x20xf32> to vector<3x20xbf16>
    %cst_34 = arith.constant dense<0.000000e+00> : vector<3x10xf32>
    %134 = tpu.matmul %133, %15, %cst_34 {dimension_numbers = #tpu.dot_dimension_numbers<[1], [1], [0], [0], [0, 0, 1, 0], [], []>} : vector<3x20xbf16>, vector<10x20xbf16>, vector<3x10xf32> -> vector<3x10xf32>
    %135 = vector.extract_strided_slice %88 {offsets = [0, 0], sizes = [3, 1], strides = [1, 1]} : vector<3x3xf32> to vector<3x1xf32>
    %136 = vector.extract_strided_slice %61 {offsets = [0, 0], sizes = [1, 10], strides = [1, 1]} : vector<3x10xf32> to vector<1x10xf32>
    %137 = vector.broadcast %135 : vector<3x1xf32> to vector<3x10xf32>
    %138 = vector.broadcast %136 : vector<1x10xf32> to vector<3x10xf32>
    %139 = arith.mulf %137, %138 : vector<3x10xf32>
    %140 = vector.extract_strided_slice %88 {offsets = [0, 1], sizes = [3, 1], strides = [1, 1]} : vector<3x3xf32> to vector<3x1xf32>
    %141 = vector.extract_strided_slice %61 {offsets = [1, 0], sizes = [1, 10], strides = [1, 1]} : vector<3x10xf32> to vector<1x10xf32>
    %142 = vector.broadcast %140 : vector<3x1xf32> to vector<3x10xf32>
    %143 = vector.broadcast %141 : vector<1x10xf32> to vector<3x10xf32>
    %144 = arith.mulf %142, %143 : vector<3x10xf32>
    %145 = arith.addf %139, %144 : vector<3x10xf32>
    %146 = vector.extract_strided_slice %88 {offsets = [0, 2], sizes = [3, 1], strides = [1, 1]} : vector<3x3xf32> to vector<3x1xf32>
    %147 = vector.extract_strided_slice %61 {offsets = [2, 0], sizes = [1, 10], strides = [1, 1]} : vector<3x10xf32> to vector<1x10xf32>
    %148 = vector.broadcast %146 : vector<3x1xf32> to vector<3x10xf32>
    %149 = vector.broadcast %147 : vector<1x10xf32> to vector<3x10xf32>
    %150 = arith.mulf %148, %149 : vector<3x10xf32>
    %151 = arith.addf %145, %150 : vector<3x10xf32>
    %152 = vector.broadcast %89 : vector<3x1xf32> to vector<3x10xf32>
    %153 = arith.addf %151, %152 : vector<3x10xf32>
    %154 = arith.addf %134, %153 : vector<3x10xf32>
    %cst_35 = arith.constant 0.000000e+00 : f32
    %155 = vector.broadcast %cst_35 : f32 to vector<3x10xf32>
    %156 = arith.maximumf %154, %155 : vector<3x10xf32>
    %cst_36 = arith.constant dense<0.000000e+00> : vector<3xf32>
    %157 = vector.multi_reduction <add>, %156, %cst_36 [1] : vector<3x10xf32> to vector<3xf32>
    %158 = vector.shape_cast %157 : vector<3xf32> to vector<3x1xf32>
    %cst_37 = arith.constant 1.000000e+01 : f32
    %159 = vector.broadcast %cst_37 : f32 to vector<3x1xf32>
    %160 = arith.divf %158, %159 : vector<3x1xf32>
    %161 = vector.broadcast %160 : vector<3x1xf32> to vector<3x10xf32>
    %162 = arith.subf %156, %161 : vector<3x10xf32>
    %163 = arith.mulf %162, %162 : vector<3x10xf32>
    %cst_38 = arith.constant dense<0.000000e+00> : vector<3xf32>
    %164 = vector.multi_reduction <add>, %163, %cst_38 [1] : vector<3x10xf32> to vector<3xf32>
    %165 = vector.shape_cast %164 : vector<3xf32> to vector<3x1xf32>
    %cst_39 = arith.constant 1.000000e+01 : f32
    %166 = vector.broadcast %cst_39 : f32 to vector<3x1xf32>
    %167 = arith.divf %165, %166 : vector<3x1xf32>
    %cst_40 = arith.constant 9.99999974E-6 : f32
    %168 = vector.broadcast %cst_40 : f32 to vector<3x1xf32>
    %169 = arith.addf %167, %168 : vector<3x1xf32>
    %170 = math.rsqrt %169 : vector<3x1xf32>
    %171 = arith.mulf %170, %90 : vector<3x1xf32>
    %172 = vector.broadcast %171 : vector<3x1xf32> to vector<3x10xf32>
    %173 = arith.mulf %162, %172 : vector<3x10xf32>
    %174 = vector.broadcast %91 : vector<3x1xf32> to vector<3x10xf32>
    %175 = arith.addf %173, %174 : vector<3x10xf32>
    %c128 = arith.constant 128 : index
    %c0_41 = arith.constant 0 : index
    %176 = vector.load %arg5[%c128, %c0_41] : memref<632x16xf32, #tpu.memory_space<vmem>>, vector<9x4xf32>
    %c144 = arith.constant 144 : index
    %c0_42 = arith.constant 0 : index
    %177 = vector.load %arg5[%c144, %c0_42] : memref<632x16xf32, #tpu.memory_space<vmem>>, vector<9x1xf32>
    %c160 = arith.constant 160 : index
    %c0_43 = arith.constant 0 : index
    %178 = vector.load %arg5[%c160, %c0_43] : memref<632x16xf32, #tpu.memory_space<vmem>>, vector<3x3xf32>
    %c168 = arith.constant 168 : index
    %c0_44 = arith.constant 0 : index
    %179 = vector.load %arg5[%c168, %c0_44] : memref<632x16xf32, #tpu.memory_space<vmem>>, vector<3x1xf32>
    %c176 = arith.constant 176 : index
    %c0_45 = arith.constant 0 : index
    %180 = vector.load %arg5[%c176, %c0_45] : memref<632x16xf32, #tpu.memory_space<vmem>>, vector<3x1xf32>
    %c184 = arith.constant 184 : index
    %c0_46 = arith.constant 0 : index
    %181 = vector.load %arg5[%c184, %c0_46] : memref<632x16xf32, #tpu.memory_space<vmem>>, vector<3x1xf32>
    %182 = vector.extract_strided_slice %176 {offsets = [0, 0], sizes = [9, 1], strides = [1, 1]} : vector<9x4xf32> to vector<9x1xf32>
    %183 = vector.extract_strided_slice %85 {offsets = [0, 0], sizes = [1, 20], strides = [1, 1]} : vector<4x20xf32> to vector<1x20xf32>
    %184 = vector.broadcast %182 : vector<9x1xf32> to vector<9x20xf32>
    %185 = vector.broadcast %183 : vector<1x20xf32> to vector<9x20xf32>
    %186 = arith.mulf %184, %185 : vector<9x20xf32>
    %187 = vector.extract_strided_slice %176 {offsets = [0, 1], sizes = [9, 1], strides = [1, 1]} : vector<9x4xf32> to vector<9x1xf32>
    %188 = vector.extract_strided_slice %85 {offsets = [1, 0], sizes = [1, 20], strides = [1, 1]} : vector<4x20xf32> to vector<1x20xf32>
    %189 = vector.broadcast %187 : vector<9x1xf32> to vector<9x20xf32>
    %190 = vector.broadcast %188 : vector<1x20xf32> to vector<9x20xf32>
    %191 = arith.mulf %189, %190 : vector<9x20xf32>
    %192 = arith.addf %186, %191 : vector<9x20xf32>
    %193 = vector.extract_strided_slice %176 {offsets = [0, 2], sizes = [9, 1], strides = [1, 1]} : vector<9x4xf32> to vector<9x1xf32>
    %194 = vector.extract_strided_slice %85 {offsets = [2, 0], sizes = [1, 20], strides = [1, 1]} : vector<4x20xf32> to vector<1x20xf32>
    %195 = vector.broadcast %193 : vector<9x1xf32> to vector<9x20xf32>
    %196 = vector.broadcast %194 : vector<1x20xf32> to vector<9x20xf32>
    %197 = arith.mulf %195, %196 : vector<9x20xf32>
    %198 = arith.addf %192, %197 : vector<9x20xf32>
    %199 = vector.extract_strided_slice %176 {offsets = [0, 3], sizes = [9, 1], strides = [1, 1]} : vector<9x4xf32> to vector<9x1xf32>
    %200 = vector.extract_strided_slice %85 {offsets = [3, 0], sizes = [1, 20], strides = [1, 1]} : vector<4x20xf32> to vector<1x20xf32>
    %201 = vector.broadcast %199 : vector<9x1xf32> to vector<9x20xf32>
    %202 = vector.broadcast %200 : vector<1x20xf32> to vector<9x20xf32>
    %203 = arith.mulf %201, %202 : vector<9x20xf32>
    %204 = arith.addf %198, %203 : vector<9x20xf32>
    %205 = vector.broadcast %177 : vector<9x1xf32> to vector<9x20xf32>
    %206 = arith.addf %204, %205 : vector<9x20xf32>
    %207 = arith.truncf %175 : vector<3x10xf32> to vector<3x10xbf16>
    %cst_47 = arith.constant dense<0.000000e+00> : vector<3x20xf32>
    %208 = tpu.matmul %207, %10, %cst_47 {dimension_numbers = #tpu.dot_dimension_numbers<[1], [0], [0], [1], [0, 0, 1, 1], [], []>} : vector<3x10xbf16>, vector<10x20xbf16>, vector<3x20xf32> -> vector<3x20xf32>
    %209 = vector.extract_strided_slice %208 {offsets = [0, 0], sizes = [1, 20], strides = [1, 1]} : vector<3x20xf32> to vector<1x20xf32>
    %210 = vector.extract_strided_slice %206 {offsets = [0, 0], sizes = [3, 20], strides = [1, 1]} : vector<9x20xf32> to vector<3x20xf32>
    %211 = vector.broadcast %209 : vector<1x20xf32> to vector<3x20xf32>
    %212 = arith.mulf %211, %210 : vector<3x20xf32>
    %213 = vector.extract_strided_slice %208 {offsets = [1, 0], sizes = [1, 20], strides = [1, 1]} : vector<3x20xf32> to vector<1x20xf32>
    %214 = vector.extract_strided_slice %206 {offsets = [3, 0], sizes = [3, 20], strides = [1, 1]} : vector<9x20xf32> to vector<3x20xf32>
    %215 = vector.broadcast %213 : vector<1x20xf32> to vector<3x20xf32>
    %216 = arith.mulf %215, %214 : vector<3x20xf32>
    %217 = arith.addf %212, %216 : vector<3x20xf32>
    %218 = vector.extract_strided_slice %208 {offsets = [2, 0], sizes = [1, 20], strides = [1, 1]} : vector<3x20xf32> to vector<1x20xf32>
    %219 = vector.extract_strided_slice %206 {offsets = [6, 0], sizes = [3, 20], strides = [1, 1]} : vector<9x20xf32> to vector<3x20xf32>
    %220 = vector.broadcast %218 : vector<1x20xf32> to vector<3x20xf32>
    %221 = arith.mulf %220, %219 : vector<3x20xf32>
    %222 = arith.addf %217, %221 : vector<3x20xf32>
    %223 = arith.truncf %222 : vector<3x20xf32> to vector<3x20xbf16>
    %cst_48 = arith.constant dense<0.000000e+00> : vector<3x10xf32>
    %224 = tpu.matmul %223, %15, %cst_48 {dimension_numbers = #tpu.dot_dimension_numbers<[1], [1], [0], [0], [0, 0, 1, 0], [], []>} : vector<3x20xbf16>, vector<10x20xbf16>, vector<3x10xf32> -> vector<3x10xf32>
    %225 = vector.extract_strided_slice %178 {offsets = [0, 0], sizes = [3, 1], strides = [1, 1]} : vector<3x3xf32> to vector<3x1xf32>
    %226 = vector.extract_strided_slice %175 {offsets = [0, 0], sizes = [1, 10], strides = [1, 1]} : vector<3x10xf32> to vector<1x10xf32>
    %227 = vector.broadcast %225 : vector<3x1xf32> to vector<3x10xf32>
    %228 = vector.broadcast %226 : vector<1x10xf32> to vector<3x10xf32>
    %229 = arith.mulf %227, %228 : vector<3x10xf32>
    %230 = vector.extract_strided_slice %178 {offsets = [0, 1], sizes = [3, 1], strides = [1, 1]} : vector<3x3xf32> to vector<3x1xf32>
    %231 = vector.extract_strided_slice %175 {offsets = [1, 0], sizes = [1, 10], strides = [1, 1]} : vector<3x10xf32> to vector<1x10xf32>
    %232 = vector.broadcast %230 : vector<3x1xf32> to vector<3x10xf32>
    %233 = vector.broadcast %231 : vector<1x10xf32> to vector<3x10xf32>
    %234 = arith.mulf %232, %233 : vector<3x10xf32>
    %235 = arith.addf %229, %234 : vector<3x10xf32>
    %236 = vector.extract_strided_slice %178 {offsets = [0, 2], sizes = [3, 1], strides = [1, 1]} : vector<3x3xf32> to vector<3x1xf32>
    %237 = vector.extract_strided_slice %175 {offsets = [2, 0], sizes = [1, 10], strides = [1, 1]} : vector<3x10xf32> to vector<1x10xf32>
    %238 = vector.broadcast %236 : vector<3x1xf32> to vector<3x10xf32>
    %239 = vector.broadcast %237 : vector<1x10xf32> to vector<3x10xf32>
    %240 = arith.mulf %238, %239 : vector<3x10xf32>
    %241 = arith.addf %235, %240 : vector<3x10xf32>
    %242 = vector.broadcast %179 : vector<3x1xf32> to vector<3x10xf32>
    %243 = arith.addf %241, %242 : vector<3x10xf32>
    %244 = arith.addf %224, %243 : vector<3x10xf32>
    %cst_49 = arith.constant 0.000000e+00 : f32
    %245 = vector.broadcast %cst_49 : f32 to vector<3x10xf32>
    %246 = arith.maximumf %244, %245 : vector<3x10xf32>
    %cst_50 = arith.constant dense<0.000000e+00> : vector<3xf32>
    %247 = vector.multi_reduction <add>, %246, %cst_50 [1] : vector<3x10xf32> to vector<3xf32>
    %248 = vector.shape_cast %247 : vector<3xf32> to vector<3x1xf32>
    %cst_51 = arith.constant 1.000000e+01 : f32
    %249 = vector.broadcast %cst_51 : f32 to vector<3x1xf32>
    %250 = arith.divf %248, %249 : vector<3x1xf32>
    %251 = vector.broadcast %250 : vector<3x1xf32> to vector<3x10xf32>
    %252 = arith.subf %246, %251 : vector<3x10xf32>
    %253 = arith.mulf %252, %252 : vector<3x10xf32>
    %cst_52 = arith.constant dense<0.000000e+00> : vector<3xf32>
    %254 = vector.multi_reduction <add>, %253, %cst_52 [1] : vector<3x10xf32> to vector<3xf32>
    %255 = vector.shape_cast %254 : vector<3xf32> to vector<3x1xf32>
    %cst_53 = arith.constant 1.000000e+01 : f32
    %256 = vector.broadcast %cst_53 : f32 to vector<3x1xf32>
    %257 = arith.divf %255, %256 : vector<3x1xf32>
    %cst_54 = arith.constant 9.99999974E-6 : f32
    %258 = vector.broadcast %cst_54 : f32 to vector<3x1xf32>
    %259 = arith.addf %257, %258 : vector<3x1xf32>
    %260 = math.rsqrt %259 : vector<3x1xf32>
    %261 = arith.mulf %260, %180 : vector<3x1xf32>
    %262 = vector.broadcast %261 : vector<3x1xf32> to vector<3x10xf32>
    %263 = arith.mulf %252, %262 : vector<3x10xf32>
    %264 = vector.broadcast %181 : vector<3x1xf32> to vector<3x10xf32>
    %265 = arith.addf %263, %264 : vector<3x10xf32>
    %c192 = arith.constant 192 : index
    %c0_55 = arith.constant 0 : index
    %266 = vector.load %arg5[%c192, %c0_55] : memref<632x16xf32, #tpu.memory_space<vmem>>, vector<9x4xf32>
    %c208 = arith.constant 208 : index
    %c0_56 = arith.constant 0 : index
    %267 = vector.load %arg5[%c208, %c0_56] : memref<632x16xf32, #tpu.memory_space<vmem>>, vector<9x1xf32>
    %c224 = arith.constant 224 : index
    %c0_57 = arith.constant 0 : index
    %268 = vector.load %arg5[%c224, %c0_57] : memref<632x16xf32, #tpu.memory_space<vmem>>, vector<3x3xf32>
    %c232 = arith.constant 232 : index
    %c0_58 = arith.constant 0 : index
    %269 = vector.load %arg5[%c232, %c0_58] : memref<632x16xf32, #tpu.memory_space<vmem>>, vector<3x1xf32>
    %c240 = arith.constant 240 : index
    %c0_59 = arith.constant 0 : index
    %270 = vector.load %arg5[%c240, %c0_59] : memref<632x16xf32, #tpu.memory_space<vmem>>, vector<3x1xf32>
    %c248 = arith.constant 248 : index
    %c0_60 = arith.constant 0 : index
    %271 = vector.load %arg5[%c248, %c0_60] : memref<632x16xf32, #tpu.memory_space<vmem>>, vector<3x1xf32>
    %272 = vector.extract_strided_slice %266 {offsets = [0, 0], sizes = [9, 1], strides = [1, 1]} : vector<9x4xf32> to vector<9x1xf32>
    %273 = vector.extract_strided_slice %85 {offsets = [0, 0], sizes = [1, 20], strides = [1, 1]} : vector<4x20xf32> to vector<1x20xf32>
    %274 = vector.broadcast %272 : vector<9x1xf32> to vector<9x20xf32>
    %275 = vector.broadcast %273 : vector<1x20xf32> to vector<9x20xf32>
    %276 = arith.mulf %274, %275 : vector<9x20xf32>
    %277 = vector.extract_strided_slice %266 {offsets = [0, 1], sizes = [9, 1], strides = [1, 1]} : vector<9x4xf32> to vector<9x1xf32>
    %278 = vector.extract_strided_slice %85 {offsets = [1, 0], sizes = [1, 20], strides = [1, 1]} : vector<4x20xf32> to vector<1x20xf32>
    %279 = vector.broadcast %277 : vector<9x1xf32> to vector<9x20xf32>
    %280 = vector.broadcast %278 : vector<1x20xf32> to vector<9x20xf32>
    %281 = arith.mulf %279, %280 : vector<9x20xf32>
    %282 = arith.addf %276, %281 : vector<9x20xf32>
    %283 = vector.extract_strided_slice %266 {offsets = [0, 2], sizes = [9, 1], strides = [1, 1]} : vector<9x4xf32> to vector<9x1xf32>
    %284 = vector.extract_strided_slice %85 {offsets = [2, 0], sizes = [1, 20], strides = [1, 1]} : vector<4x20xf32> to vector<1x20xf32>
    %285 = vector.broadcast %283 : vector<9x1xf32> to vector<9x20xf32>
    %286 = vector.broadcast %284 : vector<1x20xf32> to vector<9x20xf32>
    %287 = arith.mulf %285, %286 : vector<9x20xf32>
    %288 = arith.addf %282, %287 : vector<9x20xf32>
    %289 = vector.extract_strided_slice %266 {offsets = [0, 3], sizes = [9, 1], strides = [1, 1]} : vector<9x4xf32> to vector<9x1xf32>
    %290 = vector.extract_strided_slice %85 {offsets = [3, 0], sizes = [1, 20], strides = [1, 1]} : vector<4x20xf32> to vector<1x20xf32>
    %291 = vector.broadcast %289 : vector<9x1xf32> to vector<9x20xf32>
    %292 = vector.broadcast %290 : vector<1x20xf32> to vector<9x20xf32>
    %293 = arith.mulf %291, %292 : vector<9x20xf32>
    %294 = arith.addf %288, %293 : vector<9x20xf32>
    %295 = vector.broadcast %267 : vector<9x1xf32> to vector<9x20xf32>
    %296 = arith.addf %294, %295 : vector<9x20xf32>
    %297 = arith.truncf %265 : vector<3x10xf32> to vector<3x10xbf16>
    %cst_61 = arith.constant dense<0.000000e+00> : vector<3x20xf32>
    %298 = tpu.matmul %297, %10, %cst_61 {dimension_numbers = #tpu.dot_dimension_numbers<[1], [0], [0], [1], [0, 0, 1, 1], [], []>} : vector<3x10xbf16>, vector<10x20xbf16>, vector<3x20xf32> -> vector<3x20xf32>
    %299 = vector.extract_strided_slice %298 {offsets = [0, 0], sizes = [1, 20], strides = [1, 1]} : vector<3x20xf32> to vector<1x20xf32>
    %300 = vector.extract_strided_slice %296 {offsets = [0, 0], sizes = [3, 20], strides = [1, 1]} : vector<9x20xf32> to vector<3x20xf32>
    %301 = vector.broadcast %299 : vector<1x20xf32> to vector<3x20xf32>
    %302 = arith.mulf %301, %300 : vector<3x20xf32>
    %303 = vector.extract_strided_slice %298 {offsets = [1, 0], sizes = [1, 20], strides = [1, 1]} : vector<3x20xf32> to vector<1x20xf32>
    %304 = vector.extract_strided_slice %296 {offsets = [3, 0], sizes = [3, 20], strides = [1, 1]} : vector<9x20xf32> to vector<3x20xf32>
    %305 = vector.broadcast %303 : vector<1x20xf32> to vector<3x20xf32>
    %306 = arith.mulf %305, %304 : vector<3x20xf32>
    %307 = arith.addf %302, %306 : vector<3x20xf32>
    %308 = vector.extract_strided_slice %298 {offsets = [2, 0], sizes = [1, 20], strides = [1, 1]} : vector<3x20xf32> to vector<1x20xf32>
    %309 = vector.extract_strided_slice %296 {offsets = [6, 0], sizes = [3, 20], strides = [1, 1]} : vector<9x20xf32> to vector<3x20xf32>
    %310 = vector.broadcast %308 : vector<1x20xf32> to vector<3x20xf32>
    %311 = arith.mulf %310, %309 : vector<3x20xf32>
    %312 = arith.addf %307, %311 : vector<3x20xf32>
    %313 = arith.truncf %312 : vector<3x20xf32> to vector<3x20xbf16>
    %cst_62 = arith.constant dense<0.000000e+00> : vector<3x10xf32>
    %314 = tpu.matmul %313, %15, %cst_62 {dimension_numbers = #tpu.dot_dimension_numbers<[1], [1], [0], [0], [0, 0, 1, 0], [], []>} : vector<3x20xbf16>, vector<10x20xbf16>, vector<3x10xf32> -> vector<3x10xf32>
    %315 = vector.extract_strided_slice %268 {offsets = [0, 0], sizes = [3, 1], strides = [1, 1]} : vector<3x3xf32> to vector<3x1xf32>
    %316 = vector.extract_strided_slice %265 {offsets = [0, 0], sizes = [1, 10], strides = [1, 1]} : vector<3x10xf32> to vector<1x10xf32>
    %317 = vector.broadcast %315 : vector<3x1xf32> to vector<3x10xf32>
    %318 = vector.broadcast %316 : vector<1x10xf32> to vector<3x10xf32>
    %319 = arith.mulf %317, %318 : vector<3x10xf32>
    %320 = vector.extract_strided_slice %268 {offsets = [0, 1], sizes = [3, 1], strides = [1, 1]} : vector<3x3xf32> to vector<3x1xf32>
    %321 = vector.extract_strided_slice %265 {offsets = [1, 0], sizes = [1, 10], strides = [1, 1]} : vector<3x10xf32> to vector<1x10xf32>
    %322 = vector.broadcast %320 : vector<3x1xf32> to vector<3x10xf32>
    %323 = vector.broadcast %321 : vector<1x10xf32> to vector<3x10xf32>
    %324 = arith.mulf %322, %323 : vector<3x10xf32>
    %325 = arith.addf %319, %324 : vector<3x10xf32>
    %326 = vector.extract_strided_slice %268 {offsets = [0, 2], sizes = [3, 1], strides = [1, 1]} : vector<3x3xf32> to vector<3x1xf32>
    %327 = vector.extract_strided_slice %265 {offsets = [2, 0], sizes = [1, 10], strides = [1, 1]} : vector<3x10xf32> to vector<1x10xf32>
    %328 = vector.broadcast %326 : vector<3x1xf32> to vector<3x10xf32>
    %329 = vector.broadcast %327 : vector<1x10xf32> to vector<3x10xf32>
    %330 = arith.mulf %328, %329 : vector<3x10xf32>
    %331 = arith.addf %325, %330 : vector<3x10xf32>
    %332 = vector.broadcast %269 : vector<3x1xf32> to vector<3x10xf32>
    %333 = arith.addf %331, %332 : vector<3x10xf32>
    %334 = arith.addf %314, %333 : vector<3x10xf32>
    %cst_63 = arith.constant 0.000000e+00 : f32
    %335 = vector.broadcast %cst_63 : f32 to vector<3x10xf32>
    %336 = arith.maximumf %334, %335 : vector<3x10xf32>
    %cst_64 = arith.constant dense<0.000000e+00> : vector<3xf32>
    %337 = vector.multi_reduction <add>, %336, %cst_64 [1] : vector<3x10xf32> to vector<3xf32>
    %338 = vector.shape_cast %337 : vector<3xf32> to vector<3x1xf32>
    %cst_65 = arith.constant 1.000000e+01 : f32
    %339 = vector.broadcast %cst_65 : f32 to vector<3x1xf32>
    %340 = arith.divf %338, %339 : vector<3x1xf32>
    %341 = vector.broadcast %340 : vector<3x1xf32> to vector<3x10xf32>
    %342 = arith.subf %336, %341 : vector<3x10xf32>
    %343 = arith.mulf %342, %342 : vector<3x10xf32>
    %cst_66 = arith.constant dense<0.000000e+00> : vector<3xf32>
    %344 = vector.multi_reduction <add>, %343, %cst_66 [1] : vector<3x10xf32> to vector<3xf32>
    %345 = vector.shape_cast %344 : vector<3xf32> to vector<3x1xf32>
    %cst_67 = arith.constant 1.000000e+01 : f32
    %346 = vector.broadcast %cst_67 : f32 to vector<3x1xf32>
    %347 = arith.divf %345, %346 : vector<3x1xf32>
    %cst_68 = arith.constant 9.99999974E-6 : f32
    %348 = vector.broadcast %cst_68 : f32 to vector<3x1xf32>
    %349 = arith.addf %347, %348 : vector<3x1xf32>
    %350 = math.rsqrt %349 : vector<3x1xf32>
    %351 = arith.mulf %350, %270 : vector<3x1xf32>
    %352 = vector.broadcast %351 : vector<3x1xf32> to vector<3x10xf32>
    %353 = arith.mulf %342, %352 : vector<3x10xf32>
    %354 = vector.broadcast %271 : vector<3x1xf32> to vector<3x10xf32>
    %355 = arith.addf %353, %354 : vector<3x10xf32>
    %c256 = arith.constant 256 : index
    %c0_69 = arith.constant 0 : index
    %356 = vector.load %arg5[%c256, %c0_69] : memref<632x16xf32, #tpu.memory_space<vmem>>, vector<9x4xf32>
    %c272 = arith.constant 272 : index
    %c0_70 = arith.constant 0 : index
    %357 = vector.load %arg5[%c272, %c0_70] : memref<632x16xf32, #tpu.memory_space<vmem>>, vector<9x1xf32>
    %c288 = arith.constant 288 : index
    %c0_71 = arith.constant 0 : index
    %358 = vector.load %arg5[%c288, %c0_71] : memref<632x16xf32, #tpu.memory_space<vmem>>, vector<3x3xf32>
    %c296 = arith.constant 296 : index
    %c0_72 = arith.constant 0 : index
    %359 = vector.load %arg5[%c296, %c0_72] : memref<632x16xf32, #tpu.memory_space<vmem>>, vector<3x1xf32>
    %c304 = arith.constant 304 : index
    %c0_73 = arith.constant 0 : index
    %360 = vector.load %arg5[%c304, %c0_73] : memref<632x16xf32, #tpu.memory_space<vmem>>, vector<3x1xf32>
    %c312 = arith.constant 312 : index
    %c0_74 = arith.constant 0 : index
    %361 = vector.load %arg5[%c312, %c0_74] : memref<632x16xf32, #tpu.memory_space<vmem>>, vector<3x1xf32>
    %362 = vector.extract_strided_slice %356 {offsets = [0, 0], sizes = [9, 1], strides = [1, 1]} : vector<9x4xf32> to vector<9x1xf32>
    %363 = vector.extract_strided_slice %85 {offsets = [0, 0], sizes = [1, 20], strides = [1, 1]} : vector<4x20xf32> to vector<1x20xf32>
    %364 = vector.broadcast %362 : vector<9x1xf32> to vector<9x20xf32>
    %365 = vector.broadcast %363 : vector<1x20xf32> to vector<9x20xf32>
    %366 = arith.mulf %364, %365 : vector<9x20xf32>
    %367 = vector.extract_strided_slice %356 {offsets = [0, 1], sizes = [9, 1], strides = [1, 1]} : vector<9x4xf32> to vector<9x1xf32>
    %368 = vector.extract_strided_slice %85 {offsets = [1, 0], sizes = [1, 20], strides = [1, 1]} : vector<4x20xf32> to vector<1x20xf32>
    %369 = vector.broadcast %367 : vector<9x1xf32> to vector<9x20xf32>
    %370 = vector.broadcast %368 : vector<1x20xf32> to vector<9x20xf32>
    %371 = arith.mulf %369, %370 : vector<9x20xf32>
    %372 = arith.addf %366, %371 : vector<9x20xf32>
    %373 = vector.extract_strided_slice %356 {offsets = [0, 2], sizes = [9, 1], strides = [1, 1]} : vector<9x4xf32> to vector<9x1xf32>
    %374 = vector.extract_strided_slice %85 {offsets = [2, 0], sizes = [1, 20], strides = [1, 1]} : vector<4x20xf32> to vector<1x20xf32>
    %375 = vector.broadcast %373 : vector<9x1xf32> to vector<9x20xf32>
    %376 = vector.broadcast %374 : vector<1x20xf32> to vector<9x20xf32>
    %377 = arith.mulf %375, %376 : vector<9x20xf32>
    %378 = arith.addf %372, %377 : vector<9x20xf32>
    %379 = vector.extract_strided_slice %356 {offsets = [0, 3], sizes = [9, 1], strides = [1, 1]} : vector<9x4xf32> to vector<9x1xf32>
    %380 = vector.extract_strided_slice %85 {offsets = [3, 0], sizes = [1, 20], strides = [1, 1]} : vector<4x20xf32> to vector<1x20xf32>
    %381 = vector.broadcast %379 : vector<9x1xf32> to vector<9x20xf32>
    %382 = vector.broadcast %380 : vector<1x20xf32> to vector<9x20xf32>
    %383 = arith.mulf %381, %382 : vector<9x20xf32>
    %384 = arith.addf %378, %383 : vector<9x20xf32>
    %385 = vector.broadcast %357 : vector<9x1xf32> to vector<9x20xf32>
    %386 = arith.addf %384, %385 : vector<9x20xf32>
    %387 = arith.truncf %355 : vector<3x10xf32> to vector<3x10xbf16>
    %cst_75 = arith.constant dense<0.000000e+00> : vector<3x20xf32>
    %388 = tpu.matmul %387, %10, %cst_75 {dimension_numbers = #tpu.dot_dimension_numbers<[1], [0], [0], [1], [0, 0, 1, 1], [], []>} : vector<3x10xbf16>, vector<10x20xbf16>, vector<3x20xf32> -> vector<3x20xf32>
    %389 = vector.extract_strided_slice %388 {offsets = [0, 0], sizes = [1, 20], strides = [1, 1]} : vector<3x20xf32> to vector<1x20xf32>
    %390 = vector.extract_strided_slice %386 {offsets = [0, 0], sizes = [3, 20], strides = [1, 1]} : vector<9x20xf32> to vector<3x20xf32>
    %391 = vector.broadcast %389 : vector<1x20xf32> to vector<3x20xf32>
    %392 = arith.mulf %391, %390 : vector<3x20xf32>
    %393 = vector.extract_strided_slice %388 {offsets = [1, 0], sizes = [1, 20], strides = [1, 1]} : vector<3x20xf32> to vector<1x20xf32>
    %394 = vector.extract_strided_slice %386 {offsets = [3, 0], sizes = [3, 20], strides = [1, 1]} : vector<9x20xf32> to vector<3x20xf32>
    %395 = vector.broadcast %393 : vector<1x20xf32> to vector<3x20xf32>
    %396 = arith.mulf %395, %394 : vector<3x20xf32>
    %397 = arith.addf %392, %396 : vector<3x20xf32>
    %398 = vector.extract_strided_slice %388 {offsets = [2, 0], sizes = [1, 20], strides = [1, 1]} : vector<3x20xf32> to vector<1x20xf32>
    %399 = vector.extract_strided_slice %386 {offsets = [6, 0], sizes = [3, 20], strides = [1, 1]} : vector<9x20xf32> to vector<3x20xf32>
    %400 = vector.broadcast %398 : vector<1x20xf32> to vector<3x20xf32>
    %401 = arith.mulf %400, %399 : vector<3x20xf32>
    %402 = arith.addf %397, %401 : vector<3x20xf32>
    %403 = arith.truncf %402 : vector<3x20xf32> to vector<3x20xbf16>
    %cst_76 = arith.constant dense<0.000000e+00> : vector<3x10xf32>
    %404 = tpu.matmul %403, %15, %cst_76 {dimension_numbers = #tpu.dot_dimension_numbers<[1], [1], [0], [0], [0, 0, 1, 0], [], []>} : vector<3x20xbf16>, vector<10x20xbf16>, vector<3x10xf32> -> vector<3x10xf32>
    %405 = vector.extract_strided_slice %358 {offsets = [0, 0], sizes = [3, 1], strides = [1, 1]} : vector<3x3xf32> to vector<3x1xf32>
    %406 = vector.extract_strided_slice %355 {offsets = [0, 0], sizes = [1, 10], strides = [1, 1]} : vector<3x10xf32> to vector<1x10xf32>
    %407 = vector.broadcast %405 : vector<3x1xf32> to vector<3x10xf32>
    %408 = vector.broadcast %406 : vector<1x10xf32> to vector<3x10xf32>
    %409 = arith.mulf %407, %408 : vector<3x10xf32>
    %410 = vector.extract_strided_slice %358 {offsets = [0, 1], sizes = [3, 1], strides = [1, 1]} : vector<3x3xf32> to vector<3x1xf32>
    %411 = vector.extract_strided_slice %355 {offsets = [1, 0], sizes = [1, 10], strides = [1, 1]} : vector<3x10xf32> to vector<1x10xf32>
    %412 = vector.broadcast %410 : vector<3x1xf32> to vector<3x10xf32>
    %413 = vector.broadcast %411 : vector<1x10xf32> to vector<3x10xf32>
    %414 = arith.mulf %412, %413 : vector<3x10xf32>
    %415 = arith.addf %409, %414 : vector<3x10xf32>
    %416 = vector.extract_strided_slice %358 {offsets = [0, 2], sizes = [3, 1], strides = [1, 1]} : vector<3x3xf32> to vector<3x1xf32>
    %417 = vector.extract_strided_slice %355 {offsets = [2, 0], sizes = [1, 10], strides = [1, 1]} : vector<3x10xf32> to vector<1x10xf32>
    %418 = vector.broadcast %416 : vector<3x1xf32> to vector<3x10xf32>
    %419 = vector.broadcast %417 : vector<1x10xf32> to vector<3x10xf32>
    %420 = arith.mulf %418, %419 : vector<3x10xf32>
    %421 = arith.addf %415, %420 : vector<3x10xf32>
    %422 = vector.broadcast %359 : vector<3x1xf32> to vector<3x10xf32>
    %423 = arith.addf %421, %422 : vector<3x10xf32>
    %424 = arith.addf %404, %423 : vector<3x10xf32>
    %cst_77 = arith.constant 0.000000e+00 : f32
    %425 = vector.broadcast %cst_77 : f32 to vector<3x10xf32>
    %426 = arith.maximumf %424, %425 : vector<3x10xf32>
    %cst_78 = arith.constant dense<0.000000e+00> : vector<3xf32>
    %427 = vector.multi_reduction <add>, %426, %cst_78 [1] : vector<3x10xf32> to vector<3xf32>
    %428 = vector.shape_cast %427 : vector<3xf32> to vector<3x1xf32>
    %cst_79 = arith.constant 1.000000e+01 : f32
    %429 = vector.broadcast %cst_79 : f32 to vector<3x1xf32>
    %430 = arith.divf %428, %429 : vector<3x1xf32>
    %431 = vector.broadcast %430 : vector<3x1xf32> to vector<3x10xf32>
    %432 = arith.subf %426, %431 : vector<3x10xf32>
    %433 = arith.mulf %432, %432 : vector<3x10xf32>
    %cst_80 = arith.constant dense<0.000000e+00> : vector<3xf32>
    %434 = vector.multi_reduction <add>, %433, %cst_80 [1] : vector<3x10xf32> to vector<3xf32>
    %435 = vector.shape_cast %434 : vector<3xf32> to vector<3x1xf32>
    %cst_81 = arith.constant 1.000000e+01 : f32
    %436 = vector.broadcast %cst_81 : f32 to vector<3x1xf32>
    %437 = arith.divf %435, %436 : vector<3x1xf32>
    %cst_82 = arith.constant 9.99999974E-6 : f32
    %438 = vector.broadcast %cst_82 : f32 to vector<3x1xf32>
    %439 = arith.addf %437, %438 : vector<3x1xf32>
    %440 = math.rsqrt %439 : vector<3x1xf32>
    %441 = arith.mulf %440, %360 : vector<3x1xf32>
    %442 = vector.broadcast %441 : vector<3x1xf32> to vector<3x10xf32>
    %443 = arith.mulf %432, %442 : vector<3x10xf32>
    %444 = vector.broadcast %361 : vector<3x1xf32> to vector<3x10xf32>
    %445 = arith.addf %443, %444 : vector<3x10xf32>
    %c320 = arith.constant 320 : index
    %c0_83 = arith.constant 0 : index
    %446 = vector.load %arg5[%c320, %c0_83] : memref<632x16xf32, #tpu.memory_space<vmem>>, vector<9x4xf32>
    %c336 = arith.constant 336 : index
    %c0_84 = arith.constant 0 : index
    %447 = vector.load %arg5[%c336, %c0_84] : memref<632x16xf32, #tpu.memory_space<vmem>>, vector<9x1xf32>
    %c352 = arith.constant 352 : index
    %c0_85 = arith.constant 0 : index
    %448 = vector.load %arg5[%c352, %c0_85] : memref<632x16xf32, #tpu.memory_space<vmem>>, vector<3x3xf32>
    %c360 = arith.constant 360 : index
    %c0_86 = arith.constant 0 : index
    %449 = vector.load %arg5[%c360, %c0_86] : memref<632x16xf32, #tpu.memory_space<vmem>>, vector<3x1xf32>
    %c368 = arith.constant 368 : index
    %c0_87 = arith.constant 0 : index
    %450 = vector.load %arg5[%c368, %c0_87] : memref<632x16xf32, #tpu.memory_space<vmem>>, vector<3x1xf32>
    %c376 = arith.constant 376 : index
    %c0_88 = arith.constant 0 : index
    %451 = vector.load %arg5[%c376, %c0_88] : memref<632x16xf32, #tpu.memory_space<vmem>>, vector<3x1xf32>
    %452 = vector.extract_strided_slice %446 {offsets = [0, 0], sizes = [9, 1], strides = [1, 1]} : vector<9x4xf32> to vector<9x1xf32>
    %453 = vector.extract_strided_slice %85 {offsets = [0, 0], sizes = [1, 20], strides = [1, 1]} : vector<4x20xf32> to vector<1x20xf32>
    %454 = vector.broadcast %452 : vector<9x1xf32> to vector<9x20xf32>
    %455 = vector.broadcast %453 : vector<1x20xf32> to vector<9x20xf32>
    %456 = arith.mulf %454, %455 : vector<9x20xf32>
    %457 = vector.extract_strided_slice %446 {offsets = [0, 1], sizes = [9, 1], strides = [1, 1]} : vector<9x4xf32> to vector<9x1xf32>
    %458 = vector.extract_strided_slice %85 {offsets = [1, 0], sizes = [1, 20], strides = [1, 1]} : vector<4x20xf32> to vector<1x20xf32>
    %459 = vector.broadcast %457 : vector<9x1xf32> to vector<9x20xf32>
    %460 = vector.broadcast %458 : vector<1x20xf32> to vector<9x20xf32>
    %461 = arith.mulf %459, %460 : vector<9x20xf32>
    %462 = arith.addf %456, %461 : vector<9x20xf32>
    %463 = vector.extract_strided_slice %446 {offsets = [0, 2], sizes = [9, 1], strides = [1, 1]} : vector<9x4xf32> to vector<9x1xf32>
    %464 = vector.extract_strided_slice %85 {offsets = [2, 0], sizes = [1, 20], strides = [1, 1]} : vector<4x20xf32> to vector<1x20xf32>
    %465 = vector.broadcast %463 : vector<9x1xf32> to vector<9x20xf32>
    %466 = vector.broadcast %464 : vector<1x20xf32> to vector<9x20xf32>
    %467 = arith.mulf %465, %466 : vector<9x20xf32>
    %468 = arith.addf %462, %467 : vector<9x20xf32>
    %469 = vector.extract_strided_slice %446 {offsets = [0, 3], sizes = [9, 1], strides = [1, 1]} : vector<9x4xf32> to vector<9x1xf32>
    %470 = vector.extract_strided_slice %85 {offsets = [3, 0], sizes = [1, 20], strides = [1, 1]} : vector<4x20xf32> to vector<1x20xf32>
    %471 = vector.broadcast %469 : vector<9x1xf32> to vector<9x20xf32>
    %472 = vector.broadcast %470 : vector<1x20xf32> to vector<9x20xf32>
    %473 = arith.mulf %471, %472 : vector<9x20xf32>
    %474 = arith.addf %468, %473 : vector<9x20xf32>
    %475 = vector.broadcast %447 : vector<9x1xf32> to vector<9x20xf32>
    %476 = arith.addf %474, %475 : vector<9x20xf32>
    %477 = arith.truncf %445 : vector<3x10xf32> to vector<3x10xbf16>
    %cst_89 = arith.constant dense<0.000000e+00> : vector<3x20xf32>
    %478 = tpu.matmul %477, %10, %cst_89 {dimension_numbers = #tpu.dot_dimension_numbers<[1], [0], [0], [1], [0, 0, 1, 1], [], []>} : vector<3x10xbf16>, vector<10x20xbf16>, vector<3x20xf32> -> vector<3x20xf32>
    %479 = vector.extract_strided_slice %478 {offsets = [0, 0], sizes = [1, 20], strides = [1, 1]} : vector<3x20xf32> to vector<1x20xf32>
    %480 = vector.extract_strided_slice %476 {offsets = [0, 0], sizes = [3, 20], strides = [1, 1]} : vector<9x20xf32> to vector<3x20xf32>
    %481 = vector.broadcast %479 : vector<1x20xf32> to vector<3x20xf32>
    %482 = arith.mulf %481, %480 : vector<3x20xf32>
    %483 = vector.extract_strided_slice %478 {offsets = [1, 0], sizes = [1, 20], strides = [1, 1]} : vector<3x20xf32> to vector<1x20xf32>
    %484 = vector.extract_strided_slice %476 {offsets = [3, 0], sizes = [3, 20], strides = [1, 1]} : vector<9x20xf32> to vector<3x20xf32>
    %485 = vector.broadcast %483 : vector<1x20xf32> to vector<3x20xf32>
    %486 = arith.mulf %485, %484 : vector<3x20xf32>
    %487 = arith.addf %482, %486 : vector<3x20xf32>
    %488 = vector.extract_strided_slice %478 {offsets = [2, 0], sizes = [1, 20], strides = [1, 1]} : vector<3x20xf32> to vector<1x20xf32>
    %489 = vector.extract_strided_slice %476 {offsets = [6, 0], sizes = [3, 20], strides = [1, 1]} : vector<9x20xf32> to vector<3x20xf32>
    %490 = vector.broadcast %488 : vector<1x20xf32> to vector<3x20xf32>
    %491 = arith.mulf %490, %489 : vector<3x20xf32>
    %492 = arith.addf %487, %491 : vector<3x20xf32>
    %493 = arith.truncf %492 : vector<3x20xf32> to vector<3x20xbf16>
    %cst_90 = arith.constant dense<0.000000e+00> : vector<3x10xf32>
    %494 = tpu.matmul %493, %15, %cst_90 {dimension_numbers = #tpu.dot_dimension_numbers<[1], [1], [0], [0], [0, 0, 1, 0], [], []>} : vector<3x20xbf16>, vector<10x20xbf16>, vector<3x10xf32> -> vector<3x10xf32>
    %495 = vector.extract_strided_slice %448 {offsets = [0, 0], sizes = [3, 1], strides = [1, 1]} : vector<3x3xf32> to vector<3x1xf32>
    %496 = vector.extract_strided_slice %445 {offsets = [0, 0], sizes = [1, 10], strides = [1, 1]} : vector<3x10xf32> to vector<1x10xf32>
    %497 = vector.broadcast %495 : vector<3x1xf32> to vector<3x10xf32>
    %498 = vector.broadcast %496 : vector<1x10xf32> to vector<3x10xf32>
    %499 = arith.mulf %497, %498 : vector<3x10xf32>
    %500 = vector.extract_strided_slice %448 {offsets = [0, 1], sizes = [3, 1], strides = [1, 1]} : vector<3x3xf32> to vector<3x1xf32>
    %501 = vector.extract_strided_slice %445 {offsets = [1, 0], sizes = [1, 10], strides = [1, 1]} : vector<3x10xf32> to vector<1x10xf32>
    %502 = vector.broadcast %500 : vector<3x1xf32> to vector<3x10xf32>
    %503 = vector.broadcast %501 : vector<1x10xf32> to vector<3x10xf32>
    %504 = arith.mulf %502, %503 : vector<3x10xf32>
    %505 = arith.addf %499, %504 : vector<3x10xf32>
    %506 = vector.extract_strided_slice %448 {offsets = [0, 2], sizes = [3, 1], strides = [1, 1]} : vector<3x3xf32> to vector<3x1xf32>
    %507 = vector.extract_strided_slice %445 {offsets = [2, 0], sizes = [1, 10], strides = [1, 1]} : vector<3x10xf32> to vector<1x10xf32>
    %508 = vector.broadcast %506 : vector<3x1xf32> to vector<3x10xf32>
    %509 = vector.broadcast %507 : vector<1x10xf32> to vector<3x10xf32>
    %510 = arith.mulf %508, %509 : vector<3x10xf32>
    %511 = arith.addf %505, %510 : vector<3x10xf32>
    %512 = vector.broadcast %449 : vector<3x1xf32> to vector<3x10xf32>
    %513 = arith.addf %511, %512 : vector<3x10xf32>
    %514 = arith.addf %494, %513 : vector<3x10xf32>
    %cst_91 = arith.constant 0.000000e+00 : f32
    %515 = vector.broadcast %cst_91 : f32 to vector<3x10xf32>
    %516 = arith.maximumf %514, %515 : vector<3x10xf32>
    %cst_92 = arith.constant dense<0.000000e+00> : vector<3xf32>
    %517 = vector.multi_reduction <add>, %516, %cst_92 [1] : vector<3x10xf32> to vector<3xf32>
    %518 = vector.shape_cast %517 : vector<3xf32> to vector<3x1xf32>
    %cst_93 = arith.constant 1.000000e+01 : f32
    %519 = vector.broadcast %cst_93 : f32 to vector<3x1xf32>
    %520 = arith.divf %518, %519 : vector<3x1xf32>
    %521 = vector.broadcast %520 : vector<3x1xf32> to vector<3x10xf32>
    %522 = arith.subf %516, %521 : vector<3x10xf32>
    %523 = arith.mulf %522, %522 : vector<3x10xf32>
    %cst_94 = arith.constant dense<0.000000e+00> : vector<3xf32>
    %524 = vector.multi_reduction <add>, %523, %cst_94 [1] : vector<3x10xf32> to vector<3xf32>
    %525 = vector.shape_cast %524 : vector<3xf32> to vector<3x1xf32>
    %cst_95 = arith.constant 1.000000e+01 : f32
    %526 = vector.broadcast %cst_95 : f32 to vector<3x1xf32>
    %527 = arith.divf %525, %526 : vector<3x1xf32>
    %cst_96 = arith.constant 9.99999974E-6 : f32
    %528 = vector.broadcast %cst_96 : f32 to vector<3x1xf32>
    %529 = arith.addf %527, %528 : vector<3x1xf32>
    %530 = math.rsqrt %529 : vector<3x1xf32>
    %531 = arith.mulf %530, %450 : vector<3x1xf32>
    %532 = vector.broadcast %531 : vector<3x1xf32> to vector<3x10xf32>
    %533 = arith.mulf %522, %532 : vector<3x10xf32>
    %534 = vector.broadcast %451 : vector<3x1xf32> to vector<3x10xf32>
    %535 = arith.addf %533, %534 : vector<3x10xf32>
    %536 = tpu.iota {dimensions = array<i32: 0>} : vector<3x10xi32>
    %537 = vector.broadcast %4 : vector<1x10xi32> to vector<3x10xi32>
    %538 = arith.cmpi eq, %536, %537 : vector<3x10xi32>
    %539 = arith.extui %538 : vector<3x10xi1> to vector<3x10xi32>
    %540 = arith.sitofp %539 : vector<3x10xi32> to vector<3x10xf32>
    %cst_97 = arith.constant dense<0.000000e+00> : vector<3xf32>
    %541 = vector.multi_reduction <add>, %540, %cst_97 [1] : vector<3x10xf32> to vector<3xf32>
    %542 = vector.shape_cast %541 : vector<3xf32> to vector<3x1xf32>
    %cst_98 = arith.constant 1.000000e+00 : f32
    %543 = vector.broadcast %cst_98 : f32 to vector<3x1xf32>
    %544 = arith.maximumf %542, %543 : vector<3x1xf32>
    %cst_99 = arith.constant 1.000000e+00 : f32
    %545 = vector.broadcast %cst_99 : f32 to vector<3x1xf32>
    %546 = arith.divf %545, %544 : vector<3x1xf32>
    %cst_100 = arith.constant 0.000000e+00 : f32
    %547 = vector.broadcast %cst_100 : f32 to vector<3x1xf32>
    %548 = arith.cmpf ogt, %542, %547 : vector<3x1xf32>
    %549 = vector.extract_strided_slice %535 {offsets = [0, 0], sizes = [1, 10], strides = [1, 1]} : vector<3x10xf32> to vector<1x10xf32>
    %550 = vector.broadcast %549 : vector<1x10xf32> to vector<3x10xf32>
    %551 = arith.mulf %540, %550 : vector<3x10xf32>
    %cst_101 = arith.constant dense<0.000000e+00> : vector<3xf32>
    %552 = vector.multi_reduction <add>, %551, %cst_101 [1] : vector<3x10xf32> to vector<3xf32>
    %553 = vector.shape_cast %552 : vector<3xf32> to vector<3x1xf32>
    %554 = arith.mulf %553, %546 : vector<3x1xf32>
    %555 = vector.extract_strided_slice %535 {offsets = [1, 0], sizes = [1, 10], strides = [1, 1]} : vector<3x10xf32> to vector<1x10xf32>
    %556 = vector.broadcast %555 : vector<1x10xf32> to vector<3x10xf32>
    %557 = arith.mulf %540, %556 : vector<3x10xf32>
    %cst_102 = arith.constant dense<0.000000e+00> : vector<3xf32>
    %558 = vector.multi_reduction <add>, %557, %cst_102 [1] : vector<3x10xf32> to vector<3xf32>
    %559 = vector.shape_cast %558 : vector<3xf32> to vector<3x1xf32>
    %560 = arith.mulf %559, %546 : vector<3x1xf32>
    %561 = vector.extract_strided_slice %535 {offsets = [2, 0], sizes = [1, 10], strides = [1, 1]} : vector<3x10xf32> to vector<1x10xf32>
    %562 = vector.broadcast %561 : vector<1x10xf32> to vector<3x10xf32>
    %563 = arith.mulf %540, %562 : vector<3x10xf32>
    %cst_103 = arith.constant dense<0.000000e+00> : vector<3xf32>
    %564 = vector.multi_reduction <add>, %563, %cst_103 [1] : vector<3x10xf32> to vector<3xf32>
    %565 = vector.shape_cast %564 : vector<3xf32> to vector<3x1xf32>
    %566 = arith.mulf %565, %546 : vector<3x1xf32>
    %567 = vector.extract_strided_slice %535 {offsets = [0, 0], sizes = [1, 10], strides = [1, 1]} : vector<3x10xf32> to vector<1x10xf32>
    %cst_104 = arith.constant -3.400000e+38 : f32
    %568 = vector.shape_cast %567 : vector<1x10xf32> to vector<1x10xf32>
    %569 = vector.broadcast %568 : vector<1x10xf32> to vector<3x10xf32>
    %570 = vector.broadcast %cst_104 : f32 to vector<3x10xf32>
    %571 = arith.select %538, %569, %570 : vector<3x10xi1>, vector<3x10xf32>
    %cst_105 = arith.constant dense<0xFF800000> : vector<3xf32>
    %572 = vector.multi_reduction <maximumf>, %571, %cst_105 [1] : vector<3x10xf32> to vector<3xf32>
    %573 = vector.shape_cast %572 : vector<3xf32> to vector<3x1xf32>
    %cst_106 = arith.constant 0.000000e+00 : f32
    %574 = vector.broadcast %cst_106 : f32 to vector<3x1xf32>
    %575 = arith.select %548, %573, %574 : vector<3x1xi1>, vector<3x1xf32>
    %576 = vector.extract_strided_slice %535 {offsets = [1, 0], sizes = [1, 10], strides = [1, 1]} : vector<3x10xf32> to vector<1x10xf32>
    %cst_107 = arith.constant -3.400000e+38 : f32
    %577 = vector.shape_cast %576 : vector<1x10xf32> to vector<1x10xf32>
    %578 = vector.broadcast %577 : vector<1x10xf32> to vector<3x10xf32>
    %579 = vector.broadcast %cst_107 : f32 to vector<3x10xf32>
    %580 = arith.select %538, %578, %579 : vector<3x10xi1>, vector<3x10xf32>
    %cst_108 = arith.constant dense<0xFF800000> : vector<3xf32>
    %581 = vector.multi_reduction <maximumf>, %580, %cst_108 [1] : vector<3x10xf32> to vector<3xf32>
    %582 = vector.shape_cast %581 : vector<3xf32> to vector<3x1xf32>
    %cst_109 = arith.constant 0.000000e+00 : f32
    %583 = vector.broadcast %cst_109 : f32 to vector<3x1xf32>
    %584 = arith.select %548, %582, %583 : vector<3x1xi1>, vector<3x1xf32>
    %585 = vector.extract_strided_slice %535 {offsets = [2, 0], sizes = [1, 10], strides = [1, 1]} : vector<3x10xf32> to vector<1x10xf32>
    %cst_110 = arith.constant -3.400000e+38 : f32
    %586 = vector.shape_cast %585 : vector<1x10xf32> to vector<1x10xf32>
    %587 = vector.broadcast %586 : vector<1x10xf32> to vector<3x10xf32>
    %588 = vector.broadcast %cst_110 : f32 to vector<3x10xf32>
    %589 = arith.select %538, %587, %588 : vector<3x10xi1>, vector<3x10xf32>
    %cst_111 = arith.constant dense<0xFF800000> : vector<3xf32>
    %590 = vector.multi_reduction <maximumf>, %589, %cst_111 [1] : vector<3x10xf32> to vector<3xf32>
    %591 = vector.shape_cast %590 : vector<3xf32> to vector<3x1xf32>
    %cst_112 = arith.constant 0.000000e+00 : f32
    %592 = vector.broadcast %cst_112 : f32 to vector<3x1xf32>
    %593 = arith.select %548, %591, %592 : vector<3x1xi1>, vector<3x1xf32>
    %594 = tpu.concatenate %554, %560, %566, %575, %584, %593 in 1 : vector<3x1xf32>, vector<3x1xf32>, vector<3x1xf32>, vector<3x1xf32>, vector<3x1xf32>, vector<3x1xf32> -> vector<3x6xf32>
    %c384 = arith.constant 384 : index
    %c0_113 = arith.constant 0 : index
    %595 = vector.load %arg5[%c384, %c0_113] : memref<632x16xf32, #tpu.memory_space<vmem>>, vector<6x12xf32>
    %c392 = arith.constant 392 : index
    %c0_114 = arith.constant 0 : index
    %596 = vector.load %arg5[%c392, %c0_114] : memref<632x16xf32, #tpu.memory_space<vmem>>, vector<1x12xf32>
    %c400 = arith.constant 400 : index
    %c0_115 = arith.constant 0 : index
    %597 = vector.load %arg5[%c400, %c0_115] : memref<632x16xf32, #tpu.memory_space<vmem>>, vector<1x12xf32>
    %c408 = arith.constant 408 : index
    %c0_116 = arith.constant 0 : index
    %598 = vector.load %arg5[%c408, %c0_116] : memref<632x16xf32, #tpu.memory_space<vmem>>, vector<1x12xf32>
    %599 = vector.extract_strided_slice %594 {offsets = [0, 0], sizes = [3, 1], strides = [1, 1]} : vector<3x6xf32> to vector<3x1xf32>
    %600 = vector.extract_strided_slice %595 {offsets = [0, 0], sizes = [1, 12], strides = [1, 1]} : vector<6x12xf32> to vector<1x12xf32>
    %601 = vector.broadcast %599 : vector<3x1xf32> to vector<3x12xf32>
    %602 = vector.broadcast %600 : vector<1x12xf32> to vector<3x12xf32>
    %603 = arith.mulf %601, %602 : vector<3x12xf32>
    %604 = vector.extract_strided_slice %594 {offsets = [0, 1], sizes = [3, 1], strides = [1, 1]} : vector<3x6xf32> to vector<3x1xf32>
    %605 = vector.extract_strided_slice %595 {offsets = [1, 0], sizes = [1, 12], strides = [1, 1]} : vector<6x12xf32> to vector<1x12xf32>
    %606 = vector.broadcast %604 : vector<3x1xf32> to vector<3x12xf32>
    %607 = vector.broadcast %605 : vector<1x12xf32> to vector<3x12xf32>
    %608 = arith.mulf %606, %607 : vector<3x12xf32>
    %609 = arith.addf %603, %608 : vector<3x12xf32>
    %610 = vector.extract_strided_slice %594 {offsets = [0, 2], sizes = [3, 1], strides = [1, 1]} : vector<3x6xf32> to vector<3x1xf32>
    %611 = vector.extract_strided_slice %595 {offsets = [2, 0], sizes = [1, 12], strides = [1, 1]} : vector<6x12xf32> to vector<1x12xf32>
    %612 = vector.broadcast %610 : vector<3x1xf32> to vector<3x12xf32>
    %613 = vector.broadcast %611 : vector<1x12xf32> to vector<3x12xf32>
    %614 = arith.mulf %612, %613 : vector<3x12xf32>
    %615 = arith.addf %609, %614 : vector<3x12xf32>
    %616 = vector.extract_strided_slice %594 {offsets = [0, 3], sizes = [3, 1], strides = [1, 1]} : vector<3x6xf32> to vector<3x1xf32>
    %617 = vector.extract_strided_slice %595 {offsets = [3, 0], sizes = [1, 12], strides = [1, 1]} : vector<6x12xf32> to vector<1x12xf32>
    %618 = vector.broadcast %616 : vector<3x1xf32> to vector<3x12xf32>
    %619 = vector.broadcast %617 : vector<1x12xf32> to vector<3x12xf32>
    %620 = arith.mulf %618, %619 : vector<3x12xf32>
    %621 = arith.addf %615, %620 : vector<3x12xf32>
    %622 = vector.extract_strided_slice %594 {offsets = [0, 4], sizes = [3, 1], strides = [1, 1]} : vector<3x6xf32> to vector<3x1xf32>
    %623 = vector.extract_strided_slice %595 {offsets = [4, 0], sizes = [1, 12], strides = [1, 1]} : vector<6x12xf32> to vector<1x12xf32>
    %624 = vector.broadcast %622 : vector<3x1xf32> to vector<3x12xf32>
    %625 = vector.broadcast %623 : vector<1x12xf32> to vector<3x12xf32>
    %626 = arith.mulf %624, %625 : vector<3x12xf32>
    %627 = arith.addf %621, %626 : vector<3x12xf32>
    %628 = vector.extract_strided_slice %594 {offsets = [0, 5], sizes = [3, 1], strides = [1, 1]} : vector<3x6xf32> to vector<3x1xf32>
    %629 = vector.extract_strided_slice %595 {offsets = [5, 0], sizes = [1, 12], strides = [1, 1]} : vector<6x12xf32> to vector<1x12xf32>
    %630 = vector.broadcast %628 : vector<3x1xf32> to vector<3x12xf32>
    %631 = vector.broadcast %629 : vector<1x12xf32> to vector<3x12xf32>
    %632 = arith.mulf %630, %631 : vector<3x12xf32>
    %633 = arith.addf %627, %632 : vector<3x12xf32>
    %634 = vector.broadcast %596 : vector<1x12xf32> to vector<3x12xf32>
    %635 = arith.addf %633, %634 : vector<3x12xf32>
    %cst_117 = arith.constant 0.000000e+00 : f32
    %636 = vector.broadcast %cst_117 : f32 to vector<3x12xf32>
    %637 = arith.maximumf %635, %636 : vector<3x12xf32>
    %cst_118 = arith.constant dense<0.000000e+00> : vector<12xf32>
    %638 = vector.multi_reduction <add>, %637, %cst_118 [0] : vector<3x12xf32> to vector<12xf32>
    %639 = vector.shape_cast %638 : vector<12xf32> to vector<1x12xf32>
    %cst_119 = arith.constant 3.000000e+00 : f32
    %640 = vector.broadcast %cst_119 : f32 to vector<1x12xf32>
    %641 = arith.divf %639, %640 : vector<1x12xf32>
    %642 = vector.broadcast %641 : vector<1x12xf32> to vector<3x12xf32>
    %643 = arith.subf %637, %642 : vector<3x12xf32>
    %644 = arith.mulf %643, %643 : vector<3x12xf32>
    %cst_120 = arith.constant dense<0.000000e+00> : vector<12xf32>
    %645 = vector.multi_reduction <add>, %644, %cst_120 [0] : vector<3x12xf32> to vector<12xf32>
    %646 = vector.shape_cast %645 : vector<12xf32> to vector<1x12xf32>
    %cst_121 = arith.constant 3.000000e+00 : f32
    %647 = vector.broadcast %cst_121 : f32 to vector<1x12xf32>
    %648 = arith.divf %646, %647 : vector<1x12xf32>
    %cst_122 = arith.constant 9.99999974E-6 : f32
    %649 = vector.broadcast %cst_122 : f32 to vector<1x12xf32>
    %650 = arith.addf %648, %649 : vector<1x12xf32>
    %651 = math.rsqrt %650 : vector<1x12xf32>
    %652 = arith.mulf %651, %597 : vector<1x12xf32>
    %653 = vector.broadcast %652 : vector<1x12xf32> to vector<3x12xf32>
    %654 = arith.mulf %643, %653 : vector<3x12xf32>
    %655 = vector.broadcast %598 : vector<1x12xf32> to vector<3x12xf32>
    %656 = arith.addf %654, %655 : vector<3x12xf32>
    %c416 = arith.constant 416 : index
    %c0_123 = arith.constant 0 : index
    %657 = vector.load %arg5[%c416, %c0_123] : memref<632x16xf32, #tpu.memory_space<vmem>>, vector<12x9xf32>
    %c432 = arith.constant 432 : index
    %c0_124 = arith.constant 0 : index
    %658 = vector.load %arg5[%c432, %c0_124] : memref<632x16xf32, #tpu.memory_space<vmem>>, vector<1x9xf32>
    %c440 = arith.constant 440 : index
    %c0_125 = arith.constant 0 : index
    %659 = vector.load %arg5[%c440, %c0_125] : memref<632x16xf32, #tpu.memory_space<vmem>>, vector<1x9xf32>
    %c448 = arith.constant 448 : index
    %c0_126 = arith.constant 0 : index
    %660 = vector.load %arg5[%c448, %c0_126] : memref<632x16xf32, #tpu.memory_space<vmem>>, vector<1x9xf32>
    %661 = vector.extract_strided_slice %656 {offsets = [0, 0], sizes = [3, 1], strides = [1, 1]} : vector<3x12xf32> to vector<3x1xf32>
    %662 = vector.extract_strided_slice %657 {offsets = [0, 0], sizes = [1, 9], strides = [1, 1]} : vector<12x9xf32> to vector<1x9xf32>
    %663 = vector.broadcast %661 : vector<3x1xf32> to vector<3x9xf32>
    %664 = vector.broadcast %662 : vector<1x9xf32> to vector<3x9xf32>
    %665 = arith.mulf %663, %664 : vector<3x9xf32>
    %666 = vector.extract_strided_slice %656 {offsets = [0, 1], sizes = [3, 1], strides = [1, 1]} : vector<3x12xf32> to vector<3x1xf32>
    %667 = vector.extract_strided_slice %657 {offsets = [1, 0], sizes = [1, 9], strides = [1, 1]} : vector<12x9xf32> to vector<1x9xf32>
    %668 = vector.broadcast %666 : vector<3x1xf32> to vector<3x9xf32>
    %669 = vector.broadcast %667 : vector<1x9xf32> to vector<3x9xf32>
    %670 = arith.mulf %668, %669 : vector<3x9xf32>
    %671 = arith.addf %665, %670 : vector<3x9xf32>
    %672 = vector.extract_strided_slice %656 {offsets = [0, 2], sizes = [3, 1], strides = [1, 1]} : vector<3x12xf32> to vector<3x1xf32>
    %673 = vector.extract_strided_slice %657 {offsets = [2, 0], sizes = [1, 9], strides = [1, 1]} : vector<12x9xf32> to vector<1x9xf32>
    %674 = vector.broadcast %672 : vector<3x1xf32> to vector<3x9xf32>
    %675 = vector.broadcast %673 : vector<1x9xf32> to vector<3x9xf32>
    %676 = arith.mulf %674, %675 : vector<3x9xf32>
    %677 = arith.addf %671, %676 : vector<3x9xf32>
    %678 = vector.extract_strided_slice %656 {offsets = [0, 3], sizes = [3, 1], strides = [1, 1]} : vector<3x12xf32> to vector<3x1xf32>
    %679 = vector.extract_strided_slice %657 {offsets = [3, 0], sizes = [1, 9], strides = [1, 1]} : vector<12x9xf32> to vector<1x9xf32>
    %680 = vector.broadcast %678 : vector<3x1xf32> to vector<3x9xf32>
    %681 = vector.broadcast %679 : vector<1x9xf32> to vector<3x9xf32>
    %682 = arith.mulf %680, %681 : vector<3x9xf32>
    %683 = arith.addf %677, %682 : vector<3x9xf32>
    %684 = vector.extract_strided_slice %656 {offsets = [0, 4], sizes = [3, 1], strides = [1, 1]} : vector<3x12xf32> to vector<3x1xf32>
    %685 = vector.extract_strided_slice %657 {offsets = [4, 0], sizes = [1, 9], strides = [1, 1]} : vector<12x9xf32> to vector<1x9xf32>
    %686 = vector.broadcast %684 : vector<3x1xf32> to vector<3x9xf32>
    %687 = vector.broadcast %685 : vector<1x9xf32> to vector<3x9xf32>
    %688 = arith.mulf %686, %687 : vector<3x9xf32>
    %689 = arith.addf %683, %688 : vector<3x9xf32>
    %690 = vector.extract_strided_slice %656 {offsets = [0, 5], sizes = [3, 1], strides = [1, 1]} : vector<3x12xf32> to vector<3x1xf32>
    %691 = vector.extract_strided_slice %657 {offsets = [5, 0], sizes = [1, 9], strides = [1, 1]} : vector<12x9xf32> to vector<1x9xf32>
    %692 = vector.broadcast %690 : vector<3x1xf32> to vector<3x9xf32>
    %693 = vector.broadcast %691 : vector<1x9xf32> to vector<3x9xf32>
    %694 = arith.mulf %692, %693 : vector<3x9xf32>
    %695 = arith.addf %689, %694 : vector<3x9xf32>
    %696 = vector.extract_strided_slice %656 {offsets = [0, 6], sizes = [3, 1], strides = [1, 1]} : vector<3x12xf32> to vector<3x1xf32>
    %697 = vector.extract_strided_slice %657 {offsets = [6, 0], sizes = [1, 9], strides = [1, 1]} : vector<12x9xf32> to vector<1x9xf32>
    %698 = vector.broadcast %696 : vector<3x1xf32> to vector<3x9xf32>
    %699 = vector.broadcast %697 : vector<1x9xf32> to vector<3x9xf32>
    %700 = arith.mulf %698, %699 : vector<3x9xf32>
    %701 = arith.addf %695, %700 : vector<3x9xf32>
    %702 = vector.extract_strided_slice %656 {offsets = [0, 7], sizes = [3, 1], strides = [1, 1]} : vector<3x12xf32> to vector<3x1xf32>
    %703 = vector.extract_strided_slice %657 {offsets = [7, 0], sizes = [1, 9], strides = [1, 1]} : vector<12x9xf32> to vector<1x9xf32>
    %704 = vector.broadcast %702 : vector<3x1xf32> to vector<3x9xf32>
    %705 = vector.broadcast %703 : vector<1x9xf32> to vector<3x9xf32>
    %706 = arith.mulf %704, %705 : vector<3x9xf32>
    %707 = arith.addf %701, %706 : vector<3x9xf32>
    %708 = vector.extract_strided_slice %656 {offsets = [0, 8], sizes = [3, 1], strides = [1, 1]} : vector<3x12xf32> to vector<3x1xf32>
    %709 = vector.extract_strided_slice %657 {offsets = [8, 0], sizes = [1, 9], strides = [1, 1]} : vector<12x9xf32> to vector<1x9xf32>
    %710 = vector.broadcast %708 : vector<3x1xf32> to vector<3x9xf32>
    %711 = vector.broadcast %709 : vector<1x9xf32> to vector<3x9xf32>
    %712 = arith.mulf %710, %711 : vector<3x9xf32>
    %713 = arith.addf %707, %712 : vector<3x9xf32>
    %714 = vector.extract_strided_slice %656 {offsets = [0, 9], sizes = [3, 1], strides = [1, 1]} : vector<3x12xf32> to vector<3x1xf32>
    %715 = vector.extract_strided_slice %657 {offsets = [9, 0], sizes = [1, 9], strides = [1, 1]} : vector<12x9xf32> to vector<1x9xf32>
    %716 = vector.broadcast %714 : vector<3x1xf32> to vector<3x9xf32>
    %717 = vector.broadcast %715 : vector<1x9xf32> to vector<3x9xf32>
    %718 = arith.mulf %716, %717 : vector<3x9xf32>
    %719 = arith.addf %713, %718 : vector<3x9xf32>
    %720 = vector.extract_strided_slice %656 {offsets = [0, 10], sizes = [3, 1], strides = [1, 1]} : vector<3x12xf32> to vector<3x1xf32>
    %721 = vector.extract_strided_slice %657 {offsets = [10, 0], sizes = [1, 9], strides = [1, 1]} : vector<12x9xf32> to vector<1x9xf32>
    %722 = vector.broadcast %720 : vector<3x1xf32> to vector<3x9xf32>
    %723 = vector.broadcast %721 : vector<1x9xf32> to vector<3x9xf32>
    %724 = arith.mulf %722, %723 : vector<3x9xf32>
    %725 = arith.addf %719, %724 : vector<3x9xf32>
    %726 = vector.extract_strided_slice %656 {offsets = [0, 11], sizes = [3, 1], strides = [1, 1]} : vector<3x12xf32> to vector<3x1xf32>
    %727 = vector.extract_strided_slice %657 {offsets = [11, 0], sizes = [1, 9], strides = [1, 1]} : vector<12x9xf32> to vector<1x9xf32>
    %728 = vector.broadcast %726 : vector<3x1xf32> to vector<3x9xf32>
    %729 = vector.broadcast %727 : vector<1x9xf32> to vector<3x9xf32>
    %730 = arith.mulf %728, %729 : vector<3x9xf32>
    %731 = arith.addf %725, %730 : vector<3x9xf32>
    %732 = vector.broadcast %658 : vector<1x9xf32> to vector<3x9xf32>
    %733 = arith.addf %731, %732 : vector<3x9xf32>
    %cst_127 = arith.constant 0.000000e+00 : f32
    %734 = vector.broadcast %cst_127 : f32 to vector<3x9xf32>
    %735 = arith.maximumf %733, %734 : vector<3x9xf32>
    %cst_128 = arith.constant dense<0.000000e+00> : vector<9xf32>
    %736 = vector.multi_reduction <add>, %735, %cst_128 [0] : vector<3x9xf32> to vector<9xf32>
    %737 = vector.shape_cast %736 : vector<9xf32> to vector<1x9xf32>
    %cst_129 = arith.constant 3.000000e+00 : f32
    %738 = vector.broadcast %cst_129 : f32 to vector<1x9xf32>
    %739 = arith.divf %737, %738 : vector<1x9xf32>
    %740 = vector.broadcast %739 : vector<1x9xf32> to vector<3x9xf32>
    %741 = arith.subf %735, %740 : vector<3x9xf32>
    %742 = arith.mulf %741, %741 : vector<3x9xf32>
    %cst_130 = arith.constant dense<0.000000e+00> : vector<9xf32>
    %743 = vector.multi_reduction <add>, %742, %cst_130 [0] : vector<3x9xf32> to vector<9xf32>
    %744 = vector.shape_cast %743 : vector<9xf32> to vector<1x9xf32>
    %cst_131 = arith.constant 3.000000e+00 : f32
    %745 = vector.broadcast %cst_131 : f32 to vector<1x9xf32>
    %746 = arith.divf %744, %745 : vector<1x9xf32>
    %cst_132 = arith.constant 9.99999974E-6 : f32
    %747 = vector.broadcast %cst_132 : f32 to vector<1x9xf32>
    %748 = arith.addf %746, %747 : vector<1x9xf32>
    %749 = math.rsqrt %748 : vector<1x9xf32>
    %750 = arith.mulf %749, %659 : vector<1x9xf32>
    %751 = vector.broadcast %750 : vector<1x9xf32> to vector<3x9xf32>
    %752 = arith.mulf %741, %751 : vector<3x9xf32>
    %753 = vector.broadcast %660 : vector<1x9xf32> to vector<3x9xf32>
    %754 = arith.addf %752, %753 : vector<3x9xf32>
    %c456 = arith.constant 456 : index
    %c0_133 = arith.constant 0 : index
    %755 = vector.load %arg5[%c456, %c0_133] : memref<632x16xf32, #tpu.memory_space<vmem>>, vector<9x6xf32>
    %c472 = arith.constant 472 : index
    %c0_134 = arith.constant 0 : index
    %756 = vector.load %arg5[%c472, %c0_134] : memref<632x16xf32, #tpu.memory_space<vmem>>, vector<1x6xf32>
    %c480 = arith.constant 480 : index
    %c0_135 = arith.constant 0 : index
    %757 = vector.load %arg5[%c480, %c0_135] : memref<632x16xf32, #tpu.memory_space<vmem>>, vector<1x6xf32>
    %c488 = arith.constant 488 : index
    %c0_136 = arith.constant 0 : index
    %758 = vector.load %arg5[%c488, %c0_136] : memref<632x16xf32, #tpu.memory_space<vmem>>, vector<1x6xf32>
    %759 = vector.extract_strided_slice %754 {offsets = [0, 0], sizes = [3, 1], strides = [1, 1]} : vector<3x9xf32> to vector<3x1xf32>
    %760 = vector.extract_strided_slice %755 {offsets = [0, 0], sizes = [1, 6], strides = [1, 1]} : vector<9x6xf32> to vector<1x6xf32>
    %761 = vector.broadcast %759 : vector<3x1xf32> to vector<3x6xf32>
    %762 = vector.broadcast %760 : vector<1x6xf32> to vector<3x6xf32>
    %763 = arith.mulf %761, %762 : vector<3x6xf32>
    %764 = vector.extract_strided_slice %754 {offsets = [0, 1], sizes = [3, 1], strides = [1, 1]} : vector<3x9xf32> to vector<3x1xf32>
    %765 = vector.extract_strided_slice %755 {offsets = [1, 0], sizes = [1, 6], strides = [1, 1]} : vector<9x6xf32> to vector<1x6xf32>
    %766 = vector.broadcast %764 : vector<3x1xf32> to vector<3x6xf32>
    %767 = vector.broadcast %765 : vector<1x6xf32> to vector<3x6xf32>
    %768 = arith.mulf %766, %767 : vector<3x6xf32>
    %769 = arith.addf %763, %768 : vector<3x6xf32>
    %770 = vector.extract_strided_slice %754 {offsets = [0, 2], sizes = [3, 1], strides = [1, 1]} : vector<3x9xf32> to vector<3x1xf32>
    %771 = vector.extract_strided_slice %755 {offsets = [2, 0], sizes = [1, 6], strides = [1, 1]} : vector<9x6xf32> to vector<1x6xf32>
    %772 = vector.broadcast %770 : vector<3x1xf32> to vector<3x6xf32>
    %773 = vector.broadcast %771 : vector<1x6xf32> to vector<3x6xf32>
    %774 = arith.mulf %772, %773 : vector<3x6xf32>
    %775 = arith.addf %769, %774 : vector<3x6xf32>
    %776 = vector.extract_strided_slice %754 {offsets = [0, 3], sizes = [3, 1], strides = [1, 1]} : vector<3x9xf32> to vector<3x1xf32>
    %777 = vector.extract_strided_slice %755 {offsets = [3, 0], sizes = [1, 6], strides = [1, 1]} : vector<9x6xf32> to vector<1x6xf32>
    %778 = vector.broadcast %776 : vector<3x1xf32> to vector<3x6xf32>
    %779 = vector.broadcast %777 : vector<1x6xf32> to vector<3x6xf32>
    %780 = arith.mulf %778, %779 : vector<3x6xf32>
    %781 = arith.addf %775, %780 : vector<3x6xf32>
    %782 = vector.extract_strided_slice %754 {offsets = [0, 4], sizes = [3, 1], strides = [1, 1]} : vector<3x9xf32> to vector<3x1xf32>
    %783 = vector.extract_strided_slice %755 {offsets = [4, 0], sizes = [1, 6], strides = [1, 1]} : vector<9x6xf32> to vector<1x6xf32>
    %784 = vector.broadcast %782 : vector<3x1xf32> to vector<3x6xf32>
    %785 = vector.broadcast %783 : vector<1x6xf32> to vector<3x6xf32>
    %786 = arith.mulf %784, %785 : vector<3x6xf32>
    %787 = arith.addf %781, %786 : vector<3x6xf32>
    %788 = vector.extract_strided_slice %754 {offsets = [0, 5], sizes = [3, 1], strides = [1, 1]} : vector<3x9xf32> to vector<3x1xf32>
    %789 = vector.extract_strided_slice %755 {offsets = [5, 0], sizes = [1, 6], strides = [1, 1]} : vector<9x6xf32> to vector<1x6xf32>
    %790 = vector.broadcast %788 : vector<3x1xf32> to vector<3x6xf32>
    %791 = vector.broadcast %789 : vector<1x6xf32> to vector<3x6xf32>
    %792 = arith.mulf %790, %791 : vector<3x6xf32>
    %793 = arith.addf %787, %792 : vector<3x6xf32>
    %794 = vector.extract_strided_slice %754 {offsets = [0, 6], sizes = [3, 1], strides = [1, 1]} : vector<3x9xf32> to vector<3x1xf32>
    %795 = vector.extract_strided_slice %755 {offsets = [6, 0], sizes = [1, 6], strides = [1, 1]} : vector<9x6xf32> to vector<1x6xf32>
    %796 = vector.broadcast %794 : vector<3x1xf32> to vector<3x6xf32>
    %797 = vector.broadcast %795 : vector<1x6xf32> to vector<3x6xf32>
    %798 = arith.mulf %796, %797 : vector<3x6xf32>
    %799 = arith.addf %793, %798 : vector<3x6xf32>
    %800 = vector.extract_strided_slice %754 {offsets = [0, 7], sizes = [3, 1], strides = [1, 1]} : vector<3x9xf32> to vector<3x1xf32>
    %801 = vector.extract_strided_slice %755 {offsets = [7, 0], sizes = [1, 6], strides = [1, 1]} : vector<9x6xf32> to vector<1x6xf32>
    %802 = vector.broadcast %800 : vector<3x1xf32> to vector<3x6xf32>
    %803 = vector.broadcast %801 : vector<1x6xf32> to vector<3x6xf32>
    %804 = arith.mulf %802, %803 : vector<3x6xf32>
    %805 = arith.addf %799, %804 : vector<3x6xf32>
    %806 = vector.extract_strided_slice %754 {offsets = [0, 8], sizes = [3, 1], strides = [1, 1]} : vector<3x9xf32> to vector<3x1xf32>
    %807 = vector.extract_strided_slice %755 {offsets = [8, 0], sizes = [1, 6], strides = [1, 1]} : vector<9x6xf32> to vector<1x6xf32>
    %808 = vector.broadcast %806 : vector<3x1xf32> to vector<3x6xf32>
    %809 = vector.broadcast %807 : vector<1x6xf32> to vector<3x6xf32>
    %810 = arith.mulf %808, %809 : vector<3x6xf32>
    %811 = arith.addf %805, %810 : vector<3x6xf32>
    %812 = vector.broadcast %756 : vector<1x6xf32> to vector<3x6xf32>
    %813 = arith.addf %811, %812 : vector<3x6xf32>
    %cst_137 = arith.constant 0.000000e+00 : f32
    %814 = vector.broadcast %cst_137 : f32 to vector<3x6xf32>
    %815 = arith.maximumf %813, %814 : vector<3x6xf32>
    %cst_138 = arith.constant dense<0.000000e+00> : vector<6xf32>
    %816 = vector.multi_reduction <add>, %815, %cst_138 [0] : vector<3x6xf32> to vector<6xf32>
    %817 = vector.shape_cast %816 : vector<6xf32> to vector<1x6xf32>
    %cst_139 = arith.constant 3.000000e+00 : f32
    %818 = vector.broadcast %cst_139 : f32 to vector<1x6xf32>
    %819 = arith.divf %817, %818 : vector<1x6xf32>
    %820 = vector.broadcast %819 : vector<1x6xf32> to vector<3x6xf32>
    %821 = arith.subf %815, %820 : vector<3x6xf32>
    %822 = arith.mulf %821, %821 : vector<3x6xf32>
    %cst_140 = arith.constant dense<0.000000e+00> : vector<6xf32>
    %823 = vector.multi_reduction <add>, %822, %cst_140 [0] : vector<3x6xf32> to vector<6xf32>
    %824 = vector.shape_cast %823 : vector<6xf32> to vector<1x6xf32>
    %cst_141 = arith.constant 3.000000e+00 : f32
    %825 = vector.broadcast %cst_141 : f32 to vector<1x6xf32>
    %826 = arith.divf %824, %825 : vector<1x6xf32>
    %cst_142 = arith.constant 9.99999974E-6 : f32
    %827 = vector.broadcast %cst_142 : f32 to vector<1x6xf32>
    %828 = arith.addf %826, %827 : vector<1x6xf32>
    %829 = math.rsqrt %828 : vector<1x6xf32>
    %830 = arith.mulf %829, %757 : vector<1x6xf32>
    %831 = vector.broadcast %830 : vector<1x6xf32> to vector<3x6xf32>
    %832 = arith.mulf %821, %831 : vector<3x6xf32>
    %833 = vector.broadcast %758 : vector<1x6xf32> to vector<3x6xf32>
    %834 = arith.addf %832, %833 : vector<3x6xf32>
    %c496 = arith.constant 496 : index
    %c0_143 = arith.constant 0 : index
    %835 = vector.load %arg5[%c496, %c0_143] : memref<632x16xf32, #tpu.memory_space<vmem>>, vector<6x1xf32>
    %c504 = arith.constant 504 : index
    %c0_144 = arith.constant 0 : index
    %836 = vector.load %arg5[%c504, %c0_144] : memref<632x16xf32, #tpu.memory_space<vmem>>, vector<1x1xf32>
    %837 = vector.extract_strided_slice %834 {offsets = [0, 0], sizes = [3, 1], strides = [1, 1]} : vector<3x6xf32> to vector<3x1xf32>
    %838 = vector.extract_strided_slice %835 {offsets = [0, 0], sizes = [1, 1], strides = [1, 1]} : vector<6x1xf32> to vector<1x1xf32>
    %839 = vector.broadcast %838 : vector<1x1xf32> to vector<3x1xf32>
    %840 = arith.mulf %837, %839 : vector<3x1xf32>
    %841 = vector.extract_strided_slice %834 {offsets = [0, 1], sizes = [3, 1], strides = [1, 1]} : vector<3x6xf32> to vector<3x1xf32>
    %842 = vector.extract_strided_slice %835 {offsets = [1, 0], sizes = [1, 1], strides = [1, 1]} : vector<6x1xf32> to vector<1x1xf32>
    %843 = vector.broadcast %842 : vector<1x1xf32> to vector<3x1xf32>
    %844 = arith.mulf %841, %843 : vector<3x1xf32>
    %845 = arith.addf %840, %844 : vector<3x1xf32>
    %846 = vector.extract_strided_slice %834 {offsets = [0, 2], sizes = [3, 1], strides = [1, 1]} : vector<3x6xf32> to vector<3x1xf32>
    %847 = vector.extract_strided_slice %835 {offsets = [2, 0], sizes = [1, 1], strides = [1, 1]} : vector<6x1xf32> to vector<1x1xf32>
    %848 = vector.broadcast %847 : vector<1x1xf32> to vector<3x1xf32>
    %849 = arith.mulf %846, %848 : vector<3x1xf32>
    %850 = arith.addf %845, %849 : vector<3x1xf32>
    %851 = vector.extract_strided_slice %834 {offsets = [0, 3], sizes = [3, 1], strides = [1, 1]} : vector<3x6xf32> to vector<3x1xf32>
    %852 = vector.extract_strided_slice %835 {offsets = [3, 0], sizes = [1, 1], strides = [1, 1]} : vector<6x1xf32> to vector<1x1xf32>
    %853 = vector.broadcast %852 : vector<1x1xf32> to vector<3x1xf32>
    %854 = arith.mulf %851, %853 : vector<3x1xf32>
    %855 = arith.addf %850, %854 : vector<3x1xf32>
    %856 = vector.extract_strided_slice %834 {offsets = [0, 4], sizes = [3, 1], strides = [1, 1]} : vector<3x6xf32> to vector<3x1xf32>
    %857 = vector.extract_strided_slice %835 {offsets = [4, 0], sizes = [1, 1], strides = [1, 1]} : vector<6x1xf32> to vector<1x1xf32>
    %858 = vector.broadcast %857 : vector<1x1xf32> to vector<3x1xf32>
    %859 = arith.mulf %856, %858 : vector<3x1xf32>
    %860 = arith.addf %855, %859 : vector<3x1xf32>
    %861 = vector.extract_strided_slice %834 {offsets = [0, 5], sizes = [3, 1], strides = [1, 1]} : vector<3x6xf32> to vector<3x1xf32>
    %862 = vector.extract_strided_slice %835 {offsets = [5, 0], sizes = [1, 1], strides = [1, 1]} : vector<6x1xf32> to vector<1x1xf32>
    %863 = vector.broadcast %862 : vector<1x1xf32> to vector<3x1xf32>
    %864 = arith.mulf %861, %863 : vector<3x1xf32>
    %865 = arith.addf %860, %864 : vector<3x1xf32>
    %866 = vector.broadcast %836 : vector<1x1xf32> to vector<3x1xf32>
    %867 = arith.addf %865, %866 : vector<3x1xf32>
    %c512 = arith.constant 512 : index
    %c0_145 = arith.constant 0 : index
    %868 = vector.load %arg5[%c512, %c0_145] : memref<632x16xf32, #tpu.memory_space<vmem>>, vector<6x16xf32>
    %c520 = arith.constant 520 : index
    %c0_146 = arith.constant 0 : index
    %869 = vector.load %arg5[%c520, %c0_146] : memref<632x16xf32, #tpu.memory_space<vmem>>, vector<1x16xf32>
    %c528 = arith.constant 528 : index
    %c0_147 = arith.constant 0 : index
    %870 = vector.load %arg5[%c528, %c0_147] : memref<632x16xf32, #tpu.memory_space<vmem>>, vector<1x16xf32>
    %c536 = arith.constant 536 : index
    %c0_148 = arith.constant 0 : index
    %871 = vector.load %arg5[%c536, %c0_148] : memref<632x16xf32, #tpu.memory_space<vmem>>, vector<1x16xf32>
    %872 = vector.extract_strided_slice %594 {offsets = [0, 0], sizes = [3, 1], strides = [1, 1]} : vector<3x6xf32> to vector<3x1xf32>
    %873 = vector.extract_strided_slice %868 {offsets = [0, 0], sizes = [1, 16], strides = [1, 1]} : vector<6x16xf32> to vector<1x16xf32>
    %874 = vector.broadcast %872 : vector<3x1xf32> to vector<3x16xf32>
    %875 = vector.broadcast %873 : vector<1x16xf32> to vector<3x16xf32>
    %876 = arith.mulf %874, %875 : vector<3x16xf32>
    %877 = vector.extract_strided_slice %594 {offsets = [0, 1], sizes = [3, 1], strides = [1, 1]} : vector<3x6xf32> to vector<3x1xf32>
    %878 = vector.extract_strided_slice %868 {offsets = [1, 0], sizes = [1, 16], strides = [1, 1]} : vector<6x16xf32> to vector<1x16xf32>
    %879 = vector.broadcast %877 : vector<3x1xf32> to vector<3x16xf32>
    %880 = vector.broadcast %878 : vector<1x16xf32> to vector<3x16xf32>
    %881 = arith.mulf %879, %880 : vector<3x16xf32>
    %882 = arith.addf %876, %881 : vector<3x16xf32>
    %883 = vector.extract_strided_slice %594 {offsets = [0, 2], sizes = [3, 1], strides = [1, 1]} : vector<3x6xf32> to vector<3x1xf32>
    %884 = vector.extract_strided_slice %868 {offsets = [2, 0], sizes = [1, 16], strides = [1, 1]} : vector<6x16xf32> to vector<1x16xf32>
    %885 = vector.broadcast %883 : vector<3x1xf32> to vector<3x16xf32>
    %886 = vector.broadcast %884 : vector<1x16xf32> to vector<3x16xf32>
    %887 = arith.mulf %885, %886 : vector<3x16xf32>
    %888 = arith.addf %882, %887 : vector<3x16xf32>
    %889 = vector.extract_strided_slice %594 {offsets = [0, 3], sizes = [3, 1], strides = [1, 1]} : vector<3x6xf32> to vector<3x1xf32>
    %890 = vector.extract_strided_slice %868 {offsets = [3, 0], sizes = [1, 16], strides = [1, 1]} : vector<6x16xf32> to vector<1x16xf32>
    %891 = vector.broadcast %889 : vector<3x1xf32> to vector<3x16xf32>
    %892 = vector.broadcast %890 : vector<1x16xf32> to vector<3x16xf32>
    %893 = arith.mulf %891, %892 : vector<3x16xf32>
    %894 = arith.addf %888, %893 : vector<3x16xf32>
    %895 = vector.extract_strided_slice %594 {offsets = [0, 4], sizes = [3, 1], strides = [1, 1]} : vector<3x6xf32> to vector<3x1xf32>
    %896 = vector.extract_strided_slice %868 {offsets = [4, 0], sizes = [1, 16], strides = [1, 1]} : vector<6x16xf32> to vector<1x16xf32>
    %897 = vector.broadcast %895 : vector<3x1xf32> to vector<3x16xf32>
    %898 = vector.broadcast %896 : vector<1x16xf32> to vector<3x16xf32>
    %899 = arith.mulf %897, %898 : vector<3x16xf32>
    %900 = arith.addf %894, %899 : vector<3x16xf32>
    %901 = vector.extract_strided_slice %594 {offsets = [0, 5], sizes = [3, 1], strides = [1, 1]} : vector<3x6xf32> to vector<3x1xf32>
    %902 = vector.extract_strided_slice %868 {offsets = [5, 0], sizes = [1, 16], strides = [1, 1]} : vector<6x16xf32> to vector<1x16xf32>
    %903 = vector.broadcast %901 : vector<3x1xf32> to vector<3x16xf32>
    %904 = vector.broadcast %902 : vector<1x16xf32> to vector<3x16xf32>
    %905 = arith.mulf %903, %904 : vector<3x16xf32>
    %906 = arith.addf %900, %905 : vector<3x16xf32>
    %907 = vector.broadcast %869 : vector<1x16xf32> to vector<3x16xf32>
    %908 = arith.addf %906, %907 : vector<3x16xf32>
    %cst_149 = arith.constant 0.000000e+00 : f32
    %909 = vector.broadcast %cst_149 : f32 to vector<3x16xf32>
    %910 = arith.maximumf %908, %909 : vector<3x16xf32>
    %cst_150 = arith.constant dense<0.000000e+00> : vector<16xf32>
    %911 = vector.multi_reduction <add>, %910, %cst_150 [0] : vector<3x16xf32> to vector<16xf32>
    %912 = vector.shape_cast %911 : vector<16xf32> to vector<1x16xf32>
    %cst_151 = arith.constant 3.000000e+00 : f32
    %913 = vector.broadcast %cst_151 : f32 to vector<1x16xf32>
    %914 = arith.divf %912, %913 : vector<1x16xf32>
    %915 = vector.broadcast %914 : vector<1x16xf32> to vector<3x16xf32>
    %916 = arith.subf %910, %915 : vector<3x16xf32>
    %917 = arith.mulf %916, %916 : vector<3x16xf32>
    %cst_152 = arith.constant dense<0.000000e+00> : vector<16xf32>
    %918 = vector.multi_reduction <add>, %917, %cst_152 [0] : vector<3x16xf32> to vector<16xf32>
    %919 = vector.shape_cast %918 : vector<16xf32> to vector<1x16xf32>
    %cst_153 = arith.constant 3.000000e+00 : f32
    %920 = vector.broadcast %cst_153 : f32 to vector<1x16xf32>
    %921 = arith.divf %919, %920 : vector<1x16xf32>
    %cst_154 = arith.constant 9.99999974E-6 : f32
    %922 = vector.broadcast %cst_154 : f32 to vector<1x16xf32>
    %923 = arith.addf %921, %922 : vector<1x16xf32>
    %924 = math.rsqrt %923 : vector<1x16xf32>
    %925 = arith.mulf %924, %870 : vector<1x16xf32>
    %926 = vector.broadcast %925 : vector<1x16xf32> to vector<3x16xf32>
    %927 = arith.mulf %916, %926 : vector<3x16xf32>
    %928 = vector.broadcast %871 : vector<1x16xf32> to vector<3x16xf32>
    %929 = arith.addf %927, %928 : vector<3x16xf32>
    %c544 = arith.constant 544 : index
    %c0_155 = arith.constant 0 : index
    %930 = vector.load %arg5[%c544, %c0_155] : memref<632x16xf32, #tpu.memory_space<vmem>>, vector<16x8xf32>
    %c560 = arith.constant 560 : index
    %c0_156 = arith.constant 0 : index
    %931 = vector.load %arg5[%c560, %c0_156] : memref<632x16xf32, #tpu.memory_space<vmem>>, vector<1x8xf32>
    %c568 = arith.constant 568 : index
    %c0_157 = arith.constant 0 : index
    %932 = vector.load %arg5[%c568, %c0_157] : memref<632x16xf32, #tpu.memory_space<vmem>>, vector<1x8xf32>
    %c576 = arith.constant 576 : index
    %c0_158 = arith.constant 0 : index
    %933 = vector.load %arg5[%c576, %c0_158] : memref<632x16xf32, #tpu.memory_space<vmem>>, vector<1x8xf32>
    %934 = vector.extract_strided_slice %929 {offsets = [0, 0], sizes = [3, 1], strides = [1, 1]} : vector<3x16xf32> to vector<3x1xf32>
    %935 = vector.extract_strided_slice %930 {offsets = [0, 0], sizes = [1, 8], strides = [1, 1]} : vector<16x8xf32> to vector<1x8xf32>
    %936 = vector.broadcast %934 : vector<3x1xf32> to vector<3x8xf32>
    %937 = vector.broadcast %935 : vector<1x8xf32> to vector<3x8xf32>
    %938 = arith.mulf %936, %937 : vector<3x8xf32>
    %939 = vector.extract_strided_slice %929 {offsets = [0, 1], sizes = [3, 1], strides = [1, 1]} : vector<3x16xf32> to vector<3x1xf32>
    %940 = vector.extract_strided_slice %930 {offsets = [1, 0], sizes = [1, 8], strides = [1, 1]} : vector<16x8xf32> to vector<1x8xf32>
    %941 = vector.broadcast %939 : vector<3x1xf32> to vector<3x8xf32>
    %942 = vector.broadcast %940 : vector<1x8xf32> to vector<3x8xf32>
    %943 = arith.mulf %941, %942 : vector<3x8xf32>
    %944 = arith.addf %938, %943 : vector<3x8xf32>
    %945 = vector.extract_strided_slice %929 {offsets = [0, 2], sizes = [3, 1], strides = [1, 1]} : vector<3x16xf32> to vector<3x1xf32>
    %946 = vector.extract_strided_slice %930 {offsets = [2, 0], sizes = [1, 8], strides = [1, 1]} : vector<16x8xf32> to vector<1x8xf32>
    %947 = vector.broadcast %945 : vector<3x1xf32> to vector<3x8xf32>
    %948 = vector.broadcast %946 : vector<1x8xf32> to vector<3x8xf32>
    %949 = arith.mulf %947, %948 : vector<3x8xf32>
    %950 = arith.addf %944, %949 : vector<3x8xf32>
    %951 = vector.extract_strided_slice %929 {offsets = [0, 3], sizes = [3, 1], strides = [1, 1]} : vector<3x16xf32> to vector<3x1xf32>
    %952 = vector.extract_strided_slice %930 {offsets = [3, 0], sizes = [1, 8], strides = [1, 1]} : vector<16x8xf32> to vector<1x8xf32>
    %953 = vector.broadcast %951 : vector<3x1xf32> to vector<3x8xf32>
    %954 = vector.broadcast %952 : vector<1x8xf32> to vector<3x8xf32>
    %955 = arith.mulf %953, %954 : vector<3x8xf32>
    %956 = arith.addf %950, %955 : vector<3x8xf32>
    %957 = vector.extract_strided_slice %929 {offsets = [0, 4], sizes = [3, 1], strides = [1, 1]} : vector<3x16xf32> to vector<3x1xf32>
    %958 = vector.extract_strided_slice %930 {offsets = [4, 0], sizes = [1, 8], strides = [1, 1]} : vector<16x8xf32> to vector<1x8xf32>
    %959 = vector.broadcast %957 : vector<3x1xf32> to vector<3x8xf32>
    %960 = vector.broadcast %958 : vector<1x8xf32> to vector<3x8xf32>
    %961 = arith.mulf %959, %960 : vector<3x8xf32>
    %962 = arith.addf %956, %961 : vector<3x8xf32>
    %963 = vector.extract_strided_slice %929 {offsets = [0, 5], sizes = [3, 1], strides = [1, 1]} : vector<3x16xf32> to vector<3x1xf32>
    %964 = vector.extract_strided_slice %930 {offsets = [5, 0], sizes = [1, 8], strides = [1, 1]} : vector<16x8xf32> to vector<1x8xf32>
    %965 = vector.broadcast %963 : vector<3x1xf32> to vector<3x8xf32>
    %966 = vector.broadcast %964 : vector<1x8xf32> to vector<3x8xf32>
    %967 = arith.mulf %965, %966 : vector<3x8xf32>
    %968 = arith.addf %962, %967 : vector<3x8xf32>
    %969 = vector.extract_strided_slice %929 {offsets = [0, 6], sizes = [3, 1], strides = [1, 1]} : vector<3x16xf32> to vector<3x1xf32>
    %970 = vector.extract_strided_slice %930 {offsets = [6, 0], sizes = [1, 8], strides = [1, 1]} : vector<16x8xf32> to vector<1x8xf32>
    %971 = vector.broadcast %969 : vector<3x1xf32> to vector<3x8xf32>
    %972 = vector.broadcast %970 : vector<1x8xf32> to vector<3x8xf32>
    %973 = arith.mulf %971, %972 : vector<3x8xf32>
    %974 = arith.addf %968, %973 : vector<3x8xf32>
    %975 = vector.extract_strided_slice %929 {offsets = [0, 7], sizes = [3, 1], strides = [1, 1]} : vector<3x16xf32> to vector<3x1xf32>
    %976 = vector.extract_strided_slice %930 {offsets = [7, 0], sizes = [1, 8], strides = [1, 1]} : vector<16x8xf32> to vector<1x8xf32>
    %977 = vector.broadcast %975 : vector<3x1xf32> to vector<3x8xf32>
    %978 = vector.broadcast %976 : vector<1x8xf32> to vector<3x8xf32>
    %979 = arith.mulf %977, %978 : vector<3x8xf32>
    %980 = arith.addf %974, %979 : vector<3x8xf32>
    %981 = vector.extract_strided_slice %929 {offsets = [0, 8], sizes = [3, 1], strides = [1, 1]} : vector<3x16xf32> to vector<3x1xf32>
    %982 = vector.extract_strided_slice %930 {offsets = [8, 0], sizes = [1, 8], strides = [1, 1]} : vector<16x8xf32> to vector<1x8xf32>
    %983 = vector.broadcast %981 : vector<3x1xf32> to vector<3x8xf32>
    %984 = vector.broadcast %982 : vector<1x8xf32> to vector<3x8xf32>
    %985 = arith.mulf %983, %984 : vector<3x8xf32>
    %986 = arith.addf %980, %985 : vector<3x8xf32>
    %987 = vector.extract_strided_slice %929 {offsets = [0, 9], sizes = [3, 1], strides = [1, 1]} : vector<3x16xf32> to vector<3x1xf32>
    %988 = vector.extract_strided_slice %930 {offsets = [9, 0], sizes = [1, 8], strides = [1, 1]} : vector<16x8xf32> to vector<1x8xf32>
    %989 = vector.broadcast %987 : vector<3x1xf32> to vector<3x8xf32>
    %990 = vector.broadcast %988 : vector<1x8xf32> to vector<3x8xf32>
    %991 = arith.mulf %989, %990 : vector<3x8xf32>
    %992 = arith.addf %986, %991 : vector<3x8xf32>
    %993 = vector.extract_strided_slice %929 {offsets = [0, 10], sizes = [3, 1], strides = [1, 1]} : vector<3x16xf32> to vector<3x1xf32>
    %994 = vector.extract_strided_slice %930 {offsets = [10, 0], sizes = [1, 8], strides = [1, 1]} : vector<16x8xf32> to vector<1x8xf32>
    %995 = vector.broadcast %993 : vector<3x1xf32> to vector<3x8xf32>
    %996 = vector.broadcast %994 : vector<1x8xf32> to vector<3x8xf32>
    %997 = arith.mulf %995, %996 : vector<3x8xf32>
    %998 = arith.addf %992, %997 : vector<3x8xf32>
    %999 = vector.extract_strided_slice %929 {offsets = [0, 11], sizes = [3, 1], strides = [1, 1]} : vector<3x16xf32> to vector<3x1xf32>
    %1000 = vector.extract_strided_slice %930 {offsets = [11, 0], sizes = [1, 8], strides = [1, 1]} : vector<16x8xf32> to vector<1x8xf32>
    %1001 = vector.broadcast %999 : vector<3x1xf32> to vector<3x8xf32>
    %1002 = vector.broadcast %1000 : vector<1x8xf32> to vector<3x8xf32>
    %1003 = arith.mulf %1001, %1002 : vector<3x8xf32>
    %1004 = arith.addf %998, %1003 : vector<3x8xf32>
    %1005 = vector.extract_strided_slice %929 {offsets = [0, 12], sizes = [3, 1], strides = [1, 1]} : vector<3x16xf32> to vector<3x1xf32>
    %1006 = vector.extract_strided_slice %930 {offsets = [12, 0], sizes = [1, 8], strides = [1, 1]} : vector<16x8xf32> to vector<1x8xf32>
    %1007 = vector.broadcast %1005 : vector<3x1xf32> to vector<3x8xf32>
    %1008 = vector.broadcast %1006 : vector<1x8xf32> to vector<3x8xf32>
    %1009 = arith.mulf %1007, %1008 : vector<3x8xf32>
    %1010 = arith.addf %1004, %1009 : vector<3x8xf32>
    %1011 = vector.extract_strided_slice %929 {offsets = [0, 13], sizes = [3, 1], strides = [1, 1]} : vector<3x16xf32> to vector<3x1xf32>
    %1012 = vector.extract_strided_slice %930 {offsets = [13, 0], sizes = [1, 8], strides = [1, 1]} : vector<16x8xf32> to vector<1x8xf32>
    %1013 = vector.broadcast %1011 : vector<3x1xf32> to vector<3x8xf32>
    %1014 = vector.broadcast %1012 : vector<1x8xf32> to vector<3x8xf32>
    %1015 = arith.mulf %1013, %1014 : vector<3x8xf32>
    %1016 = arith.addf %1010, %1015 : vector<3x8xf32>
    %1017 = vector.extract_strided_slice %929 {offsets = [0, 14], sizes = [3, 1], strides = [1, 1]} : vector<3x16xf32> to vector<3x1xf32>
    %1018 = vector.extract_strided_slice %930 {offsets = [14, 0], sizes = [1, 8], strides = [1, 1]} : vector<16x8xf32> to vector<1x8xf32>
    %1019 = vector.broadcast %1017 : vector<3x1xf32> to vector<3x8xf32>
    %1020 = vector.broadcast %1018 : vector<1x8xf32> to vector<3x8xf32>
    %1021 = arith.mulf %1019, %1020 : vector<3x8xf32>
    %1022 = arith.addf %1016, %1021 : vector<3x8xf32>
    %1023 = vector.extract_strided_slice %929 {offsets = [0, 15], sizes = [3, 1], strides = [1, 1]} : vector<3x16xf32> to vector<3x1xf32>
    %1024 = vector.extract_strided_slice %930 {offsets = [15, 0], sizes = [1, 8], strides = [1, 1]} : vector<16x8xf32> to vector<1x8xf32>
    %1025 = vector.broadcast %1023 : vector<3x1xf32> to vector<3x8xf32>
    %1026 = vector.broadcast %1024 : vector<1x8xf32> to vector<3x8xf32>
    %1027 = arith.mulf %1025, %1026 : vector<3x8xf32>
    %1028 = arith.addf %1022, %1027 : vector<3x8xf32>
    %1029 = vector.broadcast %931 : vector<1x8xf32> to vector<3x8xf32>
    %1030 = arith.addf %1028, %1029 : vector<3x8xf32>
    %cst_159 = arith.constant 0.000000e+00 : f32
    %1031 = vector.broadcast %cst_159 : f32 to vector<3x8xf32>
    %1032 = arith.maximumf %1030, %1031 : vector<3x8xf32>
    %cst_160 = arith.constant dense<0.000000e+00> : vector<8xf32>
    %1033 = vector.multi_reduction <add>, %1032, %cst_160 [0] : vector<3x8xf32> to vector<8xf32>
    %1034 = vector.shape_cast %1033 : vector<8xf32> to vector<1x8xf32>
    %cst_161 = arith.constant 3.000000e+00 : f32
    %1035 = vector.broadcast %cst_161 : f32 to vector<1x8xf32>
    %1036 = arith.divf %1034, %1035 : vector<1x8xf32>
    %1037 = vector.broadcast %1036 : vector<1x8xf32> to vector<3x8xf32>
    %1038 = arith.subf %1032, %1037 : vector<3x8xf32>
    %1039 = arith.mulf %1038, %1038 : vector<3x8xf32>
    %cst_162 = arith.constant dense<0.000000e+00> : vector<8xf32>
    %1040 = vector.multi_reduction <add>, %1039, %cst_162 [0] : vector<3x8xf32> to vector<8xf32>
    %1041 = vector.shape_cast %1040 : vector<8xf32> to vector<1x8xf32>
    %cst_163 = arith.constant 3.000000e+00 : f32
    %1042 = vector.broadcast %cst_163 : f32 to vector<1x8xf32>
    %1043 = arith.divf %1041, %1042 : vector<1x8xf32>
    %cst_164 = arith.constant 9.99999974E-6 : f32
    %1044 = vector.broadcast %cst_164 : f32 to vector<1x8xf32>
    %1045 = arith.addf %1043, %1044 : vector<1x8xf32>
    %1046 = math.rsqrt %1045 : vector<1x8xf32>
    %1047 = arith.mulf %1046, %932 : vector<1x8xf32>
    %1048 = vector.broadcast %1047 : vector<1x8xf32> to vector<3x8xf32>
    %1049 = arith.mulf %1038, %1048 : vector<3x8xf32>
    %1050 = vector.broadcast %933 : vector<1x8xf32> to vector<3x8xf32>
    %1051 = arith.addf %1049, %1050 : vector<3x8xf32>
    %c584 = arith.constant 584 : index
    %c0_165 = arith.constant 0 : index
    %1052 = vector.load %arg5[%c584, %c0_165] : memref<632x16xf32, #tpu.memory_space<vmem>>, vector<8x4xf32>
    %c592 = arith.constant 592 : index
    %c0_166 = arith.constant 0 : index
    %1053 = vector.load %arg5[%c592, %c0_166] : memref<632x16xf32, #tpu.memory_space<vmem>>, vector<1x4xf32>
    %c600 = arith.constant 600 : index
    %c0_167 = arith.constant 0 : index
    %1054 = vector.load %arg5[%c600, %c0_167] : memref<632x16xf32, #tpu.memory_space<vmem>>, vector<1x4xf32>
    %c608 = arith.constant 608 : index
    %c0_168 = arith.constant 0 : index
    %1055 = vector.load %arg5[%c608, %c0_168] : memref<632x16xf32, #tpu.memory_space<vmem>>, vector<1x4xf32>
    %1056 = vector.extract_strided_slice %1051 {offsets = [0, 0], sizes = [3, 1], strides = [1, 1]} : vector<3x8xf32> to vector<3x1xf32>
    %1057 = vector.extract_strided_slice %1052 {offsets = [0, 0], sizes = [1, 4], strides = [1, 1]} : vector<8x4xf32> to vector<1x4xf32>
    %1058 = vector.broadcast %1056 : vector<3x1xf32> to vector<3x4xf32>
    %1059 = vector.broadcast %1057 : vector<1x4xf32> to vector<3x4xf32>
    %1060 = arith.mulf %1058, %1059 : vector<3x4xf32>
    %1061 = vector.extract_strided_slice %1051 {offsets = [0, 1], sizes = [3, 1], strides = [1, 1]} : vector<3x8xf32> to vector<3x1xf32>
    %1062 = vector.extract_strided_slice %1052 {offsets = [1, 0], sizes = [1, 4], strides = [1, 1]} : vector<8x4xf32> to vector<1x4xf32>
    %1063 = vector.broadcast %1061 : vector<3x1xf32> to vector<3x4xf32>
    %1064 = vector.broadcast %1062 : vector<1x4xf32> to vector<3x4xf32>
    %1065 = arith.mulf %1063, %1064 : vector<3x4xf32>
    %1066 = arith.addf %1060, %1065 : vector<3x4xf32>
    %1067 = vector.extract_strided_slice %1051 {offsets = [0, 2], sizes = [3, 1], strides = [1, 1]} : vector<3x8xf32> to vector<3x1xf32>
    %1068 = vector.extract_strided_slice %1052 {offsets = [2, 0], sizes = [1, 4], strides = [1, 1]} : vector<8x4xf32> to vector<1x4xf32>
    %1069 = vector.broadcast %1067 : vector<3x1xf32> to vector<3x4xf32>
    %1070 = vector.broadcast %1068 : vector<1x4xf32> to vector<3x4xf32>
    %1071 = arith.mulf %1069, %1070 : vector<3x4xf32>
    %1072 = arith.addf %1066, %1071 : vector<3x4xf32>
    %1073 = vector.extract_strided_slice %1051 {offsets = [0, 3], sizes = [3, 1], strides = [1, 1]} : vector<3x8xf32> to vector<3x1xf32>
    %1074 = vector.extract_strided_slice %1052 {offsets = [3, 0], sizes = [1, 4], strides = [1, 1]} : vector<8x4xf32> to vector<1x4xf32>
    %1075 = vector.broadcast %1073 : vector<3x1xf32> to vector<3x4xf32>
    %1076 = vector.broadcast %1074 : vector<1x4xf32> to vector<3x4xf32>
    %1077 = arith.mulf %1075, %1076 : vector<3x4xf32>
    %1078 = arith.addf %1072, %1077 : vector<3x4xf32>
    %1079 = vector.extract_strided_slice %1051 {offsets = [0, 4], sizes = [3, 1], strides = [1, 1]} : vector<3x8xf32> to vector<3x1xf32>
    %1080 = vector.extract_strided_slice %1052 {offsets = [4, 0], sizes = [1, 4], strides = [1, 1]} : vector<8x4xf32> to vector<1x4xf32>
    %1081 = vector.broadcast %1079 : vector<3x1xf32> to vector<3x4xf32>
    %1082 = vector.broadcast %1080 : vector<1x4xf32> to vector<3x4xf32>
    %1083 = arith.mulf %1081, %1082 : vector<3x4xf32>
    %1084 = arith.addf %1078, %1083 : vector<3x4xf32>
    %1085 = vector.extract_strided_slice %1051 {offsets = [0, 5], sizes = [3, 1], strides = [1, 1]} : vector<3x8xf32> to vector<3x1xf32>
    %1086 = vector.extract_strided_slice %1052 {offsets = [5, 0], sizes = [1, 4], strides = [1, 1]} : vector<8x4xf32> to vector<1x4xf32>
    %1087 = vector.broadcast %1085 : vector<3x1xf32> to vector<3x4xf32>
    %1088 = vector.broadcast %1086 : vector<1x4xf32> to vector<3x4xf32>
    %1089 = arith.mulf %1087, %1088 : vector<3x4xf32>
    %1090 = arith.addf %1084, %1089 : vector<3x4xf32>
    %1091 = vector.extract_strided_slice %1051 {offsets = [0, 6], sizes = [3, 1], strides = [1, 1]} : vector<3x8xf32> to vector<3x1xf32>
    %1092 = vector.extract_strided_slice %1052 {offsets = [6, 0], sizes = [1, 4], strides = [1, 1]} : vector<8x4xf32> to vector<1x4xf32>
    %1093 = vector.broadcast %1091 : vector<3x1xf32> to vector<3x4xf32>
    %1094 = vector.broadcast %1092 : vector<1x4xf32> to vector<3x4xf32>
    %1095 = arith.mulf %1093, %1094 : vector<3x4xf32>
    %1096 = arith.addf %1090, %1095 : vector<3x4xf32>
    %1097 = vector.extract_strided_slice %1051 {offsets = [0, 7], sizes = [3, 1], strides = [1, 1]} : vector<3x8xf32> to vector<3x1xf32>
    %1098 = vector.extract_strided_slice %1052 {offsets = [7, 0], sizes = [1, 4], strides = [1, 1]} : vector<8x4xf32> to vector<1x4xf32>
    %1099 = vector.broadcast %1097 : vector<3x1xf32> to vector<3x4xf32>
    %1100 = vector.broadcast %1098 : vector<1x4xf32> to vector<3x4xf32>
    %1101 = arith.mulf %1099, %1100 : vector<3x4xf32>
    %1102 = arith.addf %1096, %1101 : vector<3x4xf32>
    %1103 = vector.broadcast %1053 : vector<1x4xf32> to vector<3x4xf32>
    %1104 = arith.addf %1102, %1103 : vector<3x4xf32>
    %cst_169 = arith.constant 0.000000e+00 : f32
    %1105 = vector.broadcast %cst_169 : f32 to vector<3x4xf32>
    %1106 = arith.maximumf %1104, %1105 : vector<3x4xf32>
    %cst_170 = arith.constant dense<0.000000e+00> : vector<4xf32>
    %1107 = vector.multi_reduction <add>, %1106, %cst_170 [0] : vector<3x4xf32> to vector<4xf32>
    %1108 = vector.shape_cast %1107 : vector<4xf32> to vector<1x4xf32>
    %cst_171 = arith.constant 3.000000e+00 : f32
    %1109 = vector.broadcast %cst_171 : f32 to vector<1x4xf32>
    %1110 = arith.divf %1108, %1109 : vector<1x4xf32>
    %1111 = vector.broadcast %1110 : vector<1x4xf32> to vector<3x4xf32>
    %1112 = arith.subf %1106, %1111 : vector<3x4xf32>
    %1113 = arith.mulf %1112, %1112 : vector<3x4xf32>
    %cst_172 = arith.constant dense<0.000000e+00> : vector<4xf32>
    %1114 = vector.multi_reduction <add>, %1113, %cst_172 [0] : vector<3x4xf32> to vector<4xf32>
    %1115 = vector.shape_cast %1114 : vector<4xf32> to vector<1x4xf32>
    %cst_173 = arith.constant 3.000000e+00 : f32
    %1116 = vector.broadcast %cst_173 : f32 to vector<1x4xf32>
    %1117 = arith.divf %1115, %1116 : vector<1x4xf32>
    %cst_174 = arith.constant 9.99999974E-6 : f32
    %1118 = vector.broadcast %cst_174 : f32 to vector<1x4xf32>
    %1119 = arith.addf %1117, %1118 : vector<1x4xf32>
    %1120 = math.rsqrt %1119 : vector<1x4xf32>
    %1121 = arith.mulf %1120, %1054 : vector<1x4xf32>
    %1122 = vector.broadcast %1121 : vector<1x4xf32> to vector<3x4xf32>
    %1123 = arith.mulf %1112, %1122 : vector<3x4xf32>
    %1124 = vector.broadcast %1055 : vector<1x4xf32> to vector<3x4xf32>
    %1125 = arith.addf %1123, %1124 : vector<3x4xf32>
    %c616 = arith.constant 616 : index
    %c0_175 = arith.constant 0 : index
    %1126 = vector.load %arg5[%c616, %c0_175] : memref<632x16xf32, #tpu.memory_space<vmem>>, vector<4x2xf32>
    %c624 = arith.constant 624 : index
    %c0_176 = arith.constant 0 : index
    %1127 = vector.load %arg5[%c624, %c0_176] : memref<632x16xf32, #tpu.memory_space<vmem>>, vector<1x2xf32>
    %1128 = vector.extract_strided_slice %1125 {offsets = [0, 0], sizes = [3, 1], strides = [1, 1]} : vector<3x4xf32> to vector<3x1xf32>
    %1129 = vector.extract_strided_slice %1126 {offsets = [0, 0], sizes = [1, 2], strides = [1, 1]} : vector<4x2xf32> to vector<1x2xf32>
    %1130 = vector.broadcast %1128 : vector<3x1xf32> to vector<3x2xf32>
    %1131 = vector.broadcast %1129 : vector<1x2xf32> to vector<3x2xf32>
    %1132 = arith.mulf %1130, %1131 : vector<3x2xf32>
    %1133 = vector.extract_strided_slice %1125 {offsets = [0, 1], sizes = [3, 1], strides = [1, 1]} : vector<3x4xf32> to vector<3x1xf32>
    %1134 = vector.extract_strided_slice %1126 {offsets = [1, 0], sizes = [1, 2], strides = [1, 1]} : vector<4x2xf32> to vector<1x2xf32>
    %1135 = vector.broadcast %1133 : vector<3x1xf32> to vector<3x2xf32>
    %1136 = vector.broadcast %1134 : vector<1x2xf32> to vector<3x2xf32>
    %1137 = arith.mulf %1135, %1136 : vector<3x2xf32>
    %1138 = arith.addf %1132, %1137 : vector<3x2xf32>
    %1139 = vector.extract_strided_slice %1125 {offsets = [0, 2], sizes = [3, 1], strides = [1, 1]} : vector<3x4xf32> to vector<3x1xf32>
    %1140 = vector.extract_strided_slice %1126 {offsets = [2, 0], sizes = [1, 2], strides = [1, 1]} : vector<4x2xf32> to vector<1x2xf32>
    %1141 = vector.broadcast %1139 : vector<3x1xf32> to vector<3x2xf32>
    %1142 = vector.broadcast %1140 : vector<1x2xf32> to vector<3x2xf32>
    %1143 = arith.mulf %1141, %1142 : vector<3x2xf32>
    %1144 = arith.addf %1138, %1143 : vector<3x2xf32>
    %1145 = vector.extract_strided_slice %1125 {offsets = [0, 3], sizes = [3, 1], strides = [1, 1]} : vector<3x4xf32> to vector<3x1xf32>
    %1146 = vector.extract_strided_slice %1126 {offsets = [3, 0], sizes = [1, 2], strides = [1, 1]} : vector<4x2xf32> to vector<1x2xf32>
    %1147 = vector.broadcast %1145 : vector<3x1xf32> to vector<3x2xf32>
    %1148 = vector.broadcast %1146 : vector<1x2xf32> to vector<3x2xf32>
    %1149 = arith.mulf %1147, %1148 : vector<3x2xf32>
    %1150 = arith.addf %1144, %1149 : vector<3x2xf32>
    %1151 = vector.broadcast %1127 : vector<1x2xf32> to vector<3x2xf32>
    %1152 = arith.addf %1150, %1151 : vector<3x2xf32>
    %cst_177 = arith.constant 0.000000e+00 : f32
    %1153 = vector.broadcast %cst_177 : f32 to vector<3x125xf32>
    %1154 = tpu.concatenate %867, %1152, %1153 in 1 : vector<3x1xf32>, vector<3x2xf32>, vector<3x125xf32> -> vector<3x128xf32>
    %c0_178 = arith.constant 0 : index
    %c0_179 = arith.constant 0 : index
    %1155 = vector.load %arg6[%c0_178, %c0_179] : memref<3x128xf32, #tpu.memory_space<vmem>>, vector<3x128xf32>
    tpu.vector_store %arg6[%c0_178, %c0_179], %1154 {strides = array<i32>} : memref<3x128xf32, #tpu.memory_space<vmem>>, vector<3x128xf32>,
    return
  }
}

</mosaic_0001>

<bundles_post_ra>
// kernel: tpu_custom_call.1
= control target key start
LH: loop header
LB: loop body
LE: loop exit
PB: predicated region body
PF: predicated region fallthrough
CT: control target
= control target key end

     0   :  { %v2751_v1 = vmov 0   ;;  %v2752_v2 = vmov 2   ;;  %s3524_s0 = inlined_call_operand.vmem [shape: f32[3,10], index: 0, kind: input, shape index: {}]   ;;  %s3525_s1 = inlined_call_operand.vmem [shape: f32[1,20], index: 1, kind: input, shape index: {}]   ;;  %s3526_s2 = inlined_call_operand.vmem [shape: s32[1,20], index: 2, kind: input, shape index: {}]   ;;  %s3527_s3 = inlined_call_operand.vmem [shape: s32[1,20], index: 3, kind: input, shape index: {}]   ;;  %s3528_s4 = inlined_call_operand.vmem [shape: s32[1,10], index: 4, kind: input, shape index: {}]   ;;  %s3529_s5 = inlined_call_operand.vmem [shape: f32[632,16], index: 5, kind: input, shape index: {}]   ;;  %s3530_s6 = inlined_call_operand.hbm [shape: f32[3,128], index: 6, kind: output, shape index: {}]  }
   0x1   :  { %v55_v0 = vld [vmem:[%s3529_s5] sm:$0x7]  ;;  %2582 = vset.pattern.permute.xlu0 %v2751_v1  ;;  %2584 = vset.pattern.permute.xlu1 %v2752_v2 }
   0x2   :  { %11 = vsyncpa [#allocation3], 0  ;;  %65 = vperm.xlu0 %2582, %v55_v0   ;;  %84 = vperm.xlu1 %2584, %v55_v0   ;;  %v56_v3 = vld [vmem:[%s3529_s5 + $0x8] sm:$0x7]  ;;  %v2753_v4 = vmov 1   ;;  %v30_v5 = vlaneseq  ;;  %vm99_vm0 = vcmask 75776  }
   0x3   :  { %v25_v10 = vld [vmem:[%s3524_s0] sm:$0x7]  ;;  %v60_v25 = vld [vmem:[%s3529_s5 + $0x28] sm:$0xf]  ;;  %v57_v36 = vld [vmem:[%s3529_s5 + $0x10] sm:$0x7] }
   0x4   :  { %v2826_v6 = vshrl.u32 %v30_v5, 7  ;;  %v59_v31 = vld [vmem:[%s3529_s5 + $0x20] sm:$0xf]  ;;  %v2754_v39 = vmov 0.0   ;;  %vm260_vm3 = vcmask 1044480   ;;  %vm2755_vm4 = vmmov 0  }
   0x5   :  { %v2439_v37 = vld [vmem:[%s3526_s2] ss:$0 sm:$0xff]  ;;  %2493 = vmatprep.subr.bf16.mxu0 %v2754_v39  ;;  %2499 = vmatprep.subr.bf16.mxu1 %v2754_v39  ;;  %v58_v45 = vld [vmem:[%s3529_s5 + $0x18] sm:$0x7]  ;;  %vm144_vm5 = vcmask 158720   ;;  %vm256_vm6 = vcmask 80896  }
   0x6   :  { %2583 = vset.pattern.permute.xlu0 %v2753_v4  ;;  %2585 = vset.pattern.permute.xlu1 %v2751_v1  ;;  %v2829_v7 = vsub.s32 0, %v2826_v6  ;;  %v2832_v8 = vsub.s32 1, %v2826_v6  ;;  %v2835_v9 = vsub.s32 2, %v2826_v6  ;;  %v2852_v35 = vadd.s32 8, %v2826_v6  ;;  %v2445_v46 = vld [vmem:[%s3525_s1] ss:$0 sm:$0xff] }
   0x7   :  { %74 = vperm.xlu0 %2583, %v55_v0   ;;  %95 = vperm.xlu1 %2585, %v56_v3   ;;  %vm37_vm1 = vcmp.eq.s32.totalorder %v2826_v6, %v2439_v37  ;;  %v62_v62 = vld [vmem:[%s3529_s5 + $0x38] sm:$0xf]  ;;  %v172_v63 = vld [vmem:[%s3529_s5 + $0x48] sm:$0x1]  ;;  %v173_v0 = vld [vmem:[%s3529_s5 + $0x50] sm:$0xff]  ;;  %vm369_vm9 = vcmask 162816  }
   0x8   :  { %v71_v12 = vrot.slane %v25_v10, %v2829_v7  ;;  %v80_v13 = vrot.slane %v25_v10, %v2832_v8  ;;  %v90_v14 = vrot.slane %v25_v10, %v2835_v9  ;;  %vm38_vm2 = vcmp.eq.s32.totalorder %v2852_v35, %v2439_v37  ;;  %2495 = vmatprep.mubr.msk.bf16.mxu0 %vm2755_vm4, %v2754_v39  ;;  %v175_v3 = vld [vmem:[%s3529_s5 + $0x60] sm:$0x7]  ;;  %s2769_s24 = smov 3   ;;  %s2770_s25 = smov 1  }
   0x9   :  { %v2440_v40 = vsel %vm37_vm1, 1.0, %v2754_v39  ;;  %v2441_v41 = vsel %vm38_vm2, 1.0, %v2754_v39  ;;  %2501 = vmatprep.mubr.msk.bf16.mxu1 %vm2755_vm4, %v2754_v39  ;;  %vm326_vm10 = vcmask 1041408   ;;  %vm1478_vm12 = vcmask 7168   ;;  %s2771_s26 = smov 2   ;;  %s2772_s13 = smov 4  }
   0xa   :  { %v43_v43 = vpack.c.bf16 %v2441_v41, %v2440_v40  ;;  %vm1480_vm13 = vcmask 15360   ;;  %vm1482_vm14 = vcmask 23552   ;;  %vm1486_vm1 = vcmask 39936   ;;  %s2773_s14 = smov 5   ;;  %s2774_s18 = smov 127  }
   0xb   :  { %2586 = vset.pattern.permute.xlu0 %v2751_v1  ;;  %vm1558_vm2 = vcmask 92160   ;;  %s2775_s19 = smov 126   ;;  %s2776_s20 = smov 125  }
   0xc   :  { %v2866_v44 = vsel %vm260_vm3, %v43_v43, 0  ;;  %vm2014_vm3 = vcmask 124928   ;;  %s2778_s0 = smov 124   ;;  %s2779_s28 = smov [#allocation2]  }
   0xd   :  { %2494 = vmatpush3.bf16.msra.mxu0 %v2866_v44 }
   0xe   :  { %2505 = vmatprep.subr.bf16.mxu0 %v2754_v39 }
  0x7d   :  { %v66_v11 = vpop.permute.xlu0 %65  ;;  %v85_v15 = vpop.permute.xlu1 %84 }
  0x7e   :  { %v72_v17 = vmul.f32 %v71_v12, %v66_v11  ;;  %v91_v19 = vmul.f32 %v90_v14, %v85_v15 }
  0x82   :  { %v75_v16 = vpop.permute.xlu0 %74  ;;  %v96_v21 = vpop.permute.xlu1 %95 }
  0x83   :  { %v81_v18 = vmul.f32 %v80_v13, %v75_v16  ;;  %v61_v16 = vld [vmem:[%s3529_s5 + $0x30] sm:$0xf] }
  0x85   :  { %v82_v20 = vadd.f32 %v81_v18, %v72_v17 }
  0x87   :  { %v92_v22 = vadd.f32 %v91_v19, %v82_v20  ;;  %v171_v19 = vld [vmem:[%s3529_s5 + $0x40] sm:$0xff]  ;;  %v2756_v20 = vmov 3  }
  0x89   :  { %v98_v23 = vadd.f32 %v96_v21, %v92_v22  ;;  %v2442_v21 = vld [vmem:[%s3527_s3] ss:$0 sm:$0xff] }
  0x8a   :  { %vm48_vm7 = vcmp.eq.s32.totalorder %v2826_v6, %v2442_v21  ;;  %vm49_vm8 = vcmp.eq.s32.totalorder %v2852_v35, %v2442_v21 }
  0x8b   :  { %v100_v24 = vsel %vm99_vm0, %v98_v23, 0.0  ;;  %v2443_v22 = vsel %vm48_vm7, 1.0, %v2754_v39  ;;  %vm1855_vm7 = vcmask 43008  }
  0x8c   :  { %101 = vadd.xlane.f32.xlu1 %v100_v24  ;;  %v174_v24 = vld [vmem:[%s3529_s5 + $0x58] sm:$0x1] }
  0x9d   :  { %140 = vperm.xlu1 %2585, %v60_v25  }
 0x115   :  { %v102_v26 = vpop.xlane.xlu1 %101 }
 0x116   :  { %v104_v27 = vmul.f32 0.1, %v102_v26 }
 0x118   :  { %v105_v28 = vsub.f32 %v98_v23, %v104_v27  ;;  %v2444_v23 = vsel %vm49_vm8, 1.0, %v2754_v39  ;;  %v176_v27 = vld [vmem:[%s3529_s5 + $0x68] sm:$0x7] }
 0x119   :  { %v141_v49 = vpop.permute.xlu1 %140  ;;  %v54_v25 = vpack.c.bf16 %v2444_v23, %v2443_v22 }
 0x11a   :  { %v106_v29 = vmul.f32 %v105_v28, %v105_v28 }
 0x11b   :  { %v2936_v26 = vsel %vm369_vm9, %v54_v25, 0 }
 0x11c   :  { %v107_v30 = vsel %vm99_vm0, %v106_v29, 0.0  ;;  %2500 = vmatpush3.bf16.xpose.msra.mxu1 %v2936_v26 }
 0x11d   :  { %108 = vadd.xlane.f32.xlu0 %v107_v30  ;;  %2511 = vmatprep.subr.bf16.mxu1 %v2754_v39 }
 0x133   :  { %128 = vperm.xlu0 %2586, %v59_v31  }
 0x1a6   :  { %v109_v32 = vpop.xlane.xlu0 %108 }
 0x1a7   :  { %v110_v33 = vmul.f32 0.1, %v109_v32 }
 0x1a9   :  { %v111_v34 = vadd.f32 1e-05, %v110_v33 }
 0x1ab   :  { %2701 = vrsqrt.f32 %v111_v34 }
 0x1ae   :  { %v129_v47 = vpop.permute.xlu0 %128 }
 0x1af   :  { %v137_v48 = vmul.f32 %v2445_v46, %v129_v47 }
 0x1b1   :  { %v143_v50 = vadd.f32 %v141_v49, %v137_v48 }
 0x1b3   :  { %v145_v51 = vsel %vm144_vm5, %v143_v50, 0.0 }
 0x1b8   :  { %v2702_v38 = vpop.eup %2701 }
 0x1b9   :  { %v113_v42 = vmul.f32 %v2702_v38, %v57_v36  ;;  %v2953_v38 = vsub.s32 3, %v2826_v6 }
 0x1bb   :  { %116 = vperm.xlu1 %2585, %v113_v42  }
 0x1bf   :  { %122 = vperm.xlu1 %2585, %v58_v45  }
 0x1e3   :  { %146 = vadd.xlane.f32.xlu1 %v145_v51 }
 0x236   :  { %v117_v52 = vpop.permute.xlu1 %116 }
 0x237   :  { %v119_v53 = vmul.f32 %v117_v52, %v105_v28 }
 0x23a   :  { %v123_v54 = vpop.permute.xlu1 %122 }
 0x23b   :  { %v2881_v55 = vadd.f32 %v123_v54, %v119_v53 }
 0x23d   :  { %v255_v56 = vpack.c.bf16 %v2881_v55, %v2881_v55  ;;  %v341_v25 = vrot.slane %v2881_v55, %v2829_v7 }
 0x23f   :  { %2496 = vmatmul.mubr.msk.bf16.vlgmr.msra.gmra.mxu0 %vm256_vm6, %v255_v56 }
 0x240   :  { %2506 = vmatpush3.bf16.msra.mxu0 %v2866_v44  ;;  %2507 = vmatprep.mubr.msk.bf16.mxu0 %vm2755_vm4, %v2754_v39 }
 0x241   :  { %2517 = vmatprep.subr.bf16.mxu0 %v2754_v39 }
 0x26c   :  { %v147_v57 = vpop.xlane.xlu1 %146 }
 0x26d   :  { %v149_v58 = vmul.f32 0.05, %v147_v57 }
 0x26f   :  { %v2890_v59 = vsub.f32 %v143_v50, %v149_v58 }
 0x271   :  { %v151_v60 = vmul.f32 %v2890_v59, %v2890_v59 }
 0x273   :  { %v152_v61 = vsel %vm144_vm5, %v151_v60, 0.0  ;;  %vm1722_vm5 = vcmask 67584  }
 0x274   :  { %153 = vadd.xlane.f32.xlu0 %v152_v61 }
 0x28a   :  { %167 = vperm.xlu0 %2586, %v62_v62  }
 0x28e   :  { %2591 = vset.pattern.permute.xlu0 %v2752_v2 }
 0x28f   :  { %216 = vperm.xlu0 %2591, %v172_v63  }
 0x293   :  { %2593 = vset.pattern.permute.xlu0 %v2751_v1 }
 0x294   :  { %245 = vperm.xlu0 %2593, %v173_v0  }
 0x298   :  { %2595 = vset.pattern.permute.xlu0 %v2753_v4 }
 0x299   :  { %344 = vperm.xlu0 %2595, %v175_v3  }
 0x29d   :  { %2598 = vset.pattern.permute.xlu0 %v2751_v1 }
 0x2fd   :  { %v154_v5 = vpop.xlane.xlu0 %153 }
 0x2fe   :  { %v155_v10 = vmul.f32 0.05, %v154_v5 }
 0x2ff   :  { %v2911_v11 = vpop.f32.mrf.mxu0 }
 0x300   :  { %v156_v12 = vadd.f32 1e-05, %v155_v10  ;;  %v312_v60 = vrot.slane %v2911_v11, %v2832_v8  ;;  %v321_v5 = vrot.slane %v2911_v11, %v2835_v9 }
 0x301   :  { %v2497_v13 = vpop.f32.mrf.mxu0 }
 0x302   :  { %2703 = vrsqrt.f32 %v156_v12 }
 0x303   :  { %v301_v14 = vpop.f32.mrf.mxu0 }
 0x304   :  { %v307_v14 = vrot.slane %v2911_v11, %v2829_v7 }
 0x305   :  { %v2498_v15 = vpop.f32.mrf.mxu0  ;;  %v168_v33 = vpop.permute.xlu0 %167 }
 0x30a   :  { %v217_v47 = vpop.permute.xlu0 %216 }
 0x30f   :  { %v2704_v17 = vpop.eup %2703  ;;  %v246_v58 = vpop.permute.xlu0 %245 }
 0x310   :  { %v158_v18 = vmul.f32 %v2704_v17, %v61_v16 }
 0x312   :  { %161 = vperm.xlu1 %2585, %v158_v18  }
 0x316   :  { %181 = vperm.xlu1 %2585, %v171_v19  }
 0x31a   :  { %2587 = vset.pattern.permute.xlu1 %v2753_v4 }
 0x31b   :  { %196 = vperm.xlu1 %2587, %v171_v19  }
 0x31f   :  { %2588 = vset.pattern.permute.xlu1 %v2751_v1 }
 0x320   :  { %186 = vperm.xlu1 %2588, %v172_v63  }
 0x324   :  { %2589 = vset.pattern.permute.xlu1 %v2753_v4 }
 0x325   :  { %200 = vperm.xlu1 %2589, %v172_v63  }
 0x329   :  { %2590 = vset.pattern.permute.xlu1 %v2752_v2 }
 0x32a   :  { %212 = vperm.xlu1 %2590, %v171_v19  }
 0x32e   :  { %2592 = vset.pattern.permute.xlu1 %v2756_v20 }
 0x32f   :  { %228 = vperm.xlu1 %2592, %v171_v19  }
 0x333   :  { %232 = vperm.xlu1 %2592, %v172_v63  }
 0x337   :  { %2594 = vset.pattern.permute.xlu1 %v2751_v1 }
 0x338   :  { %250 = vperm.xlu1 %2594, %v174_v24  }
 0x33c   :  { %335 = vperm.xlu1 %2594, %v175_v3  }
 0x340   :  { %2596 = vset.pattern.permute.xlu1 %v2752_v2 }
 0x341   :  { %354 = vperm.xlu1 %2596, %v175_v3  }
 0x345   :  { %2597 = vset.pattern.permute.xlu1 %v2751_v1 }
 0x346   :  { %365 = vperm.xlu1 %2597, %v176_v27   ;;  %v345_v27 = vpop.permute.xlu0 %344 }
 0x38d   :  { %v162_v28 = vpop.permute.xlu1 %161 }
 0x38e   :  { %v164_v31 = vmul.f32 %v162_v28, %v2890_v59 }
 0x390   :  { %v170_v34 = vadd.f32 %v168_v33, %v164_v31  ;;  %v360_v31 = vrot.slane %v2881_v55, %v2835_v9 }
 0x391   :  { %v182_v29 = vpop.permute.xlu1 %181 }
 0x392   :  { %v2947_v36 = vrot.slane %v170_v34, %v2829_v7  ;;  %v2950_v37 = vrot.slane %v170_v34, %v2832_v8  ;;  %v2956_v40 = vrot.slane %v170_v34, %v2835_v9  ;;  %v2963_v48 = vrot.slane %v170_v34, %v2953_v38 }
 0x394   :  { %v193_v43 = vmul.f32 %v2947_v36, %v182_v29  ;;  %v224_v57 = vmul.f32 %v2956_v40, %v217_v47  ;;  %v350_v29 = vrot.slane %v2881_v55, %v2832_v8 }
 0x396   :  { %v197_v30 = vpop.permute.xlu1 %196 }
 0x397   :  { %v207_v41 = vmul.f32 %v2950_v37, %v197_v30 }
 0x399   :  { %v209_v49 = vadd.f32 %v207_v41, %v193_v43 }
 0x39b   :  { %v187_v32 = vpop.permute.xlu1 %186 }
 0x39c   :  { %v194_v50 = vmul.f32 %v2947_v36, %v187_v32  ;;  %v351_v32 = vmul.f32 %v350_v29, %v345_v27 }
 0x3a0   :  { %v201_v35 = vpop.permute.xlu1 %200 }
 0x3a1   :  { %v208_v45 = vmul.f32 %v2950_v37, %v201_v35 }
 0x3a3   :  { %v210_v52 = vadd.f32 %v208_v45, %v194_v50 }
 0x3a5   :  { %v213_v42 = vpop.permute.xlu1 %212  ;;  %v226_v63 = vadd.f32 %v224_v57, %v210_v52  ;;  %v178_v57 = vld [vmem:[%s3529_s5 + $0x78] sm:$0x7] }
 0x3a6   :  { %v223_v46 = vmul.f32 %v2956_v40, %v213_v42 }
 0x3a8   :  { %v225_v53 = vadd.f32 %v223_v46, %v209_v49 }
 0x3aa   :  { %v229_v51 = vpop.permute.xlu1 %228 }
 0x3ab   :  { %v239_v54 = vmul.f32 %v2963_v48, %v229_v51 }
 0x3ad   :  { %v241_v56 = vadd.f32 %v239_v54, %v225_v53 }
 0x3ae   :  { %v233_v59 = vpop.permute.xlu1 %232 }
 0x3af   :  { %v253_v61 = vadd.f32 %v246_v58, %v241_v56  ;;  %v240_v62 = vmul.f32 %v2963_v48, %v233_v59  ;;  %v442_v58 = vld [vmem:[%s3529_s5 + $0x80] sm:$0xff]  ;;  %v443_v59 = vld [vmem:[%s3529_s5 + $0x88] sm:$0x1] }
 0x3b1   :  { %v313_v0 = vmul.f32 %v312_v60, %v253_v61  ;;  %v242_v3 = vadd.f32 %v240_v62, %v226_v63  ;;  %v322_v12 = vmul.f32 %v321_v5, %v253_v61  ;;  %v308_v17 = vmul.f32 %v307_v14, %v253_v61  ;;  %v445_v60 = vld [vmem:[%s3529_s5 + $0x98] sm:$0x1]  ;;  %v446_v61 = vld [vmem:[%s3529_s5 + $0xa0] sm:$0x7]  ;;  %v447_v62 = vld [vmem:[%s3529_s5 + $0xa8] sm:$0x7] }
 0x3b3   :  { %v251_v10 = vpop.permute.xlu1 %250  ;;  %v315_v15 = vrot.slane %v313_v0, 3  ;;  %v327_v18 = vrot.slane %v322_v12, 6 }
 0x3b4   :  { %v254_v13 = vadd.f32 %v251_v10, %v242_v3 }
 0x3b5   :  { %v317_v21 = vadd.f32 %v315_v15, %v308_v17 }
 0x3b6   :  { %v323_v16 = vmul.f32 %v321_v5, %v254_v13  ;;  %v177_v5 = vld [vmem:[%s3529_s5 + $0x70] sm:$0x7] }
 0x3b7   :  { %v336_v11 = vpop.permute.xlu1 %335  ;;  %v444_v13 = vld [vmem:[%s3529_s5 + $0x90] sm:$0xff] }
 0x3b8   :  { %v328_v19 = vrot.slane %v323_v16, 6  ;;  %v342_v30 = vmul.f32 %v341_v25, %v336_v11 }
 0x3ba   :  { %v329_v22 = vsel %vm326_vm10, %v327_v18, %v328_v19  ;;  %v352_v34 = vadd.f32 %v351_v32, %v342_v30 }
 0x3bb   :  { %v331_v23 = vadd.f32 %v329_v22, %v317_v21 }
 0x3bc   :  { %v355_v28 = vpop.permute.xlu1 %354 }
 0x3bd   :  { %v332_v24 = vpack.c.bf16 %v331_v23, %v331_v23  ;;  %v361_v33 = vmul.f32 %v360_v31, %v355_v28 }
 0x3bf   :  { %2502 = vmatmul.mubr.msk.bf16.vlgmr.msra.gmra.mxu1 %vm369_vm9, %v332_v24  ;;  %v362_v35 = vadd.f32 %v361_v33, %v352_v34 }
 0x3c0   :  { %2512 = vmatpush3.bf16.xpose.msra.mxu1 %v2936_v26  ;;  %2513 = vmatprep.mubr.msk.bf16.mxu1 %vm2755_vm4, %v2754_v39 }
 0x3c1   :  { %2523 = vmatprep.subr.bf16.mxu1 %v2754_v39  ;;  %v366_v41 = vpop.permute.xlu1 %365 }
 0x3c2   :  { %v368_v42 = vadd.f32 %v366_v41, %v362_v35 }
 0x47f   :  { %v410_v43 = vpop.f32.mrf.mxu1 }
 0x480   :  { %v411_v45 = vadd.f32 %v410_v43, %v368_v42 }
 0x481   :  { %v2503_v46 = vpop.f32.mrf.mxu1 }
 0x482   :  { %v416_v47 = vmax.f32 %v411_v45, 0.0 }
 0x483   :  { %v413_v49 = vpop.f32.mrf.mxu1 }
 0x484   :  { %v417_v50 = vsel %vm99_vm0, %v416_v47, 0.0 }
 0x485   :  { %v2504_v51 = vpop.f32.mrf.mxu1  ;;  %418 = vadd.xlane.f32.xlu0 %v417_v50 }
 0x50e   :  { %v419_v52 = vpop.xlane.xlu0 %418 }
 0x50f   :  { %v420_v53 = vmul.f32 0.1, %v419_v52 }
 0x511   :  { %v421_v54 = vsub.f32 %v416_v47, %v420_v53 }
 0x513   :  { %v422_v56 = vmul.f32 %v421_v54, %v421_v54 }
 0x515   :  { %v423_v55 = vsel %vm99_vm0, %v422_v56, 0.0 }
 0x516   :  { %424 = vadd.xlane.f32.xlu1 %v423_v55 }
 0x527   :  { %438 = vperm.xlu1 %2597, %v178_v57  }
 0x52b   :  { %452 = vperm.xlu1 %2597, %v442_v58  }
 0x52f   :  { %2599 = vset.pattern.permute.xlu1 %v2753_v4 }
 0x530   :  { %463 = vperm.xlu1 %2599, %v442_v58  }
 0x534   :  { %2600 = vset.pattern.permute.xlu1 %v2751_v1 }
 0x535   :  { %457 = vperm.xlu1 %2600, %v443_v59  }
 0x539   :  { %2601 = vset.pattern.permute.xlu1 %v2753_v4 }
 0x53a   :  { %467 = vperm.xlu1 %2601, %v443_v59  }
 0x53e   :  { %2602 = vset.pattern.permute.xlu1 %v2752_v2 }
 0x53f   :  { %475 = vperm.xlu1 %2602, %v442_v58  }
 0x543   :  { %2604 = vset.pattern.permute.xlu1 %v2756_v20 }
 0x544   :  { %487 = vperm.xlu1 %2604, %v442_v58  }
 0x548   :  { %491 = vperm.xlu1 %2604, %v443_v59  }
 0x54c   :  { %2606 = vset.pattern.permute.xlu1 %v2751_v1 }
 0x54d   :  { %505 = vperm.xlu1 %2606, %v445_v60  }
 0x551   :  { %584 = vperm.xlu1 %2606, %v446_v61  }
 0x555   :  { %2608 = vset.pattern.permute.xlu1 %v2752_v2 }
 0x556   :  { %603 = vperm.xlu1 %2608, %v446_v61  }
 0x55a   :  { %2609 = vset.pattern.permute.xlu1 %v2751_v1 }
 0x55b   :  { %614 = vperm.xlu1 %2609, %v447_v62  }
 0x59f   :  { %v425_v63 = vpop.xlane.xlu1 %424 }
 0x5a0   :  { %v426_v0 = vmul.f32 0.1, %v425_v63 }
 0x5a2   :  { %v427_v3 = vadd.f32 1e-05, %v426_v0 }
 0x5a3   :  { %v439_v16 = vpop.permute.xlu1 %438 }
 0x5a4   :  { %2705 = vrsqrt.f32 %v427_v3 }
 0x5a7   :  { %v453_v19 = vpop.permute.xlu1 %452 }
 0x5a8   :  { %v460_v32 = vmul.f32 %v453_v19, %v2947_v36 }
 0x5ab   :  { %v464_v21 = vpop.permute.xlu1 %463 }
 0x5ac   :  { %v470_v30 = vmul.f32 %v464_v21, %v2950_v37 }
 0x5ae   :  { %v472_v41 = vadd.f32 %v470_v30, %v460_v32 }
 0x5b0   :  { %v458_v22 = vpop.permute.xlu1 %457 }
 0x5b1   :  { %v2706_v10 = vpop.eup %2705  ;;  %v461_v28 = vmul.f32 %v458_v22, %v2947_v36 }
 0x5b2   :  { %v429_v12 = vmul.f32 %v2706_v10, %v177_v5 }
 0x5b4   :  { %432 = vperm.xlu0 %2598, %v429_v12  }
 0x5b5   :  { %v468_v23 = vpop.permute.xlu1 %467 }
 0x5b6   :  { %v471_v27 = vmul.f32 %v468_v23, %v2950_v37 }
 0x5b8   :  { %2603 = vset.pattern.permute.xlu0 %v2752_v2  ;;  %v473_v31 = vadd.f32 %v471_v27, %v461_v28 }
 0x5b9   :  { %479 = vperm.xlu0 %2603, %v443_v59  }
 0x5ba   :  { %v476_v24 = vpop.permute.xlu1 %475 }
 0x5bb   :  { %v482_v33 = vmul.f32 %v476_v24, %v2956_v40 }
 0x5bd   :  { %2605 = vset.pattern.permute.xlu0 %v2751_v1  ;;  %v484_v45 = vadd.f32 %v482_v33, %v472_v41 }
 0x5be   :  { %500 = vperm.xlu0 %2605, %v444_v13  }
 0x5bf   :  { %v488_v11 = vpop.permute.xlu1 %487 }
 0x5c0   :  { %v494_v42 = vmul.f32 %v488_v11, %v2963_v48 }
 0x5c2   :  { %2607 = vset.pattern.permute.xlu0 %v2753_v4  ;;  %v496_v49 = vadd.f32 %v494_v42, %v484_v45 }
 0x5c3   :  { %593 = vperm.xlu0 %2607, %v446_v61   ;;  %v492_v34 = vpop.permute.xlu1 %491 }
 0x5c4   :  { %v495_v43 = vmul.f32 %v492_v34, %v2963_v48 }
 0x5c7   :  { %2610 = vset.pattern.permute.xlu0 %v2751_v1 }
 0x5c8   :  { %v506_v50 = vpop.permute.xlu1 %505 }
 0x62f   :  { %v433_v14 = vpop.permute.xlu0 %432 }
 0x630   :  { %v435_v15 = vmul.f32 %v433_v14, %v421_v54 }
 0x632   :  { %v3025_v17 = vadd.f32 %v439_v16, %v435_v15  ;;  %v585_v15 = vpop.permute.xlu1 %584 }
 0x634   :  { %v510_v18 = vpack.c.bf16 %v3025_v17, %v3025_v17  ;;  %v480_v25 = vpop.permute.xlu0 %479  ;;  %v599_v19 = vrot.slane %v3025_v17, %v2832_v8  ;;  %v609_v23 = vrot.slane %v3025_v17, %v2835_v9 }
 0x635   :  { %v483_v29 = vmul.f32 %v480_v25, %v2956_v40 }
 0x636   :  { %2508 = vmatmul.mubr.msk.bf16.vlgmr.msra.gmra.mxu0 %vm256_vm6, %v510_v18  ;;  %v590_v18 = vrot.slane %v3025_v17, %v2829_v7  ;;  %v604_v24 = vpop.permute.xlu1 %603 }
 0x637   :  { %2518 = vmatpush3.bf16.msra.mxu0 %v2866_v44  ;;  %2519 = vmatprep.mubr.msk.bf16.mxu0 %vm2755_vm4, %v2754_v39  ;;  %v485_v35 = vadd.f32 %v483_v29, %v473_v31  ;;  %v610_v25 = vmul.f32 %v609_v23, %v604_v24 }
 0x638   :  { %2529 = vmatprep.subr.bf16.mxu0 %v2754_v39  ;;  %v591_v22 = vmul.f32 %v590_v18, %v585_v15 }
 0x639   :  { %v497_v46 = vadd.f32 %v495_v43, %v485_v35  ;;  %v501_v47 = vpop.permute.xlu0 %500 }
 0x63a   :  { %v508_v51 = vadd.f32 %v501_v47, %v496_v49  ;;  %v615_v28 = vpop.permute.xlu1 %614  ;;  %v449_v47 = vld [vmem:[%s3529_s5 + $0xb8] sm:$0x7]  ;;  %v687_v49 = vld [vmem:[%s3529_s5 + $0xc0] sm:$0xff] }
 0x63b   :  { %v509_v53 = vadd.f32 %v506_v50, %v497_v46  ;;  %v688_v50 = vld [vmem:[%s3529_s5 + $0xc8] sm:$0x1] }
 0x63e   :  { %v594_v16 = vpop.permute.xlu0 %593 }
 0x63f   :  { %v600_v21 = vmul.f32 %v599_v19, %v594_v16 }
 0x641   :  { %v601_v11 = vadd.f32 %v600_v21, %v591_v22 }
 0x643   :  { %v611_v27 = vadd.f32 %v610_v25, %v601_v11 }
 0x645   :  { %v617_v29 = vadd.f32 %v615_v28, %v611_v27 }
 0x6f6   :  { %v548_v52 = vpop.f32.mrf.mxu0 }
 0x6f7   :  { %v557_v54 = vrot.slane %v548_v52, %v2829_v7  ;;  %v562_v56 = vrot.slane %v548_v52, %v2832_v8  ;;  %v571_v55 = vrot.slane %v548_v52, %v2835_v9  ;;  %v691_v52 = vld [vmem:[%s3529_s5 + $0xe0] sm:$0x7] }
 0x6f8   :  { %v2509_v57 = vpop.f32.mrf.mxu0 }
 0x6f9   :  { %v563_v58 = vmul.f32 %v562_v56, %v508_v51  ;;  %v572_v59 = vmul.f32 %v571_v55, %v508_v51  ;;  %v573_v60 = vmul.f32 %v571_v55, %v509_v53  ;;  %v558_v62 = vmul.f32 %v557_v54, %v508_v51  ;;  %v689_v51 = vld [vmem:[%s3529_s5 + $0xd0] sm:$0xff]  ;;  %v692_v53 = vld [vmem:[%s3529_s5 + $0xe8] sm:$0x7] }
 0x6fa   :  { %v551_v61 = vpop.f32.mrf.mxu0  ;;  %v448_v57 = vld [vmem:[%s3529_s5 + $0xb0] sm:$0x7] }
 0x6fb   :  { %v565_v63 = vrot.slane %v563_v58, 3  ;;  %v576_v0 = vrot.slane %v572_v59, 6  ;;  %v577_v3 = vrot.slane %v573_v60, 6  ;;  %v690_v60 = vld [vmem:[%s3529_s5 + $0xd8] sm:$0x1] }
 0x6fc   :  { %v2510_v5 = vpop.f32.mrf.mxu0 }
 0x6fd   :  { %v567_v10 = vadd.f32 %v565_v63, %v558_v62  ;;  %v578_v12 = vsel %vm326_vm10, %v576_v0, %v577_v3 }
 0x6ff   :  { %v580_v13 = vadd.f32 %v578_v12, %v567_v10 }
 0x701   :  { %v581_v14 = vpack.c.bf16 %v580_v13, %v580_v13 }
 0x703   :  { %2514 = vmatmul.mubr.msk.bf16.vlgmr.msra.gmra.mxu1 %vm369_vm9, %v581_v14 }
 0x704   :  { %2524 = vmatpush3.bf16.xpose.msra.mxu1 %v2936_v26  ;;  %2525 = vmatprep.mubr.msk.bf16.mxu1 %vm2755_vm4, %v2754_v39 }
 0x705   :  { %2535 = vmatprep.subr.bf16.mxu1 %v2754_v39 }
 0x7c3   :  { %v655_v30 = vpop.f32.mrf.mxu1 }
 0x7c4   :  { %v656_v31 = vadd.f32 %v655_v30, %v617_v29 }
 0x7c5   :  { %v2515_v32 = vpop.f32.mrf.mxu1 }
 0x7c6   :  { %v661_v33 = vmax.f32 %v656_v31, 0.0 }
 0x7c7   :  { %v658_v34 = vpop.f32.mrf.mxu1 }
 0x7c8   :  { %v662_v35 = vsel %vm99_vm0, %v661_v33, 0.0 }
 0x7c9   :  { %v2516_v41 = vpop.f32.mrf.mxu1  ;;  %663 = vadd.xlane.f32.xlu0 %v662_v35 }
 0x852   :  { %v664_v42 = vpop.xlane.xlu0 %663 }
 0x853   :  { %v665_v43 = vmul.f32 0.1, %v664_v42 }
 0x855   :  { %v666_v45 = vsub.f32 %v661_v33, %v665_v43 }
 0x857   :  { %v667_v46 = vmul.f32 %v666_v45, %v666_v45 }
 0x859   :  { %v668_v17 = vsel %vm99_vm0, %v667_v46, 0.0 }
 0x85a   :  { %669 = vadd.xlane.f32.xlu1 %v668_v17 }
 0x86b   :  { %683 = vperm.xlu1 %2609, %v449_v47  }
 0x86f   :  { %697 = vperm.xlu1 %2609, %v687_v49  }
 0x873   :  { %2611 = vset.pattern.permute.xlu1 %v2753_v4 }
 0x874   :  { %708 = vperm.xlu1 %2611, %v687_v49  }
 0x878   :  { %2612 = vset.pattern.permute.xlu1 %v2751_v1 }
 0x879   :  { %702 = vperm.xlu1 %2612, %v688_v50  }
 0x87d   :  { %2613 = vset.pattern.permute.xlu1 %v2753_v4 }
 0x87e   :  { %712 = vperm.xlu1 %2613, %v688_v50  }
 0x882   :  { %2614 = vset.pattern.permute.xlu1 %v2752_v2 }
 0x883   :  { %720 = vperm.xlu1 %2614, %v687_v49  }
 0x887   :  { %724 = vperm.xlu1 %2614, %v688_v50  }
 0x88b   :  { %2616 = vset.pattern.permute.xlu1 %v2756_v20 }
 0x88c   :  { %736 = vperm.xlu1 %2616, %v688_v50  }
 0x890   :  { %2617 = vset.pattern.permute.xlu1 %v2751_v1 }
 0x891   :  { %745 = vperm.xlu1 %2617, %v689_v51  }
 0x895   :  { %829 = vperm.xlu1 %2617, %v691_v52  }
 0x899   :  { %2619 = vset.pattern.permute.xlu1 %v2753_v4 }
 0x89a   :  { %838 = vperm.xlu1 %2619, %v691_v52  }
 0x89e   :  { %2621 = vset.pattern.permute.xlu1 %v2751_v1 }
 0x89f   :  { %859 = vperm.xlu1 %2621, %v692_v53  }
 0x8e3   :  { %v670_v54 = vpop.xlane.xlu1 %669 }
 0x8e4   :  { %v671_v56 = vmul.f32 0.1, %v670_v54 }
 0x8e6   :  { %v672_v55 = vadd.f32 1e-05, %v671_v56 }
 0x8e7   :  { %v684_v63 = vpop.permute.xlu1 %683 }
 0x8e8   :  { %2707 = vrsqrt.f32 %v672_v55 }
 0x8eb   :  { %v698_v5 = vpop.permute.xlu1 %697 }
 0x8ec   :  { %v705_v19 = vmul.f32 %v698_v5, %v2947_v36 }
 0x8ef   :  { %v709_v10 = vpop.permute.xlu1 %708 }
 0x8f0   :  { %v715_v16 = vmul.f32 %v709_v10, %v2950_v37 }
 0x8f2   :  { %v717_v23 = vadd.f32 %v715_v16, %v705_v19 }
 0x8f4   :  { %v703_v12 = vpop.permute.xlu1 %702 }
 0x8f5   :  { %v2708_v58 = vpop.eup %2707  ;;  %v706_v25 = vmul.f32 %v703_v12, %v2947_v36 }
 0x8f6   :  { %v674_v59 = vmul.f32 %v2708_v58, %v448_v57 }
 0x8f8   :  { %677 = vperm.xlu0 %2610, %v674_v59  }
 0x8f9   :  { %v713_v13 = vpop.permute.xlu1 %712 }
 0x8fa   :  { %v716_v22 = vmul.f32 %v713_v13, %v2950_v37 }
 0x8fc   :  { %2615 = vset.pattern.permute.xlu0 %v2756_v20  ;;  %v718_v29 = vadd.f32 %v716_v22, %v706_v25 }
 0x8fd   :  { %732 = vperm.xlu0 %2615, %v687_v49  }
 0x8fe   :  { %v721_v14 = vpop.permute.xlu1 %720 }
 0x8ff   :  { %v727_v21 = vmul.f32 %v721_v14, %v2956_v40 }
 0x901   :  { %2618 = vset.pattern.permute.xlu0 %v2751_v1  ;;  %v729_v28 = vadd.f32 %v727_v21, %v717_v23 }
 0x902   :  { %750 = vperm.xlu0 %2618, %v690_v60   ;;  %v725_v15 = vpop.permute.xlu1 %724 }
 0x903   :  { %v728_v27 = vmul.f32 %v725_v15, %v2956_v40 }
 0x905   :  { %v730_v32 = vadd.f32 %v728_v27, %v718_v29  ;;  %v694_v29 = vld [vmem:[%s3529_s5 + $0xf8] sm:$0x7] }
 0x906   :  { %2620 = vset.pattern.permute.xlu0 %v2752_v2 }
 0x907   :  { %848 = vperm.xlu0 %2620, %v691_v52   ;;  %v737_v24 = vpop.permute.xlu1 %736 }
 0x908   :  { %v740_v30 = vmul.f32 %v737_v24, %v2963_v48 }
 0x90a   :  { %v742_v35 = vadd.f32 %v740_v30, %v730_v32  ;;  %v933_v30 = vld [vmem:[%s3529_s5 + $0x108] sm:$0x1] }
 0x90b   :  { %2622 = vset.pattern.permute.xlu0 %v2751_v1 }
 0x90c   :  { %v746_v34 = vpop.permute.xlu1 %745 }
 0x973   :  { %v678_v61 = vpop.permute.xlu0 %677 }
 0x974   :  { %v680_v62 = vmul.f32 %v678_v61, %v666_v45 }
 0x976   :  { %v3095_v0 = vadd.f32 %v684_v63, %v680_v62  ;;  %v830_v62 = vpop.permute.xlu1 %829 }
 0x978   :  { %v755_v3 = vpack.c.bf16 %v3095_v0, %v3095_v0  ;;  %v733_v18 = vpop.permute.xlu0 %732  ;;  %v835_v63 = vrot.slane %v3095_v0, %v2829_v7  ;;  %v854_v14 = vrot.slane %v3095_v0, %v2835_v9 }
 0x979   :  { %v739_v11 = vmul.f32 %v733_v18, %v2963_v48 }
 0x97a   :  { %2520 = vmatmul.mubr.msk.bf16.vlgmr.msra.gmra.mxu0 %vm256_vm6, %v755_v3  ;;  %v844_v3 = vrot.slane %v3095_v0, %v2832_v8  ;;  %v839_v5 = vpop.permute.xlu1 %838  ;;  %v836_v12 = vmul.f32 %v835_v63, %v830_v62  ;;  %v932_v0 = vld [vmem:[%s3529_s5 + $0x100] sm:$0xff] }
 0x97b   :  { %2530 = vmatpush3.bf16.msra.mxu0 %v2866_v44  ;;  %2531 = vmatprep.mubr.msk.bf16.mxu0 %vm2755_vm4, %v2754_v39  ;;  %v741_v31 = vadd.f32 %v739_v11, %v729_v28 }
 0x97c   :  { %2541 = vmatprep.subr.bf16.mxu0 %v2754_v39  ;;  %v845_v13 = vmul.f32 %v844_v3, %v839_v5 }
 0x97d   :  { %v751_v33 = vpop.permute.xlu0 %750  ;;  %v753_v41 = vadd.f32 %v746_v34, %v741_v31 }
 0x97e   :  { %v754_v43 = vadd.f32 %v751_v33, %v742_v35  ;;  %v846_v16 = vadd.f32 %v845_v13, %v836_v12  ;;  %v860_v19 = vpop.permute.xlu1 %859 }
 0x982   :  { %v849_v10 = vpop.permute.xlu0 %848 }
 0x983   :  { %v855_v15 = vmul.f32 %v854_v14, %v849_v10 }
 0x985   :  { %v856_v18 = vadd.f32 %v855_v15, %v846_v16 }
 0x987   :  { %v862_v21 = vadd.f32 %v860_v19, %v856_v18 }
 0xa3a   :  { %v793_v42 = vpop.f32.mrf.mxu0 }
 0xa3b   :  { %v802_v45 = vrot.slane %v793_v42, %v2829_v7  ;;  %v807_v46 = vrot.slane %v793_v42, %v2832_v8  ;;  %v816_v17 = vrot.slane %v793_v42, %v2835_v9  ;;  %v936_v42 = vld [vmem:[%s3529_s5 + $0x120] sm:$0x7] }
 0xa3c   :  { %v2521_v47 = vpop.f32.mrf.mxu0 }
 0xa3d   :  { %v808_v49 = vmul.f32 %v807_v46, %v753_v41  ;;  %v817_v50 = vmul.f32 %v816_v17, %v753_v41  ;;  %v818_v51 = vmul.f32 %v816_v17, %v754_v43  ;;  %v803_v53 = vmul.f32 %v802_v45, %v753_v41  ;;  %v934_v41 = vld [vmem:[%s3529_s5 + $0x110] sm:$0xff]  ;;  %v937_v43 = vld [vmem:[%s3529_s5 + $0x128] sm:$0x7] }
 0xa3e   :  { %v796_v52 = vpop.f32.mrf.mxu0  ;;  %v693_v47 = vld [vmem:[%s3529_s5 + $0xf0] sm:$0x7] }
 0xa3f   :  { %v810_v54 = vrot.slane %v808_v49, 3  ;;  %v821_v56 = vrot.slane %v817_v50, 6  ;;  %v822_v55 = vrot.slane %v818_v51, 6  ;;  %v935_v51 = vld [vmem:[%s3529_s5 + $0x118] sm:$0x1] }
 0xa40   :  { %v2522_v57 = vpop.f32.mrf.mxu0 }
 0xa41   :  { %v812_v58 = vadd.f32 %v810_v54, %v803_v53  ;;  %v823_v59 = vsel %vm326_vm10, %v821_v56, %v822_v55 }
 0xa43   :  { %v825_v60 = vadd.f32 %v823_v59, %v812_v58 }
 0xa45   :  { %v826_v61 = vpack.c.bf16 %v825_v60, %v825_v60 }
 0xa47   :  { %2526 = vmatmul.mubr.msk.bf16.vlgmr.msra.gmra.mxu1 %vm369_vm9, %v826_v61 }
 0xa48   :  { %2536 = vmatpush3.bf16.xpose.msra.mxu1 %v2936_v26  ;;  %2537 = vmatprep.mubr.msk.bf16.mxu1 %vm2755_vm4, %v2754_v39 }
 0xa49   :  { %2547 = vmatprep.subr.bf16.mxu1 %v2754_v39 }
 0xb07   :  { %v900_v22 = vpop.f32.mrf.mxu1 }
 0xb08   :  { %v901_v23 = vadd.f32 %v900_v22, %v862_v21 }
 0xb09   :  { %v2527_v24 = vpop.f32.mrf.mxu1 }
 0xb0a   :  { %v906_v11 = vmax.f32 %v901_v23, 0.0 }
 0xb0b   :  { %v903_v25 = vpop.f32.mrf.mxu1 }
 0xb0c   :  { %v907_v27 = vsel %vm99_vm0, %v906_v11, 0.0 }
 0xb0d   :  { %v2528_v28 = vpop.f32.mrf.mxu1  ;;  %908 = vadd.xlane.f32.xlu1 %v907_v27 }
 0xb1e   :  { %928 = vperm.xlu1 %2621, %v694_v29  }
 0xb22   :  { %942 = vperm.xlu1 %2621, %v932_v0  }
 0xb26   :  { %2623 = vset.pattern.permute.xlu1 %v2753_v4 }
 0xb27   :  { %953 = vperm.xlu1 %2623, %v932_v0  }
 0xb2b   :  { %2624 = vset.pattern.permute.xlu1 %v2751_v1 }
 0xb2c   :  { %947 = vperm.xlu1 %2624, %v933_v30  }
 0xb30   :  { %2625 = vset.pattern.permute.xlu1 %v2753_v4 }
 0xb31   :  { %957 = vperm.xlu1 %2625, %v933_v30  }
 0xb35   :  { %2626 = vset.pattern.permute.xlu1 %v2752_v2 }
 0xb36   :  { %965 = vperm.xlu1 %2626, %v932_v0  }
 0xb3a   :  { %969 = vperm.xlu1 %2626, %v933_v30  }
 0xb3e   :  { %2628 = vset.pattern.permute.xlu1 %v2756_v20 }
 0xb3f   :  { %981 = vperm.xlu1 %2628, %v933_v30  }
 0xb43   :  { %2629 = vset.pattern.permute.xlu1 %v2751_v1 }
 0xb44   :  { %990 = vperm.xlu1 %2629, %v934_v41  }
 0xb48   :  { %1074 = vperm.xlu1 %2629, %v936_v42  }
 0xb4c   :  { %2631 = vset.pattern.permute.xlu1 %v2753_v4 }
 0xb4d   :  { %1083 = vperm.xlu1 %2631, %v936_v42  }
 0xb51   :  { %2633 = vset.pattern.permute.xlu1 %v2751_v1 }
 0xb52   :  { %1104 = vperm.xlu1 %2633, %v937_v43  }
 0xb96   :  { %v909_v31 = vpop.xlane.xlu1 %908 }
 0xb97   :  { %v910_v32 = vmul.f32 0.1, %v909_v31 }
 0xb99   :  { %v911_v33 = vsub.f32 %v906_v11, %v910_v32 }
 0xb9a   :  { %v929_v54 = vpop.permute.xlu1 %928 }
 0xb9b   :  { %v912_v34 = vmul.f32 %v911_v33, %v911_v33 }
 0xb9d   :  { %v913_v35 = vsel %vm99_vm0, %v912_v34, 0.0 }
 0xb9e   :  { %914 = vadd.xlane.f32.xlu0 %v913_v35  ;;  %v943_v57 = vpop.permute.xlu1 %942 }
 0xb9f   :  { %v950_v5 = vmul.f32 %v943_v57, %v2947_v36 }
 0xba2   :  { %v954_v58 = vpop.permute.xlu1 %953 }
 0xba3   :  { %v960_v63 = vmul.f32 %v954_v58, %v2950_v37 }
 0xba5   :  { %v962_v13 = vadd.f32 %v960_v63, %v950_v5 }
 0xba7   :  { %v948_v59 = vpop.permute.xlu1 %947 }
 0xba8   :  { %v951_v15 = vmul.f32 %v948_v59, %v2947_v36 }
 0xbac   :  { %v958_v60 = vpop.permute.xlu1 %957 }
 0xbad   :  { %v961_v12 = vmul.f32 %v958_v60, %v2950_v37 }
 0xbaf   :  { %v963_v19 = vadd.f32 %v961_v12, %v951_v15 }
 0xbb1   :  { %v966_v61 = vpop.permute.xlu1 %965 }
 0xbb2   :  { %v972_v10 = vmul.f32 %v966_v61, %v2956_v40 }
 0xbb4   :  { %v974_v18 = vadd.f32 %v972_v10, %v962_v13 }
 0xbb5   :  { %v970_v62 = vpop.permute.xlu1 %969 }
 0xbb6   :  { %v973_v16 = vmul.f32 %v970_v62, %v2956_v40 }
 0xbb8   :  { %v975_v23 = vadd.f32 %v973_v16, %v963_v19  ;;  %v939_v16 = vld [vmem:[%s3529_s5 + $0x138] sm:$0x7]  ;;  %v1179_v19 = vld [vmem:[%s3529_s5 + $0x150] sm:$0xff] }
 0xc27   :  { %v915_v45 = vpop.xlane.xlu0 %914 }
 0xc28   :  { %v916_v46 = vmul.f32 0.1, %v915_v45 }
 0xc2a   :  { %v917_v17 = vadd.f32 1e-05, %v916_v46 }
 0xc2c   :  { %2709 = vrsqrt.f32 %v917_v17 }
 0xc39   :  { %v2710_v49 = vpop.eup %2709 }
 0xc3a   :  { %v919_v50 = vmul.f32 %v2710_v49, %v693_v47 }
 0xc3c   :  { %922 = vperm.xlu0 %2622, %v919_v50  }
 0xc40   :  { %2627 = vset.pattern.permute.xlu0 %v2756_v20 }
 0xc41   :  { %977 = vperm.xlu0 %2627, %v932_v0  }
 0xc45   :  { %2630 = vset.pattern.permute.xlu0 %v2751_v1 }
 0xc46   :  { %995 = vperm.xlu0 %2630, %v935_v51  }
 0xc4a   :  { %2632 = vset.pattern.permute.xlu0 %v2752_v2 }
 0xc4b   :  { %1093 = vperm.xlu0 %2632, %v936_v42  }
 0xc4f   :  { %2634 = vset.pattern.permute.xlu0 %v2751_v1 }
 0xcb7   :  { %v923_v52 = vpop.permute.xlu0 %922 }
 0xcb8   :  { %v925_v53 = vmul.f32 %v923_v52, %v911_v33 }
 0xcba   :  { %v931_v56 = vadd.f32 %v929_v54, %v925_v53 }
 0xcbc   :  { %v1000_v55 = vpack.c.bf16 %v931_v56, %v931_v56  ;;  %v978_v3 = vpop.permute.xlu0 %977  ;;  %v1080_v53 = vrot.slane %v931_v56, %v2829_v7  ;;  %v1089_v54 = vrot.slane %v931_v56, %v2832_v8  ;;  %v1099_v60 = vrot.slane %v931_v56, %v2835_v9  ;;  %v1177_v56 = vld [vmem:[%s3529_s5 + $0x140] sm:$0xff] }
 0xcbd   :  { %v984_v14 = vmul.f32 %v978_v3, %v2963_v48 }
 0xcbe   :  { %2532 = vmatmul.mubr.msk.bf16.vlgmr.msra.gmra.mxu0 %vm256_vm6, %v1000_v55 }
 0xcbf   :  { %2542 = vmatpush3.bf16.msra.mxu0 %v2866_v44  ;;  %2543 = vmatprep.mubr.msk.bf16.mxu0 %vm2755_vm4, %v2754_v39  ;;  %v982_v44 = vpop.permute.xlu1 %981  ;;  %v986_v22 = vadd.f32 %v984_v14, %v974_v18  ;;  %v1178_v18 = vld [vmem:[%s3529_s5 + $0x148] sm:$0x1] }
 0xcc0   :  { %v985_v21 = vmul.f32 %v982_v44, %v2963_v48 }
 0xcc1   :  { %v996_v24 = vpop.permute.xlu0 %995 }
 0xcc2   :  { %v987_v25 = vadd.f32 %v985_v21, %v975_v23 }
 0xcc3   :  { %v991_v11 = vpop.permute.xlu1 %990 }
 0xcc4   :  { %v998_v27 = vadd.f32 %v991_v11, %v986_v22  ;;  %v999_v29 = vadd.f32 %v996_v24, %v987_v25  ;;  %v1180_v25 = vld [vmem:[%s3529_s5 + $0x158] sm:$0x1] }
 0xcc6   :  { %v1094_v57 = vpop.permute.xlu0 %1093 }
 0xcc7   :  { %v1075_v52 = vpop.permute.xlu1 %1074  ;;  %v1100_v61 = vmul.f32 %v1099_v60, %v1094_v57 }
 0xcc8   :  { %v1081_v58 = vmul.f32 %v1080_v53, %v1075_v52 }
 0xccb   :  { %v1084_v55 = vpop.permute.xlu1 %1083 }
 0xccc   :  { %v1090_v59 = vmul.f32 %v1089_v54, %v1084_v55 }
 0xcce   :  { %v1091_v62 = vadd.f32 %v1090_v59, %v1081_v58 }
 0xccf   :  { %v1105_v3 = vpop.permute.xlu1 %1104 }
 0xcd0   :  { %v1101_v63 = vadd.f32 %v1100_v61, %v1091_v62 }
 0xcd2   :  { %v1107_v5 = vadd.f32 %v1105_v3, %v1101_v63 }
 0xd7e   :  { %v1038_v28 = vpop.f32.mrf.mxu0 }
 0xd7f   :  { %v1047_v0 = vrot.slane %v1038_v28, %v2829_v7  ;;  %v1052_v30 = vrot.slane %v1038_v28, %v2832_v8  ;;  %v1061_v31 = vrot.slane %v1038_v28, %v2835_v9 }
 0xd80   :  { %v2533_v32 = vpop.f32.mrf.mxu0 }
 0xd81   :  { %v1053_v33 = vmul.f32 %v1052_v30, %v998_v27  ;;  %v1062_v34 = vmul.f32 %v1061_v31, %v998_v27  ;;  %v1063_v35 = vmul.f32 %v1061_v31, %v999_v29  ;;  %v1048_v42 = vmul.f32 %v1047_v0, %v998_v27  ;;  %v1181_v27 = vld [vmem:[%s3529_s5 + $0x160] sm:$0x7]  ;;  %v938_v30 = vld [vmem:[%s3529_s5 + $0x130] sm:$0x7] }
 0xd82   :  { %v1041_v41 = vpop.f32.mrf.mxu0 }
 0xd83   :  { %v1055_v43 = vrot.slane %v1053_v33, 3  ;;  %v1066_v45 = vrot.slane %v1062_v34, 6  ;;  %v1067_v46 = vrot.slane %v1063_v35, 6  ;;  %v1182_v33 = vld [vmem:[%s3529_s5 + $0x168] sm:$0x7] }
 0xd84   :  { %v2534_v17 = vpop.f32.mrf.mxu0 }
 0xd85   :  { %v1057_v47 = vadd.f32 %v1055_v43, %v1048_v42  ;;  %v1068_v49 = vsel %vm326_vm10, %v1066_v45, %v1067_v46 }
 0xd87   :  { %v1070_v50 = vadd.f32 %v1068_v49, %v1057_v47 }
 0xd89   :  { %v1071_v51 = vpack.c.bf16 %v1070_v50, %v1070_v50 }
 0xd8b   :  { %2538 = vmatmul.mubr.msk.bf16.vlgmr.msra.gmra.mxu1 %vm369_vm9, %v1071_v51 }
 0xd8c   :  { %2548 = vmatpush3.bf16.xpose.msra.mxu1 %v2936_v26  ;;  %2549 = vmatprep.mubr.msk.bf16.mxu1 %vm2755_vm4, %v2754_v39  ;;  %vm2217_vm4 = vcmask 59392  }
 0xe4b   :  { %v1145_v26 = vpop.f32.mrf.mxu1 }
 0xe4c   :  { %v1146_v10 = vadd.f32 %v1145_v26, %v1107_v5 }
 0xe4d   :  { %v2539_v12 = vpop.f32.mrf.mxu1 }
 0xe4e   :  { %v1151_v13 = vmax.f32 %v1146_v10, 0.0 }
 0xe4f   :  { %v1148_v44 = vpop.f32.mrf.mxu1 }
 0xe50   :  { %v1152_v14 = vsel %vm99_vm0, %v1151_v13, 0.0 }
 0xe51   :  { %v2540_v15 = vpop.f32.mrf.mxu1  ;;  %1153 = vadd.xlane.f32.xlu1 %v1152_v14 }
 0xe62   :  { %1173 = vperm.xlu1 %2633, %v939_v16  }
 0xe66   :  { %1187 = vperm.xlu1 %2633, %v1177_v56  }
 0xe6a   :  { %2635 = vset.pattern.permute.xlu1 %v2753_v4 }
 0xe6b   :  { %1198 = vperm.xlu1 %2635, %v1177_v56  }
 0xe6f   :  { %2636 = vset.pattern.permute.xlu1 %v2751_v1 }
 0xe70   :  { %1192 = vperm.xlu1 %2636, %v1178_v18  }
 0xe74   :  { %2637 = vset.pattern.permute.xlu1 %v2753_v4 }
 0xe75   :  { %1202 = vperm.xlu1 %2637, %v1178_v18  }
 0xe79   :  { %2638 = vset.pattern.permute.xlu1 %v2752_v2 }
 0xe7a   :  { %1210 = vperm.xlu1 %2638, %v1177_v56  }
 0xe7e   :  { %1214 = vperm.xlu1 %2638, %v1178_v18  }
 0xe82   :  { %2639 = vset.pattern.permute.xlu1 %v2756_v20 }
 0xe83   :  { %1222 = vperm.xlu1 %2639, %v1177_v56  }
 0xe87   :  { %2641 = vset.pattern.permute.xlu1 %v2751_v1 }
 0xe88   :  { %1235 = vperm.xlu1 %2641, %v1179_v19  }
 0xe8c   :  { %1240 = vperm.xlu1 %2641, %v1180_v25  }
 0xe90   :  { %2643 = vset.pattern.permute.xlu1 %v2753_v4 }
 0xe91   :  { %1328 = vperm.xlu1 %2643, %v1181_v27  }
 0xe95   :  { %2644 = vset.pattern.permute.xlu1 %v2752_v2 }
 0xe96   :  { %1338 = vperm.xlu1 %2644, %v1181_v27  }
 0xe9a   :  { %2645 = vset.pattern.permute.xlu1 %v2751_v1 }
 0xeda   :  { %v1154_v21 = vpop.xlane.xlu1 %1153 }
 0xedb   :  { %v1155_v22 = vmul.f32 0.1, %v1154_v21 }
 0xedd   :  { %v1156_v23 = vsub.f32 %v1151_v13, %v1155_v22 }
 0xede   :  { %v1174_v41 = vpop.permute.xlu1 %1173 }
 0xedf   :  { %v1157_v24 = vmul.f32 %v1156_v23, %v1156_v23 }
 0xee1   :  { %v1158_v11 = vsel %vm99_vm0, %v1157_v24, 0.0 }
 0xee2   :  { %1159 = vadd.xlane.f32.xlu0 %v1158_v11  ;;  %v1188_v45 = vpop.permute.xlu1 %1187 }
 0xee3   :  { %v1195_v54 = vmul.f32 %v1188_v45, %v2947_v36 }
 0xee6   :  { %v1199_v46 = vpop.permute.xlu1 %1198 }
 0xee7   :  { %v1205_v51 = vmul.f32 %v1199_v46, %v2950_v37 }
 0xee9   :  { %v1207_v60 = vadd.f32 %v1205_v51, %v1195_v54 }
 0xeeb   :  { %v1193_v17 = vpop.permute.xlu1 %1192 }
 0xeec   :  { %v1196_v58 = vmul.f32 %v1193_v17, %v2947_v36 }
 0xef0   :  { %v1203_v47 = vpop.permute.xlu1 %1202 }
 0xef1   :  { %v1206_v52 = vmul.f32 %v1203_v47, %v2950_v37 }
 0xef3   :  { %v1208_v62 = vadd.f32 %v1206_v52, %v1196_v58 }
 0xef5   :  { %v1211_v49 = vpop.permute.xlu1 %1210 }
 0xef6   :  { %v1217_v55 = vmul.f32 %v1211_v49, %v2956_v40 }
 0xef8   :  { %v1219_v3 = vadd.f32 %v1217_v55, %v1207_v60 }
 0xef9   :  { %v1215_v50 = vpop.permute.xlu1 %1214 }
 0xefa   :  { %v1218_v59 = vmul.f32 %v1215_v50, %v2956_v40 }
 0xefc   :  { %v1220_v5 = vadd.f32 %v1218_v59, %v1208_v62  ;;  %v2456_v62 = vld [vmem:[%s3528_s4] ss:$0 sm:$0xff] }
 0xefd   :  { %vm1426_vm11 = vcmp.eq.s32.totalorder %v2826_v6, %v2456_v62 }
 0xefe   :  { %v1223_v53 = vpop.permute.xlu1 %1222 }
 0xeff   :  { %v1229_v61 = vmul.f32 %v1223_v53, %v2963_v48 }
 0xf01   :  { %v1231_v26 = vadd.f32 %v1229_v61, %v1219_v3  ;;  %v1184_v61 = vld [vmem:[%s3529_s5 + $0x178] sm:$0x7] }
 0xf03   :  { %v1236_v37 = vpop.permute.xlu1 %1235 }
 0xf04   :  { %v1243_v12 = vadd.f32 %v1236_v37, %v1231_v26 }
 0xf07   :  { %v1241_v13 = vpop.permute.xlu1 %1240 }
 0xf6b   :  { %v1160_v28 = vpop.xlane.xlu0 %1159 }
 0xf6c   :  { %v1161_v29 = vmul.f32 0.1, %v1160_v28 }
 0xf6e   :  { %v1162_v0 = vadd.f32 1e-05, %v1161_v29 }
 0xf70   :  { %2711 = vrsqrt.f32 %v1162_v0  ;;  %v1329_v0 = vpop.permute.xlu1 %1328 }
 0xf7d   :  { %v2712_v31 = vpop.eup %2711 }
 0xf7e   :  { %v1164_v32 = vmul.f32 %v2712_v31, %v938_v30 }
 0xf80   :  { %1167 = vperm.xlu0 %2634, %v1164_v32  }
 0xf84   :  { %2640 = vset.pattern.permute.xlu0 %v2756_v20 }
 0xf85   :  { %1226 = vperm.xlu0 %2640, %v1178_v18  }
 0xf89   :  { %2642 = vset.pattern.permute.xlu0 %v2751_v1 }
 0xf8a   :  { %1319 = vperm.xlu0 %2642, %v1181_v27  }
 0xf8e   :  { %1349 = vperm.xlu0 %2642, %v1182_v33  }
 0xffb   :  { %v1168_v34 = vpop.permute.xlu0 %1167 }
 0xffc   :  { %v1170_v35 = vmul.f32 %v1168_v34, %v1156_v23 }
 0xffe   :  { %v1176_v42 = vadd.f32 %v1174_v41, %v1170_v35  ;;  %v1339_v41 = vpop.permute.xlu1 %1338 }
0x1000   :  { %v1245_v43 = vpack.c.bf16 %v1176_v42, %v1176_v42  ;;  %v1227_v57 = vpop.permute.xlu0 %1226  ;;  %v1334_v31 = vrot.slane %v1176_v42, %v2832_v8  ;;  %v1325_v32 = vrot.slane %v1176_v42, %v2829_v7  ;;  %v1344_v35 = vrot.slane %v1176_v42, %v2835_v9 }
0x1001   :  { %v1230_v63 = vmul.f32 %v1227_v57, %v2963_v48 }
0x1002   :  { %2544 = vmatmul.mubr.msk.bf16.vlgmr.msra.gmra.mxu0 %vm256_vm6, %v1245_v43  ;;  %v1335_v34 = vmul.f32 %v1334_v31, %v1329_v0  ;;  %v1345_v45 = vmul.f32 %v1344_v35, %v1339_v41  ;;  %vm2339_vm6 = vcmask 26624  }
0x1003   :  { %v1232_v10 = vadd.f32 %v1230_v63, %v1220_v5  ;;  %v2457_v63 = vsel %vm1426_vm11, 1.0, %v2754_v39 }
0x1004   :  { %v1429_v3 = vsel %vm99_vm0, %v2457_v63, 0.0 }
0x1005   :  { %v1244_v14 = vadd.f32 %v1241_v13, %v1232_v10  ;;  %v1320_v30 = vpop.permute.xlu0 %1319  ;;  %v1183_v10 = vld [vmem:[%s3529_s5 + $0x170] sm:$0x7] }
0x1006   :  { %v1326_v33 = vmul.f32 %v1325_v32, %v1320_v30 }
0x1008   :  { %v1336_v43 = vadd.f32 %v1335_v34, %v1326_v33 }
0x1009   :  { %v1350_v17 = vpop.permute.xlu0 %1349 }
0x100a   :  { %v1346_v46 = vadd.f32 %v1345_v45, %v1336_v43 }
0x100c   :  { %v1352_v47 = vadd.f32 %v1350_v17, %v1346_v46 }
0x10c2   :  { %v1283_v44 = vpop.f32.mrf.mxu0 }
0x10c3   :  { %v1292_v15 = vrot.slane %v1283_v44, %v2829_v7  ;;  %v1297_v36 = vrot.slane %v1283_v44, %v2832_v8  ;;  %v1306_v40 = vrot.slane %v1283_v44, %v2835_v9 }
0x10c4   :  { %v2545_v16 = vpop.f32.mrf.mxu0 }
0x10c5   :  { %v1298_v56 = vmul.f32 %v1297_v36, %v1243_v12  ;;  %v1307_v18 = vmul.f32 %v1306_v40, %v1243_v12  ;;  %v1308_v19 = vmul.f32 %v1306_v40, %v1244_v14  ;;  %v1293_v21 = vmul.f32 %v1292_v15, %v1243_v12 }
0x10c6   :  { %v1286_v48 = vpop.f32.mrf.mxu0 }
0x10c7   :  { %v1300_v22 = vrot.slane %v1298_v56, 3  ;;  %v1311_v23 = vrot.slane %v1307_v18, 6  ;;  %v1312_v24 = vrot.slane %v1308_v19, 6 }
0x10c8   :  { %v2546_v11 = vpop.f32.mrf.mxu0 }
0x10c9   :  { %v1302_v25 = vadd.f32 %v1300_v22, %v1293_v21  ;;  %v1313_v27 = vsel %vm326_vm10, %v1311_v23, %v1312_v24 }
0x10cb   :  { %v1315_v28 = vadd.f32 %v1313_v27, %v1302_v25 }
0x10cd   :  { %v1316_v29 = vpack.c.bf16 %v1315_v28, %v1315_v28 }
0x10cf   :  { %2550 = vmatmul.mubr.msk.bf16.vlgmr.msra.gmra.mxu1 %vm369_vm9, %v1316_v29 }
0x118f   :  { %v1390_v49 = vpop.f32.mrf.mxu1 }
0x1190   :  { %v1391_v50 = vadd.f32 %v1390_v49, %v1352_v47 }
0x1191   :  { %v2551_v51 = vpop.f32.mrf.mxu1 }
0x1192   :  { %v1396_v52 = vmax.f32 %v1391_v50, 0.0 }
0x1193   :  { %v1393_v53 = vpop.f32.mrf.mxu1 }
0x1194   :  { %v1397_v54 = vsel %vm99_vm0, %v1396_v52, 0.0 }
0x1195   :  { %v2552_v55 = vpop.f32.mrf.mxu1  ;;  %1398 = vadd.xlane.f32.xlu1 %v1397_v54 }
0x1196   :  { %v2757_v55 = vmov 4  }
0x11a6   :  { %1418 = vperm.xlu1 %2645, %v1184_v61  }
0x11ca   :  { %1430 = vadd.xlane.f32.xlu1 %v1429_v3 }
0x121e   :  { %v1399_v57 = vpop.xlane.xlu1 %1398 }
0x121f   :  { %v1400_v58 = vmul.f32 0.1, %v1399_v57  ;;  %v2758_v57 = vmov 5  }
0x1221   :  { %v1401_v59 = vsub.f32 %v1396_v52, %v1400_v58 }
0x1222   :  { %v1419_v14 = vpop.permute.xlu1 %1418 }
0x1223   :  { %v1402_v60 = vmul.f32 %v1401_v59, %v1401_v59 }
0x1225   :  { %v1403_v42 = vsel %vm99_vm0, %v1402_v60, 0.0  ;;  %v1969_v60 = vld [vmem:[%s3529_s5 + $0x200] sm:$0x3f] }
0x1226   :  { %1404 = vadd.xlane.f32.xlu0 %v1403_v42  ;;  %v1981_v62 = vrot.slane %v1969_v60, %v2832_v8  ;;  %v1976_v3 = vrot.slane %v1969_v60, %v2829_v7 }
0x1253   :  { %v1431_v29 = vpop.xlane.xlu1 %1430 }
0x1254   :  { %v1432_v0 = vmax.f32 %v1431_v29, 1.0  ;;  %vm1435_vm15 = vcmp.gt.f32.partialorder %v1431_v29, 0.0 }
0x12af   :  { %v1405_v5 = vpop.xlane.xlu0 %1404 }
0x12b0   :  { %v1406_v26 = vmul.f32 0.1, %v1405_v5 }
0x12b2   :  { %v1407_v37 = vadd.f32 1e-05, %v1406_v26 }
0x12b4   :  { %2713 = vrsqrt.f32 %v1407_v37  ;;  %v1987_v37 = vrot.slane %v1969_v60, %v2835_v9 }
0x12b5   :  { %2715 = vrcp.f32 %v1432_v0 }
0x12c1   :  { %v2714_v12 = vpop.eup %2713 }
0x12c2   :  { %v1409_v13 = vmul.f32 %v2714_v12, %v1183_v10  ;;  %v2716_v31 = vpop.eup %2715  ;;  %v3295_v10 = vsub.s32 4, %v2826_v6 }
0x12c4   :  { %1412 = vperm.xlu0 %2642, %v1409_v13   ;;  %v1993_v13 = vrot.slane %v1969_v60, %v2953_v38 }
0x12c8   :  { %2646 = vset.pattern.permute.xlu0 %v2753_v4 }
0x133f   :  { %v1413_v44 = vpop.permute.xlu0 %1412 }
0x1340   :  { %v1415_v15 = vmul.f32 %v1413_v44, %v1401_v59  ;;  %v1488_v59 = vld [vmem:[%s3529_s5 + $0x180] sm:$0x3f] }
0x1341   :  { %v1509_v61 = vrot.slane %v1488_v59, %v2832_v8  ;;  %v1519_v26 = vrot.slane %v1488_v59, %v2835_v9  ;;  %v1529_v12 = vrot.slane %v1488_v59, %v2953_v38 }
0x1342   :  { %v1421_v39 = vadd.f32 %v1419_v14, %v1415_v15 }
0x1344   :  { %v1457_v36 = vrot.slane %v1421_v39, %v2835_v9  ;;  %v1439_v40 = vrot.slane %v1421_v39, %v2829_v7  ;;  %v1448_v16 = vrot.slane %v1421_v39, %v2832_v8 }
0x1346   :  { %v1458_v56 = vmul.f32 %v2457_v63, %v1457_v36  ;;  %v1440_v18 = vmul.f32 %v2457_v63, %v1439_v40  ;;  %v1449_v21 = vmul.f32 %v2457_v63, %v1448_v16  ;;  %v1468_v22 = vsel %vm1426_vm11, %v1448_v16, -3.4e+38 }
0x1347   :  { %v1469_v23 = vsel %vm99_vm0, %v1468_v22, -inf  ;;  %v1463_v11 = vsel %vm1426_vm11, %v1439_v40, -3.4e+38  ;;  %v1473_v27 = vsel %vm1426_vm11, %v1457_v36, -3.4e+38  ;;  %v1500_v63 = vrot.slane %v1488_v59, %v2829_v7 }
0x1348   :  { %v1459_v19 = vsel %vm99_vm0, %v1458_v56, 0.0  ;;  %v1441_v48 = vsel %vm99_vm0, %v1440_v18, 0.0  ;;  %v1450_v24 = vsel %vm99_vm0, %v1449_v21, 0.0  ;;  %v1464_v25 = vsel %vm99_vm0, %v1463_v11, -inf }
0x1349   :  { %1460 = vadd.xlane.f32.xlu1 %v1459_v19  ;;  %1442 = vadd.xlane.f32.xlu0 %v1441_v48  ;;  %v1474_v28 = vsel %vm99_vm0, %v1473_v27, -inf  ;;  %vm1484_vm0 = vcmask 31744   ;;  %v3300_v40 = vsub.s32 5, %v2826_v6  ;;  %v1539_v18 = vrot.slane %v1488_v59, %v3295_v10 }
0x134a   :  { %v1999_v19 = vrot.slane %v1969_v60, %v3295_v10 }
0x134b   :  { %v1549_v11 = vrot.slane %v1488_v59, %v3300_v40 }
0x134d   :  { %1470 = vmax.xlane.f32.xlu1 %v1469_v23  ;;  %1451 = vadd.xlane.f32.xlu0 %v1450_v24 }
0x1351   :  { %1465 = vmax.xlane.f32.xlu0 %v1464_v25  ;;  %v2005_v25 = vrot.slane %v1969_v60, %v3300_v40 }
0x1355   :  { %1475 = vmax.xlane.f32.xlu0 %v1474_v28 }
0x13d2   :  { %v1443_v30 = vpop.xlane.xlu0 %1442  ;;  %v1461_v32 = vpop.xlane.xlu1 %1460 }
0x13d3   :  { %v1444_v34 = vmul.f32 %v2716_v31, %v1443_v30  ;;  %v1462_v41 = vmul.f32 %v2716_v31, %v1461_v32 }
0x13d6   :  { %v1452_v33 = vpop.xlane.xlu0 %1451  ;;  %v1471_v17 = vpop.xlane.xlu1 %1470 }
0x13d7   :  { %v1453_v35 = vmul.f32 %v2716_v31, %v1452_v33  ;;  %v1472_v50 = vsel %vm1435_vm15, %v1471_v17, 0.0 }
0x13d9   :  { %v1479_v43 = vsel %vm1478_vm12, %v1444_v34, %v1453_v35 }
0x13da   :  { %v1466_v45 = vpop.xlane.xlu0 %1465  ;;  %v1481_v46 = vsel %vm1480_vm13, %v1479_v43, %v1462_v41  ;;  %v2458_v43 = vld [vmem:[%s3529_s5 + $0x188] ss:$0 sm:$0xff] }
0x13db   :  { %v1467_v47 = vsel %vm1435_vm15, %v1466_v45, 0.0  ;;  %v2466_v45 = vld [vmem:[%s3529_s5 + $0x208] ss:$0 sm:$0xff] }
0x13dc   :  { %v1483_v49 = vsel %vm1482_vm14, %v1481_v46, %v1467_v47 }
0x13dd   :  { %v1485_v53 = vsel %vm1484_vm0, %v1483_v49, %v1472_v50 }
0x13de   :  { %v1476_v51 = vpop.xlane.xlu0 %1475 }
0x13df   :  { %v1477_v52 = vsel %vm1435_vm15, %v1476_v51, 0.0 }
0x13e0   :  { %v1487_v54 = vsel %vm1486_vm1, %v1485_v53, %v1477_v52 }
0x13e1   :  { %1503 = vperm.xlu0 %2646, %v1487_v54   ;;  %1494 = vperm.xlu1 %2645, %v1487_v54  }
0x13e5   :  { %2647 = vset.pattern.permute.xlu1 %v2752_v2  ;;  %2654 = vset.pattern.permute.xlu0 %v2756_v20 }
0x13e6   :  { %1513 = vperm.xlu1 %2647, %v1487_v54  }
0x13ea   :  { %2648 = vset.pattern.permute.xlu1 %v2756_v20 }
0x13eb   :  { %1523 = vperm.xlu1 %2648, %v1487_v54  }
0x13ef   :  { %2649 = vset.pattern.permute.xlu1 %v2757_v55 }
0x13f0   :  { %1533 = vperm.xlu1 %2649, %v1487_v54  }
0x13f4   :  { %2650 = vset.pattern.permute.xlu1 %v2758_v57 }
0x13f5   :  { %1543 = vperm.xlu1 %2650, %v1487_v54  }
0x13f9   :  { %2651 = vset.pattern.permute.xlu1 %v2751_v1 }
0x145c   :  { %v1495_v58 = vpop.permute.xlu1 %1494  ;;  %v1504_v5 = vpop.permute.xlu0 %1503 }
0x145d   :  { %v1510_v14 = vmul.f32 %v1509_v61, %v1504_v5  ;;  %v1982_v15 = vmul.f32 %v1981_v62, %v1504_v5  ;;  %v1501_v39 = vmul.f32 %v1500_v63, %v1495_v58  ;;  %v1977_v36 = vmul.f32 %v1976_v3, %v1495_v58 }
0x145f   :  { %v1511_v48 = vadd.f32 %v1510_v14, %v1501_v39  ;;  %v1983_v21 = vadd.f32 %v1982_v15, %v1977_v36 }
0x1461   :  { %v1514_v42 = vpop.permute.xlu1 %1513 }
0x1462   :  { %v1520_v16 = vmul.f32 %v1519_v26, %v1514_v42  ;;  %v1988_v56 = vmul.f32 %v1987_v37, %v1514_v42 }
0x1464   :  { %v1521_v27 = vadd.f32 %v1520_v16, %v1511_v48  ;;  %v1989_v28 = vadd.f32 %v1988_v56, %v1983_v21 }
0x1466   :  { %v1524_v44 = vpop.permute.xlu1 %1523 }
0x1467   :  { %v1530_v22 = vmul.f32 %v1529_v12, %v1524_v44  ;;  %v1994_v23 = vmul.f32 %v1993_v13, %v1524_v44 }
0x1469   :  { %v1531_v30 = vadd.f32 %v1530_v22, %v1521_v27  ;;  %v1995_v31 = vadd.f32 %v1994_v23, %v1989_v28 }
0x146b   :  { %v1534_v24 = vpop.permute.xlu1 %1533 }
0x146c   :  { %v1540_v29 = vmul.f32 %v1539_v18, %v1534_v24  ;;  %v2000_v0 = vmul.f32 %v1999_v19, %v1534_v24 }
0x146e   :  { %v1541_v33 = vadd.f32 %v1540_v29, %v1531_v30  ;;  %v2001_v34 = vadd.f32 %v2000_v0, %v1995_v31  ;;  %v1971_v31 = vld [vmem:[%s3529_s5 + $0x210] sm:$0x1] }
0x1470   :  { %v1544_v32 = vpop.permute.xlu1 %1543 }
0x1471   :  { %v1550_v35 = vmul.f32 %v1549_v11, %v1544_v32  ;;  %v2006_v41 = vmul.f32 %v2005_v25, %v1544_v32 }
0x1473   :  { %v1551_v46 = vadd.f32 %v1550_v35, %v1541_v33  ;;  %v2007_v17 = vadd.f32 %v2006_v41, %v2001_v34  ;;  %v2467_v41 = vld [vmem:[%s3529_s5 + $0x218] ss:$0 sm:$0xff] }
0x1475   :  { %v1556_v47 = vadd.f32 %v2458_v43, %v1551_v46  ;;  %v2012_v49 = vadd.f32 %v2466_v45, %v2007_v17  ;;  %v2759_v46 = vmov 6  }
0x1477   :  { %v1557_v50 = vmax.f32 %v1556_v47, 0.0  ;;  %v2013_v51 = vmax.f32 %v2012_v49, 0.0  ;;  %v1490_v47 = vld [vmem:[%s3529_s5 + $0x190] sm:$0x1]  ;;  %v2760_v49 = vmov 9  }
0x1479   :  { %v1559_v52 = vsel %vm1558_vm2, %v1557_v50, 0.0  ;;  %v2015_v53 = vsel %vm2014_vm3, %v2013_v51, 0.0 }
0x147a   :  { %v1560_v54 = vrot.slane %v1559_v52, 4  ;;  %v2016_v58 = vrot.slane %v2015_v53, 4 }
0x147c   :  { %v1561_v59 = vadd.f32 %v1560_v54, %v1559_v52  ;;  %v2017_v60 = vadd.f32 %v2016_v58, %v2015_v53  ;;  %v2762_v54 = vmov 15   ;;  %v2459_v58 = vld [vmem:[%s3529_s5 + $0x198] ss:$0 sm:$0xff] }
0x147e   :  { %v1562_v42 = vrot.slane %v1561_v59, 2  ;;  %v2018_v61 = vrot.slane %v2017_v60, 2 }
0x1480   :  { %v1563_v62 = vadd.f32 %v1562_v42, %v1561_v59  ;;  %v2019_v63 = vadd.f32 %v2018_v61, %v2017_v60  ;;  %v2763_v60 = vmov 7   ;;  %v2764_v42 = vmov 8  }
0x1481   :  { %v2765_v61 = vmov 10  }
0x1482   :  { %v1564_v3 = vrot.slane %v1563_v62, 1  ;;  %v2020_v5 = vrot.slane %v2019_v63, 1 }
0x1484   :  { %v1565_v26 = vadd.f32 %v1564_v3, %v1563_v62  ;;  %v2021_v37 = vadd.f32 %v2020_v5, %v2019_v63  ;;  %v2766_v62 = vmov 11   ;;  %v2767_v63 = vmov 13  }
0x1485   :  { %v2768_v3 = vmov 14  }
0x1486   :  { %v1567_v12 = vmul.f32 0.33333334, %v1565_v26  ;;  %v2022_v13 = vmul.f32 0.33333334, %v2021_v37  ;;  %v2046_v26 = vld [vmem:[%s3529_s5 + $0x220] sm:$0xff] }
0x1487   :  { %v2068_v37 = vrot.slane %v2046_v26, %v2832_v8 }
0x1488   :  { %v1568_v44 = vsub.f32 %v1557_v50, %v1567_v12  ;;  %v2023_v14 = vsub.f32 %v2013_v51, %v2022_v13  ;;  %v2761_v51 = vmov 12   ;;  %v2059_v12 = vrot.slane %v2046_v26, %v2829_v7 }
0x148a   :  { %v1569_v15 = vmul.f32 %v1568_v44, %v1568_v44  ;;  %v2024_v39 = vmul.f32 %v2023_v14, %v2023_v14 }
0x148c   :  { %v1570_v36 = vsel %vm1558_vm2, %v1569_v15, 0.0  ;;  %v2025_v16 = vsel %vm2014_vm3, %v2024_v39, 0.0 }
0x148d   :  { %v2026_v56 = vrot.slane %v2025_v16, 4  ;;  %v1571_v18 = vrot.slane %v1570_v36, 4 }
0x148f   :  { %v2027_v19 = vadd.f32 %v2026_v56, %v2025_v16  ;;  %v1572_v21 = vadd.f32 %v1571_v18, %v1570_v36  ;;  %v2088_v36 = vrot.slane %v2046_v26, %v2953_v38 }
0x1491   :  { %v2028_v48 = vrot.slane %v2027_v19, 2  ;;  %v1573_v24 = vrot.slane %v1572_v21, 2 }
0x1493   :  { %v2029_v22 = vadd.f32 %v2028_v48, %v2027_v19  ;;  %v1574_v27 = vadd.f32 %v1573_v24, %v1572_v21  ;;  %v2098_v48 = vrot.slane %v2046_v26, %v3295_v10 }
0x1495   :  { %v2030_v23 = vrot.slane %v2029_v22, 1  ;;  %v1575_v29 = vrot.slane %v1574_v27, 1 }
0x1497   :  { %v2031_v11 = vadd.f32 %v2030_v23, %v2029_v22  ;;  %v1576_v0 = vadd.f32 %v1575_v29, %v1574_v27  ;;  %v3357_v23 = vsub.s32 6, %v2826_v6 }
0x1499   :  { %v2032_v25 = vmul.f32 0.33333334, %v2031_v11  ;;  %v1577_v30 = vmul.f32 0.33333334, %v1576_v0  ;;  %v3362_v0 = vsub.s32 7, %v2826_v6 }
0x149b   :  { %v2033_v28 = vadd.f32 1e-05, %v2032_v25  ;;  %v1578_v33 = vadd.f32 1e-05, %v1577_v30  ;;  %v2108_v25 = vrot.slane %v2046_v26, %v3300_v40 }
0x149d   :  { %2717 = vrsqrt.f32 %v2033_v28  ;;  %v2118_v28 = vrot.slane %v2046_v26, %v3357_v23 }
0x149e   :  { %2719 = vrsqrt.f32 %v1578_v33  ;;  %v2128_v33 = vrot.slane %v2046_v26, %v3362_v0 }
0x14aa   :  { %v2718_v32 = vpop.eup %2717 }
0x14ab   :  { %v2035_v34 = vmul.f32 %v2718_v32, %v1971_v31  ;;  %v2720_v17 = vpop.eup %2719 }
0x14ac   :  { %v1580_v50 = vmul.f32 %v2720_v17, %v1490_v47 }
0x14ad   :  { %v2039_v35 = vrot.slane %v2035_v34, %v2829_v7 }
0x14ae   :  { %v1584_v52 = vrot.slane %v1580_v50, %v2829_v7 }
0x14af   :  { %v2040_v43 = vmul.f32 %v2039_v35, %v2023_v14  ;;  %v2078_v14 = vrot.slane %v2046_v26, %v2835_v9 }
0x14b0   :  { %v1585_v53 = vmul.f32 %v1584_v52, %v1568_v44 }
0x14b1   :  { %v2045_v45 = vadd.f32 %v2467_v41, %v2040_v43  ;;  %v2047_v41 = vld [vmem:[%s3529_s5 + $0x228] sm:$0xff] }
0x14b2   :  { %v1590_v59 = vadd.f32 %v2459_v58, %v1585_v53  ;;  %v2138_v17 = vrot.slane %v2047_v41, %v2829_v7  ;;  %v2158_v53 = vrot.slane %v2047_v41, %v2835_v9 }
0x14b3   :  { %2082 = vperm.xlu0 %2654, %v2045_v45   ;;  %2053 = vperm.xlu1 %2651, %v2045_v45  }
0x14b7   :  { %2657 = vset.pattern.permute.xlu0 %v2759_v46  ;;  %2652 = vset.pattern.permute.xlu1 %v2753_v4 }
0x14b8   :  { %2112 = vperm.xlu0 %2657, %v2045_v45   ;;  %2062 = vperm.xlu1 %2652, %v2045_v45  }
0x14bc   :  { %2660 = vset.pattern.permute.xlu0 %v2760_v49  ;;  %2653 = vset.pattern.permute.xlu1 %v2752_v2 }
0x14bd   :  { %2142 = vperm.xlu0 %2660, %v2045_v45   ;;  %2072 = vperm.xlu1 %2653, %v2045_v45  }
0x14c1   :  { %2663 = vset.pattern.permute.xlu0 %v2761_v51  ;;  %2655 = vset.pattern.permute.xlu1 %v2757_v55 }
0x14c2   :  { %2172 = vperm.xlu0 %2663, %v2045_v45   ;;  %2092 = vperm.xlu1 %2655, %v2045_v45  }
0x14c6   :  { %2666 = vset.pattern.permute.xlu0 %v2762_v54  ;;  %2656 = vset.pattern.permute.xlu1 %v2758_v57 }
0x14c7   :  { %2202 = vperm.xlu0 %2666, %v2045_v45   ;;  %2102 = vperm.xlu1 %2656, %v2045_v45  }
0x14cb   :  { %2669 = vset.pattern.permute.xlu0 %v2752_v2  ;;  %2658 = vset.pattern.permute.xlu1 %v2763_v60 }
0x14cc   :  { %2122 = vperm.xlu1 %2658, %v2045_v45   ;;  %1617 = vperm.xlu0 %2669, %v1590_v59  }
0x14d0   :  { %2659 = vset.pattern.permute.xlu1 %v2764_v42  ;;  %2672 = vset.pattern.permute.xlu0 %v2758_v57 }
0x14d1   :  { %2132 = vperm.xlu1 %2659, %v2045_v45   ;;  %1647 = vperm.xlu0 %2672, %v1590_v59  }
0x14d5   :  { %2661 = vset.pattern.permute.xlu1 %v2765_v61  ;;  %2675 = vset.pattern.permute.xlu0 %v2764_v42 }
0x14d6   :  { %2152 = vperm.xlu1 %2661, %v2045_v45   ;;  %1677 = vperm.xlu0 %2675, %v1590_v59  }
0x14da   :  { %2662 = vset.pattern.permute.xlu1 %v2766_v62  ;;  %2678 = vset.pattern.permute.xlu0 %v2766_v62  ;;  %v2168_v62 = vrot.slane %v2047_v41, %v2953_v38 }
0x14db   :  { %2162 = vperm.xlu1 %2662, %v2045_v45   ;;  %1707 = vperm.xlu0 %2678, %v1590_v59  }
0x14df   :  { %2664 = vset.pattern.permute.xlu1 %v2767_v63  ;;  %2681 = vset.pattern.permute.xlu0 %v2752_v2 }
0x14e0   :  { %2182 = vperm.xlu1 %2664, %v2045_v45  }
0x14e4   :  { %2665 = vset.pattern.permute.xlu1 %v2768_v3  ;;  %v2178_v3 = vrot.slane %v2047_v41, %v3295_v10 }
0x14e5   :  { %2192 = vperm.xlu1 %2665, %v2045_v45  }
0x14e9   :  { %2667 = vset.pattern.permute.xlu1 %v2751_v1 }
0x14ea   :  { %1598 = vperm.xlu1 %2667, %v1590_v59  }
0x14ee   :  { %2668 = vset.pattern.permute.xlu1 %v2753_v4 }
0x14ef   :  { %1607 = vperm.xlu1 %2668, %v1590_v59  }
0x14f3   :  { %2670 = vset.pattern.permute.xlu1 %v2756_v20 }
0x14f4   :  { %1627 = vperm.xlu1 %2670, %v1590_v59  }
0x14f8   :  { %2671 = vset.pattern.permute.xlu1 %v2757_v55 }
0x14f9   :  { %1637 = vperm.xlu1 %2671, %v1590_v59  }
0x14fd   :  { %2673 = vset.pattern.permute.xlu1 %v2759_v46 }
0x14fe   :  { %1657 = vperm.xlu1 %2673, %v1590_v59  }
0x1502   :  { %2674 = vset.pattern.permute.xlu1 %v2763_v60 }
0x1503   :  { %1667 = vperm.xlu1 %2674, %v1590_v59  }
0x1507   :  { %2676 = vset.pattern.permute.xlu1 %v2760_v49  ;;  %v2148_v49 = vrot.slane %v2047_v41, %v2832_v8 }
0x1508   :  { %1687 = vperm.xlu1 %2676, %v1590_v59  }
0x150c   :  { %2677 = vset.pattern.permute.xlu1 %v2765_v61 }
0x150d   :  { %1697 = vperm.xlu1 %2677, %v1590_v59  }
0x1511   :  { %2679 = vset.pattern.permute.xlu1 %v2751_v1 }
0x152e   :  { %v2054_v5 = vpop.permute.xlu1 %2053  ;;  %v2083_v18 = vpop.permute.xlu0 %2082 }
0x152f   :  { %v2060_v15 = vmul.f32 %v2059_v12, %v2054_v5  ;;  %v2089_v21 = vmul.f32 %v2088_v36, %v2083_v18  ;;  %v2198_v36 = vrot.slane %v2047_v41, %v3357_v23 }
0x1533   :  { %v2063_v13 = vpop.permute.xlu1 %2062  ;;  %v2113_v31 = vpop.permute.xlu0 %2112 }
0x1534   :  { %v2069_v44 = vmul.f32 %v2068_v37, %v2063_v13  ;;  %v2119_v34 = vmul.f32 %v2118_v28, %v2113_v31  ;;  %v2188_v13 = vrot.slane %v2047_v41, %v3300_v40 }
0x1536   :  { %v2070_v16 = vadd.f32 %v2069_v44, %v2060_v15 }
0x1538   :  { %v2073_v39 = vpop.permute.xlu1 %2072  ;;  %v2143_v51 = vpop.permute.xlu0 %2142 }
0x1539   :  { %v2079_v56 = vmul.f32 %v2078_v14, %v2073_v39  ;;  %v2149_v54 = vmul.f32 %v2148_v49, %v2143_v51 }
0x153b   :  { %v2080_v19 = vadd.f32 %v2079_v56, %v2070_v16  ;;  %v2208_v16 = vrot.slane %v2047_v41, %v3362_v0 }
0x153d   :  { %v2093_v22 = vpop.permute.xlu1 %2092  ;;  %v2090_v24 = vadd.f32 %v2089_v21, %v2080_v19  ;;  %v2173_v37 = vpop.permute.xlu0 %2172 }
0x153e   :  { %v2099_v11 = vmul.f32 %v2098_v48, %v2093_v22  ;;  %v2179_v44 = vmul.f32 %v2178_v3, %v2173_v37 }
0x1540   :  { %v2100_v29 = vadd.f32 %v2099_v11, %v2090_v24  ;;  %v2468_v24 = vld [vmem:[%s3529_s5 + $0x230] ss:$0 sm:$0xff] }
0x1542   :  { %v2103_v27 = vpop.permute.xlu1 %2102  ;;  %v2203_v56 = vpop.permute.xlu0 %2202 }
0x1543   :  { %v2109_v30 = vmul.f32 %v2108_v25, %v2103_v27  ;;  %v2209_v21 = vmul.f32 %v2208_v16, %v2203_v56  ;;  %v1591_v27 = vld [vmem:[%s3529_s5 + $0x1a0] sm:$0xff]  ;;  %v1592_v56 = vld [vmem:[%s3529_s5 + $0x1a8] sm:$0xf] }
0x1544   :  { %v1673_v16 = vrot.slane %v1591_v27, %v3362_v0 }
0x1545   :  { %v2110_v32 = vadd.f32 %v2109_v30, %v2100_v29  ;;  %v1604_v29 = vrot.slane %v1591_v27, %v2829_v7  ;;  %v1613_v30 = vrot.slane %v1591_v27, %v2832_v8 }
0x1547   :  { %v2123_v35 = vpop.permute.xlu1 %2122  ;;  %v2120_v43 = vadd.f32 %v2119_v34, %v2110_v32 }
0x1548   :  { %v2129_v45 = vmul.f32 %v2128_v33, %v2123_v35  ;;  %v1623_v33 = vrot.slane %v1591_v27, %v2835_v9 }
0x154a   :  { %v2130_v6 = vadd.f32 %v2129_v45, %v2120_v43  ;;  %v1618_v43 = vpop.permute.xlu0 %1617 }
0x154c   :  { %v2133_v47 = vpop.permute.xlu1 %2132 }
0x154d   :  { %v2139_v50 = vmul.f32 %v2138_v17, %v2133_v47  ;;  %v1633_v47 = vrot.slane %v1591_v27, %v2953_v38 }
0x154f   :  { %v2140_v52 = vadd.f32 %v2139_v50, %v2130_v6  ;;  %v1624_v6 = vmul.f32 %v1623_v33, %v1618_v43  ;;  %v1713_v43 = vrot.slane %v1592_v56, %v2953_v38 }
0x1551   :  { %v2153_v58 = vpop.permute.xlu1 %2152  ;;  %v2150_v59 = vadd.f32 %v2149_v54, %v2140_v52  ;;  %v1643_v54 = vrot.slane %v1591_v27, %v3295_v10 }
0x1552   :  { %v2159_v61 = vmul.f32 %v2158_v53, %v2153_v58 }
0x1554   :  { %v2160_v5 = vadd.f32 %v2159_v61, %v2150_v59 }
0x1556   :  { %v2163_v63 = vpop.permute.xlu1 %2162 }
0x1557   :  { %v2169_v26 = vmul.f32 %v2168_v62, %v2163_v63  ;;  %v1653_v62 = vrot.slane %v1591_v27, %v3300_v40 }
0x1559   :  { %v2170_v12 = vadd.f32 %v2169_v26, %v2160_v5  ;;  %v1648_v5 = vpop.permute.xlu0 %1647 }
0x155b   :  { %v2183_v14 = vpop.permute.xlu1 %2182  ;;  %v2180_v15 = vadd.f32 %v2179_v44, %v2170_v12  ;;  %v1663_v12 = vrot.slane %v1591_v27, %v3357_v23  ;;  %v1654_v44 = vmul.f32 %v1653_v62, %v1648_v5 }
0x155c   :  { %v2189_v39 = vmul.f32 %v2188_v13, %v2183_v14 }
0x155e   :  { %v2190_v19 = vadd.f32 %v2189_v39, %v2180_v15 }
0x1560   :  { %v2193_v18 = vpop.permute.xlu1 %2192 }
0x1561   :  { %v2199_v48 = vmul.f32 %v2198_v36, %v2193_v18 }
0x1563   :  { %v2200_v22 = vadd.f32 %v2199_v48, %v2190_v19 }
0x1565   :  { %v2210_v11 = vadd.f32 %v2209_v21, %v2200_v22  ;;  %v1599_v25 = vpop.permute.xlu1 %1598  ;;  %v1683_v21 = vrot.slane %v1592_v56, %v2829_v7 }
0x1566   :  { %v1605_v35 = vmul.f32 %v1604_v29, %v1599_v25  ;;  %v1678_v25 = vpop.permute.xlu0 %1677 }
0x1567   :  { %v2215_v28 = vadd.f32 %v2468_v24, %v2210_v11 }
0x1569   :  { %v2216_v31 = vmax.f32 %v2215_v28, 0.0 }
0x156a   :  { %v1608_v32 = vpop.permute.xlu1 %1607 }
0x156b   :  { %v2218_v34 = vsel %vm2217_vm4, %v2216_v31, 0.0  ;;  %v1614_v41 = vmul.f32 %v1613_v30, %v1608_v32  ;;  %v1693_v30 = vrot.slane %v1592_v56, %v2832_v8 }
0x156c   :  { %v2219_v45 = vrot.slane %v2218_v34, 4 }
0x156d   :  { %v1615_v17 = vadd.f32 %v1614_v41, %v1605_v35  ;;  %v1703_v41 = vrot.slane %v1592_v56, %v2835_v9 }
0x156e   :  { %v2220_v49 = vadd.f32 %v2219_v45, %v2218_v34 }
0x156f   :  { %v1628_v50 = vpop.permute.xlu1 %1627  ;;  %v1625_v52 = vadd.f32 %v1624_v6, %v1615_v17  ;;  %v1708_v17 = vpop.permute.xlu0 %1707 }
0x1570   :  { %v2221_v51 = vrot.slane %v2220_v49, 2  ;;  %v1634_v53 = vmul.f32 %v1633_v47, %v1628_v50 }
0x1572   :  { %v2222_v58 = vadd.f32 %v2221_v51, %v2220_v49  ;;  %v1635_v63 = vadd.f32 %v1634_v53, %v1625_v52  ;;  %v1714_v51 = vmul.f32 %v1713_v43, %v1708_v17 }
0x1574   :  { %v2223_v59 = vrot.slane %v2222_v58, 1  ;;  %v1638_v61 = vpop.permute.xlu1 %1637 }
0x1575   :  { %v1644_v3 = vmul.f32 %v1643_v54, %v1638_v61  ;;  %v2460_v54 = vld [vmem:[%s3529_s5 + $0x1b0] ss:$0 sm:$0xff] }
0x1576   :  { %v2224_v26 = vadd.f32 %v2223_v59, %v2222_v58 }
0x1577   :  { %v1645_v37 = vadd.f32 %v1644_v3, %v1635_v63 }
0x1578   :  { %v2225_v13 = vmul.f32 0.33333334, %v2224_v26 }
0x1579   :  { %v1658_v14 = vpop.permute.xlu1 %1657  ;;  %v1655_v39 = vadd.f32 %v1654_v44, %v1645_v37  ;;  %v2049_v37 = vld [vmem:[%s3529_s5 + $0x238] sm:$0x1] }
0x157a   :  { %v2226_v15 = vsub.f32 %v2216_v31, %v2225_v13  ;;  %v1664_v36 = vmul.f32 %v1663_v12, %v1658_v14  ;;  %v1684_v31 = vmul.f32 %v1683_v21, %v1678_v25 }
0x157c   :  { %v2227_v18 = vmul.f32 %v2226_v15, %v2226_v15  ;;  %v1665_v24 = vadd.f32 %v1664_v36, %v1655_v39 }
0x157e   :  { %v2228_v19 = vsel %vm2217_vm4, %v2227_v18, 0.0  ;;  %v1668_v48 = vpop.permute.xlu1 %1667 }
0x157f   :  { %v2229_v22 = vrot.slane %v2228_v19, 4  ;;  %v1674_v11 = vmul.f32 %v1673_v16, %v1668_v48  ;;  %v2469_v16 = vld [vmem:[%s3529_s5 + $0x240] ss:$0 sm:$0xff] }
0x1581   :  { %v2230_v28 = vadd.f32 %v2229_v22, %v2228_v19  ;;  %v1675_v29 = vadd.f32 %v1674_v11, %v1665_v24 }
0x1583   :  { %v2231_v27 = vrot.slane %v2230_v28, 2  ;;  %v1688_v32 = vpop.permute.xlu1 %1687  ;;  %v1685_v34 = vadd.f32 %v1684_v31, %v1675_v29 }
0x1584   :  { %v1694_v35 = vmul.f32 %v1693_v30, %v1688_v32 }
0x1585   :  { %v2232_v33 = vadd.f32 %v2231_v27, %v2230_v28  ;;  %v1594_v27 = vld [vmem:[%s3529_s5 + $0x1b8] sm:$0x1] }
0x1586   :  { %v1695_v6 = vadd.f32 %v1694_v35, %v1685_v34  ;;  %v2461_v35 = vld [vmem:[%s3529_s5 + $0x1c0] ss:$0 sm:$0xff] }
0x1587   :  { %v2233_v45 = vrot.slane %v2232_v33, 1 }
0x1588   :  { %v1698_v47 = vpop.permute.xlu1 %1697 }
0x1589   :  { %v2234_v49 = vadd.f32 %v2233_v45, %v2232_v33  ;;  %v1704_v50 = vmul.f32 %v1703_v41, %v1698_v47  ;;  %v3433_v45 = vld [vmem:[%s3529_s5 + $0x1f0] sm:$0x3f] }
0x158a   :  { %v1925_v17 = vrot.slane %v3433_v45, %v2953_v38 }
0x158b   :  { %v2235_v52 = vmul.f32 0.33333334, %v2234_v49  ;;  %v1705_v53 = vadd.f32 %v1704_v50, %v1695_v6 }
0x158d   :  { %v2236_v58 = vadd.f32 1e-05, %v2235_v52  ;;  %v1715_v59 = vadd.f32 %v1714_v51, %v1705_v53 }
0x158f   :  { %2721 = vrsqrt.f32 %v2236_v58  ;;  %v1720_v61 = vadd.f32 %v2460_v54, %v1715_v59 }
0x1591   :  { %v1721_v62 = vmax.f32 %v1720_v61, 0.0 }
0x1593   :  { %v1723_v63 = vsel %vm1722_vm5, %v1721_v62, 0.0 }
0x1594   :  { %v1724_v3 = vrot.slane %v1723_v63, 4 }
0x1596   :  { %v1725_v5 = vadd.f32 %v1724_v3, %v1723_v63 }
0x1598   :  { %v1726_v26 = vrot.slane %v1725_v5, 2 }
0x159a   :  { %v1727_v12 = vadd.f32 %v1726_v26, %v1725_v5 }
0x159c   :  { %v2722_v13 = vpop.eup %2721  ;;  %v1728_v44 = vrot.slane %v1727_v12, 1 }
0x159d   :  { %v2238_v14 = vmul.f32 %v2722_v13, %v2049_v37 }
0x159e   :  { %v1729_v39 = vadd.f32 %v1728_v44, %v1727_v12 }
0x159f   :  { %v2242_v36 = vrot.slane %v2238_v14, %v2829_v7 }
0x15a0   :  { %v1730_v56 = vmul.f32 0.33333334, %v1729_v39 }
0x15a1   :  { %v2243_v18 = vmul.f32 %v2242_v36, %v2226_v15 }
0x15a2   :  { %v1731_v19 = vsub.f32 %v1721_v62, %v1730_v56 }
0x15a3   :  { %v2248_v48 = vadd.f32 %v2469_v16, %v2243_v18 }
0x15a4   :  { %v1732_v21 = vmul.f32 %v1731_v19, %v1731_v19 }
0x15a5   :  { %2274 = vperm.xlu0 %2681, %v2248_v48   ;;  %2255 = vperm.xlu1 %2679, %v2248_v48  }
0x15a6   :  { %v1733_v22 = vsel %vm1722_vm5, %v1732_v21, 0.0 }
0x15a7   :  { %v1734_v24 = vrot.slane %v1733_v22, 4 }
0x15a9   :  { %v1735_v11 = vadd.f32 %v1734_v24, %v1733_v22  ;;  %2684 = vset.pattern.permute.xlu0 %v2758_v57  ;;  %2680 = vset.pattern.permute.xlu1 %v2753_v4 }
0x15aa   :  { %2304 = vperm.xlu0 %2684, %v2248_v48   ;;  %2264 = vperm.xlu1 %2680, %v2248_v48  }
0x15ab   :  { %v1736_v25 = vrot.slane %v1735_v11, 2 }
0x15ad   :  { %v1737_v28 = vadd.f32 %v1736_v25, %v1735_v11  ;;  %v1754_v25 = vld [vmem:[%s3529_s5 + $0x1c8] sm:$0xff] }
0x15ae   :  { %2682 = vset.pattern.permute.xlu1 %v2756_v20  ;;  %2687 = vset.pattern.permute.xlu0 %v2751_v1 }
0x15af   :  { %v1738_v15 = vrot.slane %v1737_v28, 1  ;;  %2284 = vperm.xlu1 %2682, %v2248_v48  }
0x15b1   :  { %v1739_v29 = vadd.f32 %v1738_v15, %v1737_v28  ;;  %v1767_v15 = vrot.slane %v1754_v25, %v2829_v7 }
0x15b3   :  { %v1740_v30 = vmul.f32 0.33333334, %v1739_v29  ;;  %2683 = vset.pattern.permute.xlu1 %v2757_v55  ;;  %v1776_v29 = vrot.slane %v1754_v25, %v2832_v8 }
0x15b4   :  { %2294 = vperm.xlu1 %2683, %v2248_v48  }
0x15b5   :  { %v1741_v31 = vadd.f32 1e-05, %v1740_v30 }
0x15b7   :  { %2723 = vrsqrt.f32 %v1741_v31 }
0x15b8   :  { %2685 = vset.pattern.permute.xlu1 %v2759_v46 }
0x15b9   :  { %2314 = vperm.xlu1 %2685, %v2248_v48  }
0x15bd   :  { %2686 = vset.pattern.permute.xlu1 %v2763_v60 }
0x15be   :  { %2324 = vperm.xlu1 %2686, %v2248_v48  }
0x15c2   :  { %2688 = vset.pattern.permute.xlu1 %v2753_v4 }
0x15c4   :  { %v2724_v32 = vpop.eup %2723 }
0x15c5   :  { %v1743_v33 = vmul.f32 %v2724_v32, %v1594_v27 }
0x15c7   :  { %v1747_v34 = vrot.slane %v1743_v33, %v2829_v7 }
0x15c9   :  { %v1748_v41 = vmul.f32 %v1747_v34, %v1731_v19  ;;  %v2470_v19 = vld [vmem:[%s3529_s5 + $0x250] ss:$0 sm:$0xff] }
0x15cb   :  { %v1753_v43 = vadd.f32 %v2461_v35, %v1748_v41  ;;  %v1786_v35 = vrot.slane %v1754_v25, %v2835_v9 }
0x15cd   :  { %1770 = vperm.xlu1 %2688, %v1753_v43   ;;  %1761 = vperm.xlu0 %2687, %v1753_v43  }
0x15d1   :  { %2689 = vset.pattern.permute.xlu1 %v2752_v2  ;;  %2690 = vset.pattern.permute.xlu0 %v2756_v20 }
0x15d2   :  { %1780 = vperm.xlu1 %2689, %v1753_v43   ;;  %1790 = vperm.xlu0 %2690, %v1753_v43  }
0x15d6   :  { %2691 = vset.pattern.permute.xlu1 %v2757_v55  ;;  %2693 = vset.pattern.permute.xlu0 %v2759_v46  ;;  %v1897_v55 = vrot.slane %v3433_v45, %v2832_v8 }
0x15d7   :  { %1800 = vperm.xlu1 %2691, %v1753_v43   ;;  %1820 = vperm.xlu0 %2693, %v1753_v43  }
0x15db   :  { %2692 = vset.pattern.permute.xlu1 %v2758_v57  ;;  %1927 = vrot.lane.b32.xlu0 %v1925_v17, %s2769_s24  ;;  %v1911_v57 = vrot.slane %v3433_v45, %v2835_v9 }
0x15dc   :  { %1810 = vperm.xlu1 %2692, %v1753_v43   ;;  %2696 = vset.pattern.permute.xlu0 %v2751_v1  ;;  %v2249_v1 = vld [vmem:[%s3529_s5 + $0x248] sm:$0xff] }
0x15dd   :  { %v2280_v49 = vrot.slane %v2249_v1, %v2835_v9  ;;  %v2300_v61 = vrot.slane %v2249_v1, %v3295_v10  ;;  %v2310_v63 = vrot.slane %v2249_v1, %v3300_v40  ;;  %v2320_v12 = vrot.slane %v2249_v1, %v3357_v23 }
0x15de   :  { %v2330_v36 = vrot.slane %v2249_v1, %v3362_v0 }
0x15e0   :  { %2694 = vset.pattern.permute.xlu1 %v2763_v60  ;;  %v2261_v60 = vrot.slane %v2249_v1, %v2829_v7 }
0x15e1   :  { %1830 = vperm.xlu1 %2694, %v1753_v43  }
0x15e5   :  { %2695 = vset.pattern.permute.xlu1 %v2764_v42  ;;  %v2270_v42 = vrot.slane %v2249_v1, %v2832_v8 }
0x15e6   :  { %1840 = vperm.xlu1 %2695, %v1753_v43  }
0x15ea   :  { %1899 = vrot.lane.b32.xlu1 %v1897_v55, %s2770_s25 }
0x15eb   :  { %2697 = vset.pattern.permute.xlu1 %v2753_v4  ;;  %v2290_v4 = vrot.slane %v2249_v1, %v2953_v38 }
0x15ee   :  { %1913 = vrot.lane.b32.xlu1 %v1911_v57, %s2771_s26  ;;  %v1796_v57 = vrot.slane %v1754_v25, %v2953_v38  ;;  %s2777_s26 = smov 123  }
0x1620   :  { %v2256_v46 = vpop.permute.xlu1 %2255  ;;  %v2275_v51 = vpop.permute.xlu0 %2274 }
0x1621   :  { %v2262_v6 = vmul.f32 %v2261_v60, %v2256_v46  ;;  %v2281_v53 = vmul.f32 %v2280_v49, %v2275_v51 }
0x1625   :  { %v2265_v47 = vpop.permute.xlu1 %2264  ;;  %v2305_v26 = vpop.permute.xlu0 %2304 }
0x1626   :  { %v2271_v50 = vmul.f32 %v2270_v42, %v2265_v47  ;;  %v2311_v13 = vmul.f32 %v2310_v63, %v2305_v26  ;;  %v1806_v47 = vrot.slane %v1754_v25, %v3295_v10 }
0x1628   :  { %v2272_v52 = vadd.f32 %v2271_v50, %v2262_v6 }
0x162a   :  { %v2285_v54 = vpop.permute.xlu1 %2284  ;;  %v2282_v58 = vadd.f32 %v2281_v53, %v2272_v52  ;;  %v1816_v53 = vrot.slane %v1754_v25, %v3300_v40 }
0x162b   :  { %v2291_v59 = vmul.f32 %v2290_v4, %v2285_v54 }
0x162d   :  { %v2292_v3 = vadd.f32 %v2291_v59, %v2282_v58 }
0x162f   :  { %v2295_v62 = vpop.permute.xlu1 %2294 }
0x1630   :  { %v2301_v5 = vmul.f32 %v2300_v61, %v2295_v62  ;;  %v1826_v62 = vrot.slane %v1754_v25, %v3357_v23 }
0x1632   :  { %v2302_v37 = vadd.f32 %v2301_v5, %v2292_v3 }
0x1634   :  { %v2315_v44 = vpop.permute.xlu1 %2314  ;;  %v2312_v14 = vadd.f32 %v2311_v13, %v2302_v37 }
0x1635   :  { %v2321_v39 = vmul.f32 %v2320_v12, %v2315_v44  ;;  %v1836_v12 = vrot.slane %v1754_v25, %v3362_v0 }
0x1637   :  { %v2322_v56 = vadd.f32 %v2321_v39, %v2312_v14 }
0x1639   :  { %v2325_v16 = vpop.permute.xlu1 %2324 }
0x163a   :  { %v2331_v18 = vmul.f32 %v2330_v36, %v2325_v16 }
0x163c   :  { %v2332_v48 = vadd.f32 %v2331_v18, %v2322_v56  ;;  %v2462_v56 = vld [vmem:[%s3529_s5 + $0x1d0] ss:$0 sm:$0xff] }
0x163e   :  { %v2337_v21 = vadd.f32 %v2470_v19, %v2332_v48 }
0x1640   :  { %v2338_v22 = vmax.f32 %v2337_v21, 0.0 }
0x1642   :  { %v2340_v24 = vsel %vm2339_vm6, %v2338_v22, 0.0 }
0x1643   :  { %v2341_v11 = vrot.slane %v2340_v24, 4 }
0x1645   :  { %v2342_v28 = vadd.f32 %v2341_v11, %v2340_v24 }
0x1647   :  { %v2343_v30 = vrot.slane %v2342_v28, 2 }
0x1648   :  { %v1762_v31 = vpop.permute.xlu0 %1761  ;;  %v1771_v27 = vpop.permute.xlu1 %1770 }
0x1649   :  { %v2344_v32 = vadd.f32 %v2343_v30, %v2342_v28  ;;  %v1768_v33 = vmul.f32 %v1767_v15, %v1762_v31  ;;  %v1777_v34 = vmul.f32 %v1776_v29, %v1771_v27  ;;  %v2251_v31 = vld [vmem:[%s3529_s5 + $0x258] sm:$0x1] }
0x164b   :  { %v2345_v41 = vrot.slane %v2344_v32, 1  ;;  %v1778_v55 = vadd.f32 %v1777_v34, %v1768_v33 }
0x164d   :  { %v2346_v43 = vadd.f32 %v2345_v41, %v2344_v32  ;;  %v1781_v17 = vpop.permute.xlu1 %1780  ;;  %v1791_v60 = vpop.permute.xlu0 %1790 }
0x164e   :  { %v1787_v1 = vmul.f32 %v1786_v35, %v1781_v17  ;;  %v1797_v6 = vmul.f32 %v1796_v57, %v1791_v60  ;;  %v2471_v17 = vld [vmem:[%s3529_s5 + $0x260] ss:$0 sm:$0xff] }
0x164f   :  { %v2347_v46 = vmul.f32 0.33333334, %v2346_v43 }
0x1650   :  { %v1788_v42 = vadd.f32 %v1787_v1, %v1778_v55 }
0x1651   :  { %v2348_v49 = vsub.f32 %v2338_v22, %v2347_v46  ;;  %v2463_v22 = vld [vmem:[%s3529_s5 + $0x1d8] ss:$0 sm:$0xff] }
0x1652   :  { %v1801_v50 = vpop.permute.xlu1 %1800  ;;  %v1798_v52 = vadd.f32 %v1797_v6, %v1788_v42  ;;  %v1821_v5 = vpop.permute.xlu0 %1820  ;;  %v1939_v6 = vrot.slane %v3433_v45, %v3295_v10  ;;  %v1757_v10 = vld [vmem:[%s3529_s5 + $0x1e0] sm:$0x1] }
0x1653   :  { %v2349_v51 = vmul.f32 %v2348_v49, %v2348_v49  ;;  %v1807_v4 = vmul.f32 %v1806_v47, %v1801_v50  ;;  %v1827_v44 = vmul.f32 %v1826_v62, %v1821_v5 }
0x1655   :  { %v2350_v54 = vsel %vm2339_vm6, %v2349_v51, 0.0  ;;  %v1808_v63 = vadd.f32 %v1807_v4, %v1798_v52 }
0x1656   :  { %v2351_v58 = vrot.slane %v2350_v54, 4 }
0x1657   :  { %v1811_v59 = vpop.permute.xlu1 %1810 }
0x1658   :  { %v2352_v61 = vadd.f32 %v2351_v58, %v2350_v54  ;;  %v1817_v3 = vmul.f32 %v1816_v53, %v1811_v59 }
0x165a   :  { %v2353_v26 = vrot.slane %v2352_v61, 2  ;;  %v1818_v37 = vadd.f32 %v1817_v3, %v1808_v63 }
0x165c   :  { %v2354_v13 = vadd.f32 %v2353_v26, %v2352_v61  ;;  %v1831_v14 = vpop.permute.xlu1 %1830  ;;  %v1828_v36 = vadd.f32 %v1827_v44, %v1818_v37  ;;  %v2464_v61 = vld [vmem:[%s3529_s5 + $0x1e8] ss:$0 sm:$0xff]  ;;  %v1928_v26 = vpop.permute.xlu0 %1927 }
0x165d   :  { %v1837_v16 = vmul.f32 %v1836_v12, %v1831_v14  ;;  %v2371_v12 = vld [vmem:[%s3529_s5 + $0x268] sm:$0xf] }
0x165e   :  { %v2355_v39 = vrot.slane %v2354_v13, 1  ;;  %v2390_v44 = vrot.slane %v2371_v12, %v2832_v8  ;;  %v2472_v8 = vld [vmem:[%s3529_s5 + $0x270] ss:$0 sm:$0xff] }
0x165f   :  { %v1838_v48 = vadd.f32 %v1837_v16, %v1828_v36 }
0x1660   :  { %v2356_v18 = vadd.f32 %v2355_v39, %v2354_v13  ;;  %v2381_v13 = vrot.slane %v2371_v12, %v2829_v7 }
0x1661   :  { %v1841_v19 = vpop.permute.xlu1 %1840 }
0x1662   :  { %v2357_v23 = vmul.f32 0.33333334, %v2356_v18  ;;  %v1847_v21 = vmul.f32 %v2462_v56, %v1841_v19  ;;  %v2400_v56 = vrot.slane %v2371_v12, %v2835_v9  ;;  %v2410_v18 = vrot.slane %v2371_v12, %v2953_v38 }
0x1663   :  { %v1892_v38 = vrot.slane %v3433_v45, %v2829_v7 }
0x1664   :  { %v2358_v0 = vadd.f32 1e-05, %v2357_v23  ;;  %v1848_v24 = vadd.f32 %v1847_v21, %v1838_v48 }
0x1665   :  { %v1900_v58 = vpop.permute.xlu1 %1899 }
0x1666   :  { %2725 = vrsqrt.f32 %v2358_v0  ;;  %v1853_v11 = vadd.f32 %v2463_v22, %v1848_v24 }
0x1668   :  { %v1854_v25 = vmax.f32 %v1853_v11, 0.0 }
0x1669   :  { %v1914_v63 = vpop.permute.xlu1 %1913 }
0x166a   :  { %v1856_v28 = vsel %vm1855_vm7, %v1854_v25, 0.0 }
0x166b   :  { %v1857_v15 = vrot.slane %v1856_v28, 4 }
0x166d   :  { %v1858_v29 = vadd.f32 %v1857_v15, %v1856_v28 }
0x166f   :  { %v1859_v30 = vrot.slane %v1858_v29, 2 }
0x1671   :  { %v1860_v27 = vadd.f32 %v1859_v30, %v1858_v29 }
0x1673   :  { %v2726_v32 = vpop.eup %2725  ;;  %v1861_v33 = vrot.slane %v1860_v27, 1 }
0x1674   :  { %v2360_v34 = vmul.f32 %v2726_v32, %v2251_v31 }
0x1675   :  { %v1862_v35 = vadd.f32 %v1861_v33, %v1860_v27 }
0x1676   :  { %v2364_v41 = vrot.slane %v2360_v34, %v2829_v7 }
0x1677   :  { %v1863_v43 = vmul.f32 0.33333334, %v1862_v35 }
0x1678   :  { %v2365_v55 = vmul.f32 %v2364_v41, %v2348_v49  ;;  %v1953_v49 = vrot.slane %v3433_v45, %v3300_v40 }
0x1679   :  { %v1864_v57 = vsub.f32 %v1854_v25, %v1863_v43  ;;  %v2465_v43 = vld [vmem:[%s3529_s5 + $0x1f8] ss:$0 sm:$0xff] }
0x167a   :  { %v2370_v1 = vadd.f32 %v2471_v17, %v2365_v55 }
0x167b   :  { %v1865_v46 = vmul.f32 %v1864_v57, %v1864_v57 }
0x167c   :  { %2384 = vperm.xlu1 %2697, %v2370_v1   ;;  %2375 = vperm.xlu0 %2696, %v2370_v1  }
0x167d   :  { %v1866_v60 = vsel %vm1855_vm7, %v1865_v46, 0.0 }
0x167e   :  { %v1867_v42 = vrot.slane %v1866_v60, 4 }
0x1680   :  { %v1868_v47 = vadd.f32 %v1867_v42, %v1866_v60  ;;  %2699 = vset.pattern.permute.xlu1 %v2756_v20  ;;  %2698 = vset.pattern.permute.xlu0 %v2752_v2 }
0x1681   :  { %2404 = vperm.xlu1 %2699, %v2370_v1   ;;  %2394 = vperm.xlu0 %2698, %v2370_v1  }
0x1682   :  { %v1869_v50 = vrot.slane %v1868_v47, 2 }
0x1684   :  { %v1870_v51 = vadd.f32 %v1869_v50, %v1868_v47 }
0x1685   :  { %1941 = vrot.lane.b32.xlu1 %v1939_v6, %s2772_s13  ;;  %1955 = vrot.lane.b32.xlu0 %v1953_v49, %s2773_s14 }
0x1686   :  { %v1871_v52 = vrot.slane %v1870_v51, 1  ;;  %2700 = vset.pattern.permute.xlu0 %v2756_v20 }
0x1688   :  { %v1872_v4 = vadd.f32 %v1871_v52, %v1870_v51 }
0x168a   :  { %v1873_v53 = vmul.f32 0.33333334, %v1872_v4 }
0x168c   :  { %v1874_v2 = vadd.f32 1e-05, %v1873_v53 }
0x168e   :  { %2727 = vrsqrt.f32 %v1874_v2 }
0x169b   :  { %v2728_v54 = vpop.eup %2727 }
0x169c   :  { %v1876_v40 = vmul.f32 %v2728_v54, %v1757_v10 }
0x169e   :  { %v1880_v59 = vrot.slane %v1876_v40, %v2829_v7 }
0x16a0   :  { %v1881_v62 = vmul.f32 %v1880_v59, %v1864_v57 }
0x16a2   :  { %v1886_v20 = vadd.f32 %v2464_v61, %v1881_v62 }
0x16a4   :  { %v1902_v3 = vmul.f32 %v1900_v58, %v1886_v20  ;;  %v1916_v5 = vmul.f32 %v1914_v63, %v1886_v20  ;;  %v1930_v37 = vmul.f32 %v1928_v26, %v1886_v20  ;;  %v1893_v30 = vmul.f32 %v1892_v38, %v1886_v20 }
0x16a6   :  { %1904 = vrot.lane.b32.xlu1 %v1902_v3, %s2774_s18  ;;  %1918 = vrot.lane.b32.xlu0 %v1916_v5, %s2775_s19 }
0x16aa   :  { %1932 = vrot.lane.b32.xlu1 %v1930_v37, %s2776_s20 }
0x16f7   :  { %v2376_v14 = vpop.permute.xlu0 %2375  ;;  %v2385_v39 = vpop.permute.xlu1 %2384 }
0x16f8   :  { %v2382_v36 = vmul.f32 %v2381_v13, %v2376_v14  ;;  %v2391_v16 = vmul.f32 %v2390_v44, %v2385_v39 }
0x16fa   :  { %v2392_v48 = vadd.f32 %v2391_v16, %v2382_v36 }
0x16fc   :  { %v2395_v19 = vpop.permute.xlu0 %2394  ;;  %v2405_v23 = vpop.permute.xlu1 %2404 }
0x16fd   :  { %v2401_v21 = vmul.f32 %v2400_v56, %v2395_v19  ;;  %v2411_v0 = vmul.f32 %v2410_v18, %v2405_v23 }
0x16ff   :  { %v2402_v22 = vadd.f32 %v2401_v21, %v2392_v48 }
0x1700   :  { %v1956_v24 = vpop.permute.xlu0 %1955  ;;  %v1942_v11 = vpop.permute.xlu1 %1941 }
0x1701   :  { %v2412_v25 = vadd.f32 %v2411_v0, %v2402_v22  ;;  %v1958_v28 = vmul.f32 %v1956_v24, %v1886_v20  ;;  %v1944_v15 = vmul.f32 %v1942_v11, %v1886_v20 }
0x1703   :  { %1960 = vrot.lane.b32.xlu1 %v1958_v28, %s2777_s26  ;;  %1946 = vrot.lane.b32.xlu0 %v1944_v15, %s2778_s0  ;;  %v2417_v9 = vadd.f32 %v2472_v8, %v2412_v25 }
0x1707   :  { %2419 = vrot.lane.b32.xlu0 %v2417_v9, %s2770_s25  ;;  %s2431_s25 = sshll.u32 %s2779_s28, 4  ;;  %s2432_s25 = int_to_ptr.vmem [resolvable:$true] %s2431_s25 }
0x1708   :  { %s2729_s29 = scalar_lea.vmem %s2432_s25, 64  ;;  %p2734_p1 = scmp.lt.s32.totalorder %s2432_s25, %s2432_s25 }
0x1709   :  { %p2730_p0 = scmp.ne.s32.totalorder %s2432_s25, %s2729_s29  ;;  %p2735_p2 = scmp.lt.s32.totalorder %s2729_s29, %s2729_s29 }
0x170b   :  { %p2736_p3 = por %p2735_p2, %p2734_p1 }
0x170d   :  { %p2737_p4 = pnand %p2736_p3, %p2730_p0 }
0x1718   :  { %v1905_v29 = vpop.permute.xlu1 %1904  ;;  %v1919_v27 = vpop.permute.xlu0 %1918 }
0x1719   :  { %v1907_v31 = vadd.f32 %v1905_v29, %v1893_v30 }
0x171b   :  { %v1921_v32 = vadd.f32 %v1919_v27, %v1907_v31 }
0x171c   :  { %v1933_v33 = vpop.permute.xlu1 %1932 }
0x171d   :  { %v1935_v34 = vadd.f32 %v1933_v33, %v1921_v32 }
0x1775   :  { %v1947_v35 = vpop.permute.xlu0 %1946  ;;  %v1961_v17 = vpop.permute.xlu1 %1960 }
0x1776   :  { %v1949_v41 = vadd.f32 %v1947_v35, %v1935_v34 }
0x1778   :  { %v1963_v55 = vadd.f32 %v1961_v17, %v1949_v41 }
0x1779   :  { %v2420_v1 = vpop.permute.xlu0 %2419 }
0x177a   :  { %v1968_v57 = vadd.f32 %v2465_v43, %v1963_v55 }
0x177c   :  { %v2422_v7 = vsel %vm1478_vm12, %v1968_v57, %v2420_v1 }
0x177d   :  { %v2423_v45 = vsel %vm1482_vm14, %v2422_v7, 0.0 }
0x177e   :  { %2424 = vst [vmem:[#allocation2] sm:$0x7] %v2423_v45 }
0x177f   :  { %2740 = shalt.err (!%p2737_p4)
}
0x1780   :  { %2434 = dma.vmem_to_hbm [thread:$0]  %s2432_s25, 64, %s3530_s6, [#allocation3]  }
0x1781   :  { %2749 = dma.done.wait [#allocation3], 64  }
0x1782   :  { %2750 = vsyncadd [#allocation3], 4294967232 }
0x1783   :  { %2438 = vsyncpa [#allocation3], 1 }

</bundles_post_ra>
